<compile_context>
chip_gen: v7x
topology: tpu7x:2x2x1
jax: 0.10.0
libtpu: 0.0.40
codegen_flags: <defaults>
</compile_context>

<pallas_src>
import functools

import jax
import jax.numpy as jnp
from jax import lax
from jax.experimental import pallas as pl
from jax.experimental.pallas import tpu as pltpu

_LANE_TILE = 128


# ---------------------------------------------------------------------------
# Kernel: one (tm, tq) tile of P^T per grid step, streamed over (a, j, d).
# ---------------------------------------------------------------------------
def _unfold_kernel(mask_ref, et_ref, e_ref, pt_ref, *, ak, dsz, ng, scale,
                   ak_unroll):
    # mask_ref: (Ng, tq)          float mask, q on lanes
    # et_ref:   (AK*D, tm, tq)    e_tilde, q on lanes
    # e_ref:    (AK, D, Ng, tq)   e, native layout (q on lanes)
    # pt_ref:   (tm, tq)          P^T tile (modes on sublanes, q on lanes)
    tm, tq = pt_ref.shape
    mask = mask_ref[...]                                       # (Ng, tq)

    def a_body(a, w):
        # Fold the {0,1} mask into the (tiny) e rows for this (alpha, kappa):
        # mask * dot^2 == (dot(e_tilde, e*mask))^2.
        em_a = e_ref[a] * mask[None, :, :]                     # (D, Ng, tq)
        base = a * dsz
        for j in range(ng):                                    # Ng is small & static
            acc = et_ref[base] * em_a[0:1, j, :]               # (tm, tq)
            for dd in range(1, dsz):                           # D is small & static
                acc = acc + et_ref[base + dd] * em_a[dd:dd + 1, j, :]
            w = w + acc * acc
        return w

    w = lax.fori_loop(0, ak, a_body, jnp.zeros((tm, tq), jnp.float32),
                      unroll=ak_unroll)
    # Single fused scale = (Omega / tilde_Omega) / ng.
    pt_ref[...] = (w * scale).astype(pt_ref.dtype)


def _pick_tile(n_padded):
    # Padded dims are either <= 128 (== original) or a multiple of 128.
    return n_padded if n_padded <= _LANE_TILE else _LANE_TILE


# ---------------------------------------------------------------------------
# Jitted forward: mask build, pallas_call, A-row reduce and layout glue fuse
# into one executable.
# ---------------------------------------------------------------------------
@functools.partial(jax.jit, static_argnames=("scale",))
def _phonon_forward(q, Q, omega, g, G, et_pad, e_pad, *, scale):
    Nq = q.shape[0]
    Nomega = omega.shape[0]
    AKD, M_p, Nq_p = et_pad.shape
    AK, D, Ng, _ = e_pad.shape
    assert AKD == AK * D

    # mask[i, j] = torch.allclose(Q[i], q[i] + g[j] - G)   (cheap, fused glue)
    unfolded = q[:, None, :] + g[None, :, :] - G[None, None, :]        # (Nq, Ng, 3)
    tol = 1e-8 + 1e-5 * jnp.abs(unfolded)
    mask = jnp.all(jnp.abs(Q[:, None, :] - unfolded) <= tol, axis=-1)  # (Nq, Ng)
    mask_t = mask.T.astype(jnp.float32)                                # (Ng, Nq)
    mask_p = jnp.pad(mask_t, ((0, 0), (0, Nq_p - Nq)))                 # padded q -> 0

    tq = _pick_tile(Nq_p)
    tm = _pick_tile(M_p)
    grid = (Nq_p // tq, M_p // tm)          # q outer (e/mask blocks reused), m inner

    kernel = functools.partial(
        _unfold_kernel, ak=AK, dsz=D, ng=Ng, scale=scale,
        ak_unroll=True if AK <= 8 else 2)   # guard full unroll for large Nkappa

    pt_pad = pl.pallas_call(
        kernel,
        out_shape=jax.ShapeDtypeStruct((M_p, Nq_p), jnp.float32),
        grid=grid,
        in_specs=[
            pl.BlockSpec((Ng, tq), lambda qi, mi: (0, qi)),            # mask
            pl.BlockSpec((AKD, tm, tq), lambda qi, mi: (0, mi, qi)),   # e_tilde
            pl.BlockSpec((AK, D, Ng, tq), lambda qi, mi: (0, 0, 0, qi)),  # e
        ],
        out_specs=pl.BlockSpec((tm, tq), lambda qi, mi: (mi, qi)),     # P^T tile
        compiler_params=pltpu.CompilerParams(
            # No resident accumulator -> both axes parallel (v7x megacore).
            dimension_semantics=("parallel", "parallel"),
            vmem_limit_bytes=32 * 1024 * 1024),
    )(mask_p, et_pad, e_pad)

    # Strip padding; compute the A row from P in the fused wrapper (option (a)
    # of the review: negligible extra HBM traffic, keeps the kernel parallel).
    P_t = pt_pad[:Nomega, :Nq]                                         # (M, Nq)
    eq = omega[:, None] == omega[None, :]                              # eq[mu, k]
    a_row = jnp.sum(jnp.where(eq, P_t, 0.0), axis=1)                   # (M,)
    A = jnp.broadcast_to(a_row[None, :], (Nq, Nomega))
    P = P_t.T                                                          # (Nq, M)
    return A, P


# ---------------------------------------------------------------------------
# Module-like wrapper: one-time parameter layout prep, reused across calls.
# ---------------------------------------------------------------------------
class PhononUnfoldingTPU:
    # TODO(synk): self.Q / self.Omega / self.tilde_Omega are undefined in the
    # original torch __init__; they are supplied here as explicit parameters.

    def __init__(self, ng, omega, e_tilde, e, g, G, Q, Omega_vol,
                 tilde_Omega_vol):
        e_tilde = jnp.asarray(e_tilde, jnp.float32)
        e = jnp.asarray(e, jnp.float32)
        three, kappa, M, Nq, D = e_tilde.shape
        Ng = jnp.asarray(g).shape[0]
        assert three == 3 and e.shape == (3, kappa, D, Ng, Nq)
        Nomega = jnp.asarray(omega).shape[0]
        # The literal torch code broadcasts P[:, mu] against eq(omega, omega_mu):
        assert Nq == Nomega, "literal semantics require len(q) == len(omega)"

        self.nq, self.nomega = Nq, Nomega
        self.omega = jnp.asarray(omega, jnp.float32)
        self.g = jnp.asarray(g, jnp.float32)
        self.G = jnp.asarray(G, jnp.float32)
        self.Q = jnp.asarray(Q, jnp.float32)
        # Fused compile-time scale: (Omega / tilde_Omega) / ng.
        self.scale = float(Omega_vol) / float(tilde_Omega_vol) / float(ng)

        ak = 3 * kappa
        tq = _pick_tile(Nq if Nq <= _LANE_TILE else -(-Nq // _LANE_TILE) * _LANE_TILE)
        tm = _pick_tile(M if M <= _LANE_TILE else -(-M // _LANE_TILE) * _LANE_TILE)
        Nq_p = -(-Nq // tq) * tq
        M_p = -(-M // tm) * tm

        # One-time layout prep (reused across forward calls; the forward pass
        # never re-transposes the dominant operand in HBM):
        #   e_tilde (3,K,M,Nq,D) -> (AK*D, M, Nq)  : q on the lane axis.
        et = jnp.transpose(e_tilde, (0, 1, 4, 2, 3)).reshape(ak * D, M, Nq)
        self.et_pad = jnp.pad(et, ((0, 0), (0, M_p - M), (0, Nq_p - Nq)))
        #   e (3,K,D,Ng,Nq) -> (AK, D, Ng, Nq)     : free leading reshape.
        er = e.reshape(ak, D, Ng, Nq)
        self.e_pad = jnp.pad(er, ((0, 0), (0, 0), (0, 0), (0, Nq_p - Nq)))

    def forward(self, q):
        q = jnp.asarray(q, jnp.float32)
        assert q.shape == (self.nq, 3)
        return _phonon_forward(q, self.Q, self.omega, self.g, self.G,
                               self.et_pad, self.e_pad, scale=self.scale)

    __call__ = forward


# ---------------------------------------------------------------------------
# Pure-JAX reference (mirrors the torch loops) for a correctness check.
# ---------------------------------------------------------------------------
def _reference(q, Q, omega, e_tilde, e, g, G, ng, Omega_vol, tilde_Omega_vol):
    unfolded = q[:, None, :] + g[None, :, :] - G[None, None, :]
    tol = 1e-8 + 1e-5 * jnp.abs(unfolded)
    mask = jnp.all(jnp.abs(Q[:, None, :] - unfolded) <= tol, axis=-1)
    mask = mask.astype(jnp.float32)                                  # (Nq, Ng)
    dots = jnp.einsum("akmid,akdji->akmji", e_tilde, e)              # (3,K,M,Ng,Nq)
    weight = jnp.einsum("akmji,ij->im", dots * dots, mask)           # (Nq, M)
    P = (weight / ng) * (Omega_vol / tilde_Omega_vol)
    eqm = (omega[:, None] == omega[None, :]).astype(jnp.float32)     # eqm[mu, k]
    row = jnp.sum(eqm * P.T, axis=-1)                                # (M,)
    A = jnp.broadcast_to(row[None, :], P.shape)
    return A, P


if __name__ == "__main__":
    key = jax.random.PRNGKey(0)
    k0, k1, k2, k3, k4 = jax.random.split(key, 5)

    Nq = 8        # number of q points
    Nomega = 8    # number of phonon modes / frequencies (must equal Nq)
    Nkappa = 2    # atoms in primitive cell
    Ng = 4        # reciprocal lattice vectors g
    D = 8         # polarization-vector length used in the dot product

    q = jax.random.normal(k0, (Nq, 3), dtype=jnp.float32)
    g = jax.random.normal(k1, (Ng, 3), dtype=jnp.float32)
    G = jax.random.normal(k2, (3,), dtype=jnp.float32)
    # Choose Q so the unfolding condition Q == q + g[0] - G holds (mask nontrivial).
    Q = q + g[0][None, :] - G[None, :]

    omega = jnp.array([0.0, 1.0, 1.0, 2.0, 3.0, 3.0, 3.0, 4.0], dtype=jnp.float32)

    e_tilde = jax.random.normal(k3, (3, Nkappa, Nomega, Nq, D), dtype=jnp.float32)
    e = jax.random.normal(k4, (3, Nkappa, D, Ng, Nq), dtype=jnp.float32)

    ng = Ng
    Omega_vol = 4.0
    tilde_Omega_vol = 1.0

    model = PhononUnfoldingTPU(ng, omega, e_tilde, e, g, G, Q, Omega_vol,
                               tilde_Omega_vol)
    A, P = model(q)
    A = jax.block_until_ready(A)
    P = jax.block_until_ready(P)

    A_ref, P_ref = _reference(q, Q, omega, e_tilde, e, g, G, ng,
                              Omega_vol, tilde_Omega_vol)
    assert jnp.allclose(P, P_ref, rtol=1e-4, atol=1e-4), "P mismatch"
    assert jnp.allclose(A, A_ref, rtol=1e-4, atol=1e-4), "A mismatch"

    print("KERNEL_OK")
</pallas_src>

<mosaic_0001>
module attributes {stable_mosaic.version = 11 : i64} {
  func.func @_unfold_kernel(%arg0: i32, %arg1: i32, %arg2: memref<4x8xf32, #tpu.memory_space<vmem>>, %arg3: memref<48x8x8xf32, #tpu.memory_space<vmem>>, %arg4: memref<6x8x4x8xf32, #tpu.memory_space<vmem>>, %arg5: memref<8x8xf32, #tpu.memory_space<vmem>>) attributes {dimension_semantics = [#tpu.dimension_semantics<parallel>, #tpu.dimension_semantics<parallel>], iteration_bounds = array<i64: 1, 1>, scalar_prefetch = 0 : i64, scratch_operands = 0 : i64, tpu.core_type = #tpu.core_type<tc>, window_params = [{transform_indices = @transform_0, window_bounds = array<i64: 4, 8>}, {transform_indices = @transform_1, window_bounds = array<i64: 48, 8, 8>}, {transform_indices = @transform_2, window_bounds = array<i64: 6, 8, 4, 8>}, {transform_indices = @transform_3, window_bounds = array<i64: 8, 8>}]} {
    %c0 = arith.constant 0 : index
    %c0_0 = arith.constant 0 : index
    %0 = vector.load %arg2[%c0, %c0_0] : memref<4x8xf32, #tpu.memory_space<vmem>>, vector<4x8xf32>
    %cst = arith.constant 0.000000e+00 : f32
    %1 = vector.broadcast %cst : f32 to vector<8x8xf32>
    %c0_i32 = arith.constant 0 : i32
    %2 = arith.index_cast %c0_i32 : i32 to index
    %c0_1 = arith.constant 0 : index
    %c0_2 = arith.constant 0 : index
    %c0_3 = arith.constant 0 : index
    %3 = vector.load %arg4[%2, %c0_1, %c0_2, %c0_3] : memref<6x8x4x8xf32, #tpu.memory_space<vmem>>, vector<1x8x4x8xf32>
    %4 = vector.shape_cast %3 : vector<1x8x4x8xf32> to vector<8x4x8xf32>
    %5 = vector.shape_cast %0 : vector<4x8xf32> to vector<1x4x8xf32>
    %6 = vector.broadcast %5 : vector<1x4x8xf32> to vector<8x4x8xf32>
    %7 = arith.mulf %4, %6 : vector<8x4x8xf32>
    %c8_i32 = arith.constant 8 : i32
    %8 = arith.muli %c0_i32, %c8_i32 : i32
    %9 = arith.index_cast %8 : i32 to index
    %c0_4 = arith.constant 0 : index
    %c0_5 = arith.constant 0 : index
    %10 = vector.load %arg3[%9, %c0_4, %c0_5] : memref<48x8x8xf32, #tpu.memory_space<vmem>>, vector<1x8x8xf32>
    %11 = vector.shape_cast %10 : vector<1x8x8xf32> to vector<8x8xf32>
    %12 = vector.extract_strided_slice %7 {offsets = [0, 0, 0], sizes = [1, 1, 8], strides = [1, 1, 1]} : vector<8x4x8xf32> to vector<1x1x8xf32>
    %13 = vector.shape_cast %12 : vector<1x1x8xf32> to vector<1x8xf32>
    %14 = vector.broadcast %13 : vector<1x8xf32> to vector<8x8xf32>
    %15 = arith.mulf %11, %14 : vector<8x8xf32>
    %c1_i32 = arith.constant 1 : i32
    %16 = arith.addi %8, %c1_i32 : i32
    %17 = arith.index_cast %16 : i32 to index
    %c0_6 = arith.constant 0 : index
    %c0_7 = arith.constant 0 : index
    %18 = vector.load %arg3[%17, %c0_6, %c0_7] : memref<48x8x8xf32, #tpu.memory_space<vmem>>, vector<1x8x8xf32>
    %19 = vector.shape_cast %18 : vector<1x8x8xf32> to vector<8x8xf32>
    %20 = vector.extract_strided_slice %7 {offsets = [1, 0, 0], sizes = [1, 1, 8], strides = [1, 1, 1]} : vector<8x4x8xf32> to vector<1x1x8xf32>
    %21 = vector.shape_cast %20 : vector<1x1x8xf32> to vector<1x8xf32>
    %22 = vector.broadcast %21 : vector<1x8xf32> to vector<8x8xf32>
    %23 = arith.mulf %19, %22 : vector<8x8xf32>
    %24 = arith.addf %15, %23 : vector<8x8xf32>
    %c2_i32 = arith.constant 2 : i32
    %25 = arith.addi %8, %c2_i32 : i32
    %26 = arith.index_cast %25 : i32 to index
    %c0_8 = arith.constant 0 : index
    %c0_9 = arith.constant 0 : index
    %27 = vector.load %arg3[%26, %c0_8, %c0_9] : memref<48x8x8xf32, #tpu.memory_space<vmem>>, vector<1x8x8xf32>
    %28 = vector.shape_cast %27 : vector<1x8x8xf32> to vector<8x8xf32>
    %29 = vector.extract_strided_slice %7 {offsets = [2, 0, 0], sizes = [1, 1, 8], strides = [1, 1, 1]} : vector<8x4x8xf32> to vector<1x1x8xf32>
    %30 = vector.shape_cast %29 : vector<1x1x8xf32> to vector<1x8xf32>
    %31 = vector.broadcast %30 : vector<1x8xf32> to vector<8x8xf32>
    %32 = arith.mulf %28, %31 : vector<8x8xf32>
    %33 = arith.addf %24, %32 : vector<8x8xf32>
    %c3_i32 = arith.constant 3 : i32
    %34 = arith.addi %8, %c3_i32 : i32
    %35 = arith.index_cast %34 : i32 to index
    %c0_10 = arith.constant 0 : index
    %c0_11 = arith.constant 0 : index
    %36 = vector.load %arg3[%35, %c0_10, %c0_11] : memref<48x8x8xf32, #tpu.memory_space<vmem>>, vector<1x8x8xf32>
    %37 = vector.shape_cast %36 : vector<1x8x8xf32> to vector<8x8xf32>
    %38 = vector.extract_strided_slice %7 {offsets = [3, 0, 0], sizes = [1, 1, 8], strides = [1, 1, 1]} : vector<8x4x8xf32> to vector<1x1x8xf32>
    %39 = vector.shape_cast %38 : vector<1x1x8xf32> to vector<1x8xf32>
    %40 = vector.broadcast %39 : vector<1x8xf32> to vector<8x8xf32>
    %41 = arith.mulf %37, %40 : vector<8x8xf32>
    %42 = arith.addf %33, %41 : vector<8x8xf32>
    %c4_i32 = arith.constant 4 : i32
    %43 = arith.addi %8, %c4_i32 : i32
    %44 = arith.index_cast %43 : i32 to index
    %c0_12 = arith.constant 0 : index
    %c0_13 = arith.constant 0 : index
    %45 = vector.load %arg3[%44, %c0_12, %c0_13] : memref<48x8x8xf32, #tpu.memory_space<vmem>>, vector<1x8x8xf32>
    %46 = vector.shape_cast %45 : vector<1x8x8xf32> to vector<8x8xf32>
    %47 = vector.extract_strided_slice %7 {offsets = [4, 0, 0], sizes = [1, 1, 8], strides = [1, 1, 1]} : vector<8x4x8xf32> to vector<1x1x8xf32>
    %48 = vector.shape_cast %47 : vector<1x1x8xf32> to vector<1x8xf32>
    %49 = vector.broadcast %48 : vector<1x8xf32> to vector<8x8xf32>
    %50 = arith.mulf %46, %49 : vector<8x8xf32>
    %51 = arith.addf %42, %50 : vector<8x8xf32>
    %c5_i32 = arith.constant 5 : i32
    %52 = arith.addi %8, %c5_i32 : i32
    %53 = arith.index_cast %52 : i32 to index
    %c0_14 = arith.constant 0 : index
    %c0_15 = arith.constant 0 : index
    %54 = vector.load %arg3[%53, %c0_14, %c0_15] : memref<48x8x8xf32, #tpu.memory_space<vmem>>, vector<1x8x8xf32>
    %55 = vector.shape_cast %54 : vector<1x8x8xf32> to vector<8x8xf32>
    %56 = vector.extract_strided_slice %7 {offsets = [5, 0, 0], sizes = [1, 1, 8], strides = [1, 1, 1]} : vector<8x4x8xf32> to vector<1x1x8xf32>
    %57 = vector.shape_cast %56 : vector<1x1x8xf32> to vector<1x8xf32>
    %58 = vector.broadcast %57 : vector<1x8xf32> to vector<8x8xf32>
    %59 = arith.mulf %55, %58 : vector<8x8xf32>
    %60 = arith.addf %51, %59 : vector<8x8xf32>
    %c6_i32 = arith.constant 6 : i32
    %61 = arith.addi %8, %c6_i32 : i32
    %62 = arith.index_cast %61 : i32 to index
    %c0_16 = arith.constant 0 : index
    %c0_17 = arith.constant 0 : index
    %63 = vector.load %arg3[%62, %c0_16, %c0_17] : memref<48x8x8xf32, #tpu.memory_space<vmem>>, vector<1x8x8xf32>
    %64 = vector.shape_cast %63 : vector<1x8x8xf32> to vector<8x8xf32>
    %65 = vector.extract_strided_slice %7 {offsets = [6, 0, 0], sizes = [1, 1, 8], strides = [1, 1, 1]} : vector<8x4x8xf32> to vector<1x1x8xf32>
    %66 = vector.shape_cast %65 : vector<1x1x8xf32> to vector<1x8xf32>
    %67 = vector.broadcast %66 : vector<1x8xf32> to vector<8x8xf32>
    %68 = arith.mulf %64, %67 : vector<8x8xf32>
    %69 = arith.addf %60, %68 : vector<8x8xf32>
    %c7_i32 = arith.constant 7 : i32
    %70 = arith.addi %8, %c7_i32 : i32
    %71 = arith.index_cast %70 : i32 to index
    %c0_18 = arith.constant 0 : index
    %c0_19 = arith.constant 0 : index
    %72 = vector.load %arg3[%71, %c0_18, %c0_19] : memref<48x8x8xf32, #tpu.memory_space<vmem>>, vector<1x8x8xf32>
    %73 = vector.shape_cast %72 : vector<1x8x8xf32> to vector<8x8xf32>
    %74 = vector.extract_strided_slice %7 {offsets = [7, 0, 0], sizes = [1, 1, 8], strides = [1, 1, 1]} : vector<8x4x8xf32> to vector<1x1x8xf32>
    %75 = vector.shape_cast %74 : vector<1x1x8xf32> to vector<1x8xf32>
    %76 = vector.broadcast %75 : vector<1x8xf32> to vector<8x8xf32>
    %77 = arith.mulf %73, %76 : vector<8x8xf32>
    %78 = arith.addf %69, %77 : vector<8x8xf32>
    %79 = arith.mulf %78, %78 : vector<8x8xf32>
    %80 = arith.addf %1, %79 : vector<8x8xf32>
    %81 = arith.index_cast %8 : i32 to index
    %c0_20 = arith.constant 0 : index
    %c0_21 = arith.constant 0 : index
    %82 = vector.load %arg3[%81, %c0_20, %c0_21] : memref<48x8x8xf32, #tpu.memory_space<vmem>>, vector<1x8x8xf32>
    %83 = vector.shape_cast %82 : vector<1x8x8xf32> to vector<8x8xf32>
    %84 = vector.extract_strided_slice %7 {offsets = [0, 1, 0], sizes = [1, 1, 8], strides = [1, 1, 1]} : vector<8x4x8xf32> to vector<1x1x8xf32>
    %85 = vector.shape_cast %84 : vector<1x1x8xf32> to vector<1x8xf32>
    %86 = vector.broadcast %85 : vector<1x8xf32> to vector<8x8xf32>
    %87 = arith.mulf %83, %86 : vector<8x8xf32>
    %c1_i32_22 = arith.constant 1 : i32
    %88 = arith.addi %8, %c1_i32_22 : i32
    %89 = arith.index_cast %88 : i32 to index
    %c0_23 = arith.constant 0 : index
    %c0_24 = arith.constant 0 : index
    %90 = vector.load %arg3[%89, %c0_23, %c0_24] : memref<48x8x8xf32, #tpu.memory_space<vmem>>, vector<1x8x8xf32>
    %91 = vector.shape_cast %90 : vector<1x8x8xf32> to vector<8x8xf32>
    %92 = vector.extract_strided_slice %7 {offsets = [1, 1, 0], sizes = [1, 1, 8], strides = [1, 1, 1]} : vector<8x4x8xf32> to vector<1x1x8xf32>
    %93 = vector.shape_cast %92 : vector<1x1x8xf32> to vector<1x8xf32>
    %94 = vector.broadcast %93 : vector<1x8xf32> to vector<8x8xf32>
    %95 = arith.mulf %91, %94 : vector<8x8xf32>
    %96 = arith.addf %87, %95 : vector<8x8xf32>
    %c2_i32_25 = arith.constant 2 : i32
    %97 = arith.addi %8, %c2_i32_25 : i32
    %98 = arith.index_cast %97 : i32 to index
    %c0_26 = arith.constant 0 : index
    %c0_27 = arith.constant 0 : index
    %99 = vector.load %arg3[%98, %c0_26, %c0_27] : memref<48x8x8xf32, #tpu.memory_space<vmem>>, vector<1x8x8xf32>
    %100 = vector.shape_cast %99 : vector<1x8x8xf32> to vector<8x8xf32>
    %101 = vector.extract_strided_slice %7 {offsets = [2, 1, 0], sizes = [1, 1, 8], strides = [1, 1, 1]} : vector<8x4x8xf32> to vector<1x1x8xf32>
    %102 = vector.shape_cast %101 : vector<1x1x8xf32> to vector<1x8xf32>
    %103 = vector.broadcast %102 : vector<1x8xf32> to vector<8x8xf32>
    %104 = arith.mulf %100, %103 : vector<8x8xf32>
    %105 = arith.addf %96, %104 : vector<8x8xf32>
    %c3_i32_28 = arith.constant 3 : i32
    %106 = arith.addi %8, %c3_i32_28 : i32
    %107 = arith.index_cast %106 : i32 to index
    %c0_29 = arith.constant 0 : index
    %c0_30 = arith.constant 0 : index
    %108 = vector.load %arg3[%107, %c0_29, %c0_30] : memref<48x8x8xf32, #tpu.memory_space<vmem>>, vector<1x8x8xf32>
    %109 = vector.shape_cast %108 : vector<1x8x8xf32> to vector<8x8xf32>
    %110 = vector.extract_strided_slice %7 {offsets = [3, 1, 0], sizes = [1, 1, 8], strides = [1, 1, 1]} : vector<8x4x8xf32> to vector<1x1x8xf32>
    %111 = vector.shape_cast %110 : vector<1x1x8xf32> to vector<1x8xf32>
    %112 = vector.broadcast %111 : vector<1x8xf32> to vector<8x8xf32>
    %113 = arith.mulf %109, %112 : vector<8x8xf32>
    %114 = arith.addf %105, %113 : vector<8x8xf32>
    %c4_i32_31 = arith.constant 4 : i32
    %115 = arith.addi %8, %c4_i32_31 : i32
    %116 = arith.index_cast %115 : i32 to index
    %c0_32 = arith.constant 0 : index
    %c0_33 = arith.constant 0 : index
    %117 = vector.load %arg3[%116, %c0_32, %c0_33] : memref<48x8x8xf32, #tpu.memory_space<vmem>>, vector<1x8x8xf32>
    %118 = vector.shape_cast %117 : vector<1x8x8xf32> to vector<8x8xf32>
    %119 = vector.extract_strided_slice %7 {offsets = [4, 1, 0], sizes = [1, 1, 8], strides = [1, 1, 1]} : vector<8x4x8xf32> to vector<1x1x8xf32>
    %120 = vector.shape_cast %119 : vector<1x1x8xf32> to vector<1x8xf32>
    %121 = vector.broadcast %120 : vector<1x8xf32> to vector<8x8xf32>
    %122 = arith.mulf %118, %121 : vector<8x8xf32>
    %123 = arith.addf %114, %122 : vector<8x8xf32>
    %c5_i32_34 = arith.constant 5 : i32
    %124 = arith.addi %8, %c5_i32_34 : i32
    %125 = arith.index_cast %124 : i32 to index
    %c0_35 = arith.constant 0 : index
    %c0_36 = arith.constant 0 : index
    %126 = vector.load %arg3[%125, %c0_35, %c0_36] : memref<48x8x8xf32, #tpu.memory_space<vmem>>, vector<1x8x8xf32>
    %127 = vector.shape_cast %126 : vector<1x8x8xf32> to vector<8x8xf32>
    %128 = vector.extract_strided_slice %7 {offsets = [5, 1, 0], sizes = [1, 1, 8], strides = [1, 1, 1]} : vector<8x4x8xf32> to vector<1x1x8xf32>
    %129 = vector.shape_cast %128 : vector<1x1x8xf32> to vector<1x8xf32>
    %130 = vector.broadcast %129 : vector<1x8xf32> to vector<8x8xf32>
    %131 = arith.mulf %127, %130 : vector<8x8xf32>
    %132 = arith.addf %123, %131 : vector<8x8xf32>
    %c6_i32_37 = arith.constant 6 : i32
    %133 = arith.addi %8, %c6_i32_37 : i32
    %134 = arith.index_cast %133 : i32 to index
    %c0_38 = arith.constant 0 : index
    %c0_39 = arith.constant 0 : index
    %135 = vector.load %arg3[%134, %c0_38, %c0_39] : memref<48x8x8xf32, #tpu.memory_space<vmem>>, vector<1x8x8xf32>
    %136 = vector.shape_cast %135 : vector<1x8x8xf32> to vector<8x8xf32>
    %137 = vector.extract_strided_slice %7 {offsets = [6, 1, 0], sizes = [1, 1, 8], strides = [1, 1, 1]} : vector<8x4x8xf32> to vector<1x1x8xf32>
    %138 = vector.shape_cast %137 : vector<1x1x8xf32> to vector<1x8xf32>
    %139 = vector.broadcast %138 : vector<1x8xf32> to vector<8x8xf32>
    %140 = arith.mulf %136, %139 : vector<8x8xf32>
    %141 = arith.addf %132, %140 : vector<8x8xf32>
    %c7_i32_40 = arith.constant 7 : i32
    %142 = arith.addi %8, %c7_i32_40 : i32
    %143 = arith.index_cast %142 : i32 to index
    %c0_41 = arith.constant 0 : index
    %c0_42 = arith.constant 0 : index
    %144 = vector.load %arg3[%143, %c0_41, %c0_42] : memref<48x8x8xf32, #tpu.memory_space<vmem>>, vector<1x8x8xf32>
    %145 = vector.shape_cast %144 : vector<1x8x8xf32> to vector<8x8xf32>
    %146 = vector.extract_strided_slice %7 {offsets = [7, 1, 0], sizes = [1, 1, 8], strides = [1, 1, 1]} : vector<8x4x8xf32> to vector<1x1x8xf32>
    %147 = vector.shape_cast %146 : vector<1x1x8xf32> to vector<1x8xf32>
    %148 = vector.broadcast %147 : vector<1x8xf32> to vector<8x8xf32>
    %149 = arith.mulf %145, %148 : vector<8x8xf32>
    %150 = arith.addf %141, %149 : vector<8x8xf32>
    %151 = arith.mulf %150, %150 : vector<8x8xf32>
    %152 = arith.addf %80, %151 : vector<8x8xf32>
    %153 = arith.index_cast %8 : i32 to index
    %c0_43 = arith.constant 0 : index
    %c0_44 = arith.constant 0 : index
    %154 = vector.load %arg3[%153, %c0_43, %c0_44] : memref<48x8x8xf32, #tpu.memory_space<vmem>>, vector<1x8x8xf32>
    %155 = vector.shape_cast %154 : vector<1x8x8xf32> to vector<8x8xf32>
    %156 = vector.extract_strided_slice %7 {offsets = [0, 2, 0], sizes = [1, 1, 8], strides = [1, 1, 1]} : vector<8x4x8xf32> to vector<1x1x8xf32>
    %157 = vector.shape_cast %156 : vector<1x1x8xf32> to vector<1x8xf32>
    %158 = vector.broadcast %157 : vector<1x8xf32> to vector<8x8xf32>
    %159 = arith.mulf %155, %158 : vector<8x8xf32>
    %c1_i32_45 = arith.constant 1 : i32
    %160 = arith.addi %8, %c1_i32_45 : i32
    %161 = arith.index_cast %160 : i32 to index
    %c0_46 = arith.constant 0 : index
    %c0_47 = arith.constant 0 : index
    %162 = vector.load %arg3[%161, %c0_46, %c0_47] : memref<48x8x8xf32, #tpu.memory_space<vmem>>, vector<1x8x8xf32>
    %163 = vector.shape_cast %162 : vector<1x8x8xf32> to vector<8x8xf32>
    %164 = vector.extract_strided_slice %7 {offsets = [1, 2, 0], sizes = [1, 1, 8], strides = [1, 1, 1]} : vector<8x4x8xf32> to vector<1x1x8xf32>
    %165 = vector.shape_cast %164 : vector<1x1x8xf32> to vector<1x8xf32>
    %166 = vector.broadcast %165 : vector<1x8xf32> to vector<8x8xf32>
    %167 = arith.mulf %163, %166 : vector<8x8xf32>
    %168 = arith.addf %159, %167 : vector<8x8xf32>
    %c2_i32_48 = arith.constant 2 : i32
    %169 = arith.addi %8, %c2_i32_48 : i32
    %170 = arith.index_cast %169 : i32 to index
    %c0_49 = arith.constant 0 : index
    %c0_50 = arith.constant 0 : index
    %171 = vector.load %arg3[%170, %c0_49, %c0_50] : memref<48x8x8xf32, #tpu.memory_space<vmem>>, vector<1x8x8xf32>
    %172 = vector.shape_cast %171 : vector<1x8x8xf32> to vector<8x8xf32>
    %173 = vector.extract_strided_slice %7 {offsets = [2, 2, 0], sizes = [1, 1, 8], strides = [1, 1, 1]} : vector<8x4x8xf32> to vector<1x1x8xf32>
    %174 = vector.shape_cast %173 : vector<1x1x8xf32> to vector<1x8xf32>
    %175 = vector.broadcast %174 : vector<1x8xf32> to vector<8x8xf32>
    %176 = arith.mulf %172, %175 : vector<8x8xf32>
    %177 = arith.addf %168, %176 : vector<8x8xf32>
    %c3_i32_51 = arith.constant 3 : i32
    %178 = arith.addi %8, %c3_i32_51 : i32
    %179 = arith.index_cast %178 : i32 to index
    %c0_52 = arith.constant 0 : index
    %c0_53 = arith.constant 0 : index
    %180 = vector.load %arg3[%179, %c0_52, %c0_53] : memref<48x8x8xf32, #tpu.memory_space<vmem>>, vector<1x8x8xf32>
    %181 = vector.shape_cast %180 : vector<1x8x8xf32> to vector<8x8xf32>
    %182 = vector.extract_strided_slice %7 {offsets = [3, 2, 0], sizes = [1, 1, 8], strides = [1, 1, 1]} : vector<8x4x8xf32> to vector<1x1x8xf32>
    %183 = vector.shape_cast %182 : vector<1x1x8xf32> to vector<1x8xf32>
    %184 = vector.broadcast %183 : vector<1x8xf32> to vector<8x8xf32>
    %185 = arith.mulf %181, %184 : vector<8x8xf32>
    %186 = arith.addf %177, %185 : vector<8x8xf32>
    %c4_i32_54 = arith.constant 4 : i32
    %187 = arith.addi %8, %c4_i32_54 : i32
    %188 = arith.index_cast %187 : i32 to index
    %c0_55 = arith.constant 0 : index
    %c0_56 = arith.constant 0 : index
    %189 = vector.load %arg3[%188, %c0_55, %c0_56] : memref<48x8x8xf32, #tpu.memory_space<vmem>>, vector<1x8x8xf32>
    %190 = vector.shape_cast %189 : vector<1x8x8xf32> to vector<8x8xf32>
    %191 = vector.extract_strided_slice %7 {offsets = [4, 2, 0], sizes = [1, 1, 8], strides = [1, 1, 1]} : vector<8x4x8xf32> to vector<1x1x8xf32>
    %192 = vector.shape_cast %191 : vector<1x1x8xf32> to vector<1x8xf32>
    %193 = vector.broadcast %192 : vector<1x8xf32> to vector<8x8xf32>
    %194 = arith.mulf %190, %193 : vector<8x8xf32>
    %195 = arith.addf %186, %194 : vector<8x8xf32>
    %c5_i32_57 = arith.constant 5 : i32
    %196 = arith.addi %8, %c5_i32_57 : i32
    %197 = arith.index_cast %196 : i32 to index
    %c0_58 = arith.constant 0 : index
    %c0_59 = arith.constant 0 : index
    %198 = vector.load %arg3[%197, %c0_58, %c0_59] : memref<48x8x8xf32, #tpu.memory_space<vmem>>, vector<1x8x8xf32>
    %199 = vector.shape_cast %198 : vector<1x8x8xf32> to vector<8x8xf32>
    %200 = vector.extract_strided_slice %7 {offsets = [5, 2, 0], sizes = [1, 1, 8], strides = [1, 1, 1]} : vector<8x4x8xf32> to vector<1x1x8xf32>
    %201 = vector.shape_cast %200 : vector<1x1x8xf32> to vector<1x8xf32>
    %202 = vector.broadcast %201 : vector<1x8xf32> to vector<8x8xf32>
    %203 = arith.mulf %199, %202 : vector<8x8xf32>
    %204 = arith.addf %195, %203 : vector<8x8xf32>
    %c6_i32_60 = arith.constant 6 : i32
    %205 = arith.addi %8, %c6_i32_60 : i32
    %206 = arith.index_cast %205 : i32 to index
    %c0_61 = arith.constant 0 : index
    %c0_62 = arith.constant 0 : index
    %207 = vector.load %arg3[%206, %c0_61, %c0_62] : memref<48x8x8xf32, #tpu.memory_space<vmem>>, vector<1x8x8xf32>
    %208 = vector.shape_cast %207 : vector<1x8x8xf32> to vector<8x8xf32>
    %209 = vector.extract_strided_slice %7 {offsets = [6, 2, 0], sizes = [1, 1, 8], strides = [1, 1, 1]} : vector<8x4x8xf32> to vector<1x1x8xf32>
    %210 = vector.shape_cast %209 : vector<1x1x8xf32> to vector<1x8xf32>
    %211 = vector.broadcast %210 : vector<1x8xf32> to vector<8x8xf32>
    %212 = arith.mulf %208, %211 : vector<8x8xf32>
    %213 = arith.addf %204, %212 : vector<8x8xf32>
    %c7_i32_63 = arith.constant 7 : i32
    %214 = arith.addi %8, %c7_i32_63 : i32
    %215 = arith.index_cast %214 : i32 to index
    %c0_64 = arith.constant 0 : index
    %c0_65 = arith.constant 0 : index
    %216 = vector.load %arg3[%215, %c0_64, %c0_65] : memref<48x8x8xf32, #tpu.memory_space<vmem>>, vector<1x8x8xf32>
    %217 = vector.shape_cast %216 : vector<1x8x8xf32> to vector<8x8xf32>
    %218 = vector.extract_strided_slice %7 {offsets = [7, 2, 0], sizes = [1, 1, 8], strides = [1, 1, 1]} : vector<8x4x8xf32> to vector<1x1x8xf32>
    %219 = vector.shape_cast %218 : vector<1x1x8xf32> to vector<1x8xf32>
    %220 = vector.broadcast %219 : vector<1x8xf32> to vector<8x8xf32>
    %221 = arith.mulf %217, %220 : vector<8x8xf32>
    %222 = arith.addf %213, %221 : vector<8x8xf32>
    %223 = arith.mulf %222, %222 : vector<8x8xf32>
    %224 = arith.addf %152, %223 : vector<8x8xf32>
    %225 = arith.index_cast %8 : i32 to index
    %c0_66 = arith.constant 0 : index
    %c0_67 = arith.constant 0 : index
    %226 = vector.load %arg3[%225, %c0_66, %c0_67] : memref<48x8x8xf32, #tpu.memory_space<vmem>>, vector<1x8x8xf32>
    %227 = vector.shape_cast %226 : vector<1x8x8xf32> to vector<8x8xf32>
    %228 = vector.extract_strided_slice %7 {offsets = [0, 3, 0], sizes = [1, 1, 8], strides = [1, 1, 1]} : vector<8x4x8xf32> to vector<1x1x8xf32>
    %229 = vector.shape_cast %228 : vector<1x1x8xf32> to vector<1x8xf32>
    %230 = vector.broadcast %229 : vector<1x8xf32> to vector<8x8xf32>
    %231 = arith.mulf %227, %230 : vector<8x8xf32>
    %c1_i32_68 = arith.constant 1 : i32
    %232 = arith.addi %8, %c1_i32_68 : i32
    %233 = arith.index_cast %232 : i32 to index
    %c0_69 = arith.constant 0 : index
    %c0_70 = arith.constant 0 : index
    %234 = vector.load %arg3[%233, %c0_69, %c0_70] : memref<48x8x8xf32, #tpu.memory_space<vmem>>, vector<1x8x8xf32>
    %235 = vector.shape_cast %234 : vector<1x8x8xf32> to vector<8x8xf32>
    %236 = vector.extract_strided_slice %7 {offsets = [1, 3, 0], sizes = [1, 1, 8], strides = [1, 1, 1]} : vector<8x4x8xf32> to vector<1x1x8xf32>
    %237 = vector.shape_cast %236 : vector<1x1x8xf32> to vector<1x8xf32>
    %238 = vector.broadcast %237 : vector<1x8xf32> to vector<8x8xf32>
    %239 = arith.mulf %235, %238 : vector<8x8xf32>
    %240 = arith.addf %231, %239 : vector<8x8xf32>
    %c2_i32_71 = arith.constant 2 : i32
    %241 = arith.addi %8, %c2_i32_71 : i32
    %242 = arith.index_cast %241 : i32 to index
    %c0_72 = arith.constant 0 : index
    %c0_73 = arith.constant 0 : index
    %243 = vector.load %arg3[%242, %c0_72, %c0_73] : memref<48x8x8xf32, #tpu.memory_space<vmem>>, vector<1x8x8xf32>
    %244 = vector.shape_cast %243 : vector<1x8x8xf32> to vector<8x8xf32>
    %245 = vector.extract_strided_slice %7 {offsets = [2, 3, 0], sizes = [1, 1, 8], strides = [1, 1, 1]} : vector<8x4x8xf32> to vector<1x1x8xf32>
    %246 = vector.shape_cast %245 : vector<1x1x8xf32> to vector<1x8xf32>
    %247 = vector.broadcast %246 : vector<1x8xf32> to vector<8x8xf32>
    %248 = arith.mulf %244, %247 : vector<8x8xf32>
    %249 = arith.addf %240, %248 : vector<8x8xf32>
    %c3_i32_74 = arith.constant 3 : i32
    %250 = arith.addi %8, %c3_i32_74 : i32
    %251 = arith.index_cast %250 : i32 to index
    %c0_75 = arith.constant 0 : index
    %c0_76 = arith.constant 0 : index
    %252 = vector.load %arg3[%251, %c0_75, %c0_76] : memref<48x8x8xf32, #tpu.memory_space<vmem>>, vector<1x8x8xf32>
    %253 = vector.shape_cast %252 : vector<1x8x8xf32> to vector<8x8xf32>
    %254 = vector.extract_strided_slice %7 {offsets = [3, 3, 0], sizes = [1, 1, 8], strides = [1, 1, 1]} : vector<8x4x8xf32> to vector<1x1x8xf32>
    %255 = vector.shape_cast %254 : vector<1x1x8xf32> to vector<1x8xf32>
    %256 = vector.broadcast %255 : vector<1x8xf32> to vector<8x8xf32>
    %257 = arith.mulf %253, %256 : vector<8x8xf32>
    %258 = arith.addf %249, %257 : vector<8x8xf32>
    %c4_i32_77 = arith.constant 4 : i32
    %259 = arith.addi %8, %c4_i32_77 : i32
    %260 = arith.index_cast %259 : i32 to index
    %c0_78 = arith.constant 0 : index
    %c0_79 = arith.constant 0 : index
    %261 = vector.load %arg3[%260, %c0_78, %c0_79] : memref<48x8x8xf32, #tpu.memory_space<vmem>>, vector<1x8x8xf32>
    %262 = vector.shape_cast %261 : vector<1x8x8xf32> to vector<8x8xf32>
    %263 = vector.extract_strided_slice %7 {offsets = [4, 3, 0], sizes = [1, 1, 8], strides = [1, 1, 1]} : vector<8x4x8xf32> to vector<1x1x8xf32>
    %264 = vector.shape_cast %263 : vector<1x1x8xf32> to vector<1x8xf32>
    %265 = vector.broadcast %264 : vector<1x8xf32> to vector<8x8xf32>
    %266 = arith.mulf %262, %265 : vector<8x8xf32>
    %267 = arith.addf %258, %266 : vector<8x8xf32>
    %c5_i32_80 = arith.constant 5 : i32
    %268 = arith.addi %8, %c5_i32_80 : i32
    %269 = arith.index_cast %268 : i32 to index
    %c0_81 = arith.constant 0 : index
    %c0_82 = arith.constant 0 : index
    %270 = vector.load %arg3[%269, %c0_81, %c0_82] : memref<48x8x8xf32, #tpu.memory_space<vmem>>, vector<1x8x8xf32>
    %271 = vector.shape_cast %270 : vector<1x8x8xf32> to vector<8x8xf32>
    %272 = vector.extract_strided_slice %7 {offsets = [5, 3, 0], sizes = [1, 1, 8], strides = [1, 1, 1]} : vector<8x4x8xf32> to vector<1x1x8xf32>
    %273 = vector.shape_cast %272 : vector<1x1x8xf32> to vector<1x8xf32>
    %274 = vector.broadcast %273 : vector<1x8xf32> to vector<8x8xf32>
    %275 = arith.mulf %271, %274 : vector<8x8xf32>
    %276 = arith.addf %267, %275 : vector<8x8xf32>
    %c6_i32_83 = arith.constant 6 : i32
    %277 = arith.addi %8, %c6_i32_83 : i32
    %278 = arith.index_cast %277 : i32 to index
    %c0_84 = arith.constant 0 : index
    %c0_85 = arith.constant 0 : index
    %279 = vector.load %arg3[%278, %c0_84, %c0_85] : memref<48x8x8xf32, #tpu.memory_space<vmem>>, vector<1x8x8xf32>
    %280 = vector.shape_cast %279 : vector<1x8x8xf32> to vector<8x8xf32>
    %281 = vector.extract_strided_slice %7 {offsets = [6, 3, 0], sizes = [1, 1, 8], strides = [1, 1, 1]} : vector<8x4x8xf32> to vector<1x1x8xf32>
    %282 = vector.shape_cast %281 : vector<1x1x8xf32> to vector<1x8xf32>
    %283 = vector.broadcast %282 : vector<1x8xf32> to vector<8x8xf32>
    %284 = arith.mulf %280, %283 : vector<8x8xf32>
    %285 = arith.addf %276, %284 : vector<8x8xf32>
    %c7_i32_86 = arith.constant 7 : i32
    %286 = arith.addi %8, %c7_i32_86 : i32
    %287 = arith.index_cast %286 : i32 to index
    %c0_87 = arith.constant 0 : index
    %c0_88 = arith.constant 0 : index
    %288 = vector.load %arg3[%287, %c0_87, %c0_88] : memref<48x8x8xf32, #tpu.memory_space<vmem>>, vector<1x8x8xf32>
    %289 = vector.shape_cast %288 : vector<1x8x8xf32> to vector<8x8xf32>
    %290 = vector.extract_strided_slice %7 {offsets = [7, 3, 0], sizes = [1, 1, 8], strides = [1, 1, 1]} : vector<8x4x8xf32> to vector<1x1x8xf32>
    %291 = vector.shape_cast %290 : vector<1x1x8xf32> to vector<1x8xf32>
    %292 = vector.broadcast %291 : vector<1x8xf32> to vector<8x8xf32>
    %293 = arith.mulf %289, %292 : vector<8x8xf32>
    %294 = arith.addf %285, %293 : vector<8x8xf32>
    %295 = arith.mulf %294, %294 : vector<8x8xf32>
    %296 = arith.addf %224, %295 : vector<8x8xf32>
    %c1_i32_89 = arith.constant 1 : i32
    %297 = arith.index_cast %c1_i32_89 : i32 to index
    %c0_90 = arith.constant 0 : index
    %c0_91 = arith.constant 0 : index
    %c0_92 = arith.constant 0 : index
    %298 = vector.load %arg4[%297, %c0_90, %c0_91, %c0_92] : memref<6x8x4x8xf32, #tpu.memory_space<vmem>>, vector<1x8x4x8xf32>
    %299 = vector.shape_cast %298 : vector<1x8x4x8xf32> to vector<8x4x8xf32>
    %300 = vector.shape_cast %0 : vector<4x8xf32> to vector<1x4x8xf32>
    %301 = vector.broadcast %300 : vector<1x4x8xf32> to vector<8x4x8xf32>
    %302 = arith.mulf %299, %301 : vector<8x4x8xf32>
    %c8_i32_93 = arith.constant 8 : i32
    %303 = arith.muli %c1_i32_89, %c8_i32_93 : i32
    %304 = arith.index_cast %303 : i32 to index
    %c0_94 = arith.constant 0 : index
    %c0_95 = arith.constant 0 : index
    %305 = vector.load %arg3[%304, %c0_94, %c0_95] : memref<48x8x8xf32, #tpu.memory_space<vmem>>, vector<1x8x8xf32>
    %306 = vector.shape_cast %305 : vector<1x8x8xf32> to vector<8x8xf32>
    %307 = vector.extract_strided_slice %302 {offsets = [0, 0, 0], sizes = [1, 1, 8], strides = [1, 1, 1]} : vector<8x4x8xf32> to vector<1x1x8xf32>
    %308 = vector.shape_cast %307 : vector<1x1x8xf32> to vector<1x8xf32>
    %309 = vector.broadcast %308 : vector<1x8xf32> to vector<8x8xf32>
    %310 = arith.mulf %306, %309 : vector<8x8xf32>
    %c1_i32_96 = arith.constant 1 : i32
    %311 = arith.addi %303, %c1_i32_96 : i32
    %312 = arith.index_cast %311 : i32 to index
    %c0_97 = arith.constant 0 : index
    %c0_98 = arith.constant 0 : index
    %313 = vector.load %arg3[%312, %c0_97, %c0_98] : memref<48x8x8xf32, #tpu.memory_space<vmem>>, vector<1x8x8xf32>
    %314 = vector.shape_cast %313 : vector<1x8x8xf32> to vector<8x8xf32>
    %315 = vector.extract_strided_slice %302 {offsets = [1, 0, 0], sizes = [1, 1, 8], strides = [1, 1, 1]} : vector<8x4x8xf32> to vector<1x1x8xf32>
    %316 = vector.shape_cast %315 : vector<1x1x8xf32> to vector<1x8xf32>
    %317 = vector.broadcast %316 : vector<1x8xf32> to vector<8x8xf32>
    %318 = arith.mulf %314, %317 : vector<8x8xf32>
    %319 = arith.addf %310, %318 : vector<8x8xf32>
    %c2_i32_99 = arith.constant 2 : i32
    %320 = arith.addi %303, %c2_i32_99 : i32
    %321 = arith.index_cast %320 : i32 to index
    %c0_100 = arith.constant 0 : index
    %c0_101 = arith.constant 0 : index
    %322 = vector.load %arg3[%321, %c0_100, %c0_101] : memref<48x8x8xf32, #tpu.memory_space<vmem>>, vector<1x8x8xf32>
    %323 = vector.shape_cast %322 : vector<1x8x8xf32> to vector<8x8xf32>
    %324 = vector.extract_strided_slice %302 {offsets = [2, 0, 0], sizes = [1, 1, 8], strides = [1, 1, 1]} : vector<8x4x8xf32> to vector<1x1x8xf32>
    %325 = vector.shape_cast %324 : vector<1x1x8xf32> to vector<1x8xf32>
    %326 = vector.broadcast %325 : vector<1x8xf32> to vector<8x8xf32>
    %327 = arith.mulf %323, %326 : vector<8x8xf32>
    %328 = arith.addf %319, %327 : vector<8x8xf32>
    %c3_i32_102 = arith.constant 3 : i32
    %329 = arith.addi %303, %c3_i32_102 : i32
    %330 = arith.index_cast %329 : i32 to index
    %c0_103 = arith.constant 0 : index
    %c0_104 = arith.constant 0 : index
    %331 = vector.load %arg3[%330, %c0_103, %c0_104] : memref<48x8x8xf32, #tpu.memory_space<vmem>>, vector<1x8x8xf32>
    %332 = vector.shape_cast %331 : vector<1x8x8xf32> to vector<8x8xf32>
    %333 = vector.extract_strided_slice %302 {offsets = [3, 0, 0], sizes = [1, 1, 8], strides = [1, 1, 1]} : vector<8x4x8xf32> to vector<1x1x8xf32>
    %334 = vector.shape_cast %333 : vector<1x1x8xf32> to vector<1x8xf32>
    %335 = vector.broadcast %334 : vector<1x8xf32> to vector<8x8xf32>
    %336 = arith.mulf %332, %335 : vector<8x8xf32>
    %337 = arith.addf %328, %336 : vector<8x8xf32>
    %c4_i32_105 = arith.constant 4 : i32
    %338 = arith.addi %303, %c4_i32_105 : i32
    %339 = arith.index_cast %338 : i32 to index
    %c0_106 = arith.constant 0 : index
    %c0_107 = arith.constant 0 : index
    %340 = vector.load %arg3[%339, %c0_106, %c0_107] : memref<48x8x8xf32, #tpu.memory_space<vmem>>, vector<1x8x8xf32>
    %341 = vector.shape_cast %340 : vector<1x8x8xf32> to vector<8x8xf32>
    %342 = vector.extract_strided_slice %302 {offsets = [4, 0, 0], sizes = [1, 1, 8], strides = [1, 1, 1]} : vector<8x4x8xf32> to vector<1x1x8xf32>
    %343 = vector.shape_cast %342 : vector<1x1x8xf32> to vector<1x8xf32>
    %344 = vector.broadcast %343 : vector<1x8xf32> to vector<8x8xf32>
    %345 = arith.mulf %341, %344 : vector<8x8xf32>
    %346 = arith.addf %337, %345 : vector<8x8xf32>
    %c5_i32_108 = arith.constant 5 : i32
    %347 = arith.addi %303, %c5_i32_108 : i32
    %348 = arith.index_cast %347 : i32 to index
    %c0_109 = arith.constant 0 : index
    %c0_110 = arith.constant 0 : index
    %349 = vector.load %arg3[%348, %c0_109, %c0_110] : memref<48x8x8xf32, #tpu.memory_space<vmem>>, vector<1x8x8xf32>
    %350 = vector.shape_cast %349 : vector<1x8x8xf32> to vector<8x8xf32>
    %351 = vector.extract_strided_slice %302 {offsets = [5, 0, 0], sizes = [1, 1, 8], strides = [1, 1, 1]} : vector<8x4x8xf32> to vector<1x1x8xf32>
    %352 = vector.shape_cast %351 : vector<1x1x8xf32> to vector<1x8xf32>
    %353 = vector.broadcast %352 : vector<1x8xf32> to vector<8x8xf32>
    %354 = arith.mulf %350, %353 : vector<8x8xf32>
    %355 = arith.addf %346, %354 : vector<8x8xf32>
    %c6_i32_111 = arith.constant 6 : i32
    %356 = arith.addi %303, %c6_i32_111 : i32
    %357 = arith.index_cast %356 : i32 to index
    %c0_112 = arith.constant 0 : index
    %c0_113 = arith.constant 0 : index
    %358 = vector.load %arg3[%357, %c0_112, %c0_113] : memref<48x8x8xf32, #tpu.memory_space<vmem>>, vector<1x8x8xf32>
    %359 = vector.shape_cast %358 : vector<1x8x8xf32> to vector<8x8xf32>
    %360 = vector.extract_strided_slice %302 {offsets = [6, 0, 0], sizes = [1, 1, 8], strides = [1, 1, 1]} : vector<8x4x8xf32> to vector<1x1x8xf32>
    %361 = vector.shape_cast %360 : vector<1x1x8xf32> to vector<1x8xf32>
    %362 = vector.broadcast %361 : vector<1x8xf32> to vector<8x8xf32>
    %363 = arith.mulf %359, %362 : vector<8x8xf32>
    %364 = arith.addf %355, %363 : vector<8x8xf32>
    %c7_i32_114 = arith.constant 7 : i32
    %365 = arith.addi %303, %c7_i32_114 : i32
    %366 = arith.index_cast %365 : i32 to index
    %c0_115 = arith.constant 0 : index
    %c0_116 = arith.constant 0 : index
    %367 = vector.load %arg3[%366, %c0_115, %c0_116] : memref<48x8x8xf32, #tpu.memory_space<vmem>>, vector<1x8x8xf32>
    %368 = vector.shape_cast %367 : vector<1x8x8xf32> to vector<8x8xf32>
    %369 = vector.extract_strided_slice %302 {offsets = [7, 0, 0], sizes = [1, 1, 8], strides = [1, 1, 1]} : vector<8x4x8xf32> to vector<1x1x8xf32>
    %370 = vector.shape_cast %369 : vector<1x1x8xf32> to vector<1x8xf32>
    %371 = vector.broadcast %370 : vector<1x8xf32> to vector<8x8xf32>
    %372 = arith.mulf %368, %371 : vector<8x8xf32>
    %373 = arith.addf %364, %372 : vector<8x8xf32>
    %374 = arith.mulf %373, %373 : vector<8x8xf32>
    %375 = arith.addf %296, %374 : vector<8x8xf32>
    %376 = arith.index_cast %303 : i32 to index
    %c0_117 = arith.constant 0 : index
    %c0_118 = arith.constant 0 : index
    %377 = vector.load %arg3[%376, %c0_117, %c0_118] : memref<48x8x8xf32, #tpu.memory_space<vmem>>, vector<1x8x8xf32>
    %378 = vector.shape_cast %377 : vector<1x8x8xf32> to vector<8x8xf32>
    %379 = vector.extract_strided_slice %302 {offsets = [0, 1, 0], sizes = [1, 1, 8], strides = [1, 1, 1]} : vector<8x4x8xf32> to vector<1x1x8xf32>
    %380 = vector.shape_cast %379 : vector<1x1x8xf32> to vector<1x8xf32>
    %381 = vector.broadcast %380 : vector<1x8xf32> to vector<8x8xf32>
    %382 = arith.mulf %378, %381 : vector<8x8xf32>
    %c1_i32_119 = arith.constant 1 : i32
    %383 = arith.addi %303, %c1_i32_119 : i32
    %384 = arith.index_cast %383 : i32 to index
    %c0_120 = arith.constant 0 : index
    %c0_121 = arith.constant 0 : index
    %385 = vector.load %arg3[%384, %c0_120, %c0_121] : memref<48x8x8xf32, #tpu.memory_space<vmem>>, vector<1x8x8xf32>
    %386 = vector.shape_cast %385 : vector<1x8x8xf32> to vector<8x8xf32>
    %387 = vector.extract_strided_slice %302 {offsets = [1, 1, 0], sizes = [1, 1, 8], strides = [1, 1, 1]} : vector<8x4x8xf32> to vector<1x1x8xf32>
    %388 = vector.shape_cast %387 : vector<1x1x8xf32> to vector<1x8xf32>
    %389 = vector.broadcast %388 : vector<1x8xf32> to vector<8x8xf32>
    %390 = arith.mulf %386, %389 : vector<8x8xf32>
    %391 = arith.addf %382, %390 : vector<8x8xf32>
    %c2_i32_122 = arith.constant 2 : i32
    %392 = arith.addi %303, %c2_i32_122 : i32
    %393 = arith.index_cast %392 : i32 to index
    %c0_123 = arith.constant 0 : index
    %c0_124 = arith.constant 0 : index
    %394 = vector.load %arg3[%393, %c0_123, %c0_124] : memref<48x8x8xf32, #tpu.memory_space<vmem>>, vector<1x8x8xf32>
    %395 = vector.shape_cast %394 : vector<1x8x8xf32> to vector<8x8xf32>
    %396 = vector.extract_strided_slice %302 {offsets = [2, 1, 0], sizes = [1, 1, 8], strides = [1, 1, 1]} : vector<8x4x8xf32> to vector<1x1x8xf32>
    %397 = vector.shape_cast %396 : vector<1x1x8xf32> to vector<1x8xf32>
    %398 = vector.broadcast %397 : vector<1x8xf32> to vector<8x8xf32>
    %399 = arith.mulf %395, %398 : vector<8x8xf32>
    %400 = arith.addf %391, %399 : vector<8x8xf32>
    %c3_i32_125 = arith.constant 3 : i32
    %401 = arith.addi %303, %c3_i32_125 : i32
    %402 = arith.index_cast %401 : i32 to index
    %c0_126 = arith.constant 0 : index
    %c0_127 = arith.constant 0 : index
    %403 = vector.load %arg3[%402, %c0_126, %c0_127] : memref<48x8x8xf32, #tpu.memory_space<vmem>>, vector<1x8x8xf32>
    %404 = vector.shape_cast %403 : vector<1x8x8xf32> to vector<8x8xf32>
    %405 = vector.extract_strided_slice %302 {offsets = [3, 1, 0], sizes = [1, 1, 8], strides = [1, 1, 1]} : vector<8x4x8xf32> to vector<1x1x8xf32>
    %406 = vector.shape_cast %405 : vector<1x1x8xf32> to vector<1x8xf32>
    %407 = vector.broadcast %406 : vector<1x8xf32> to vector<8x8xf32>
    %408 = arith.mulf %404, %407 : vector<8x8xf32>
    %409 = arith.addf %400, %408 : vector<8x8xf32>
    %c4_i32_128 = arith.constant 4 : i32
    %410 = arith.addi %303, %c4_i32_128 : i32
    %411 = arith.index_cast %410 : i32 to index
    %c0_129 = arith.constant 0 : index
    %c0_130 = arith.constant 0 : index
    %412 = vector.load %arg3[%411, %c0_129, %c0_130] : memref<48x8x8xf32, #tpu.memory_space<vmem>>, vector<1x8x8xf32>
    %413 = vector.shape_cast %412 : vector<1x8x8xf32> to vector<8x8xf32>
    %414 = vector.extract_strided_slice %302 {offsets = [4, 1, 0], sizes = [1, 1, 8], strides = [1, 1, 1]} : vector<8x4x8xf32> to vector<1x1x8xf32>
    %415 = vector.shape_cast %414 : vector<1x1x8xf32> to vector<1x8xf32>
    %416 = vector.broadcast %415 : vector<1x8xf32> to vector<8x8xf32>
    %417 = arith.mulf %413, %416 : vector<8x8xf32>
    %418 = arith.addf %409, %417 : vector<8x8xf32>
    %c5_i32_131 = arith.constant 5 : i32
    %419 = arith.addi %303, %c5_i32_131 : i32
    %420 = arith.index_cast %419 : i32 to index
    %c0_132 = arith.constant 0 : index
    %c0_133 = arith.constant 0 : index
    %421 = vector.load %arg3[%420, %c0_132, %c0_133] : memref<48x8x8xf32, #tpu.memory_space<vmem>>, vector<1x8x8xf32>
    %422 = vector.shape_cast %421 : vector<1x8x8xf32> to vector<8x8xf32>
    %423 = vector.extract_strided_slice %302 {offsets = [5, 1, 0], sizes = [1, 1, 8], strides = [1, 1, 1]} : vector<8x4x8xf32> to vector<1x1x8xf32>
    %424 = vector.shape_cast %423 : vector<1x1x8xf32> to vector<1x8xf32>
    %425 = vector.broadcast %424 : vector<1x8xf32> to vector<8x8xf32>
    %426 = arith.mulf %422, %425 : vector<8x8xf32>
    %427 = arith.addf %418, %426 : vector<8x8xf32>
    %c6_i32_134 = arith.constant 6 : i32
    %428 = arith.addi %303, %c6_i32_134 : i32
    %429 = arith.index_cast %428 : i32 to index
    %c0_135 = arith.constant 0 : index
    %c0_136 = arith.constant 0 : index
    %430 = vector.load %arg3[%429, %c0_135, %c0_136] : memref<48x8x8xf32, #tpu.memory_space<vmem>>, vector<1x8x8xf32>
    %431 = vector.shape_cast %430 : vector<1x8x8xf32> to vector<8x8xf32>
    %432 = vector.extract_strided_slice %302 {offsets = [6, 1, 0], sizes = [1, 1, 8], strides = [1, 1, 1]} : vector<8x4x8xf32> to vector<1x1x8xf32>
    %433 = vector.shape_cast %432 : vector<1x1x8xf32> to vector<1x8xf32>
    %434 = vector.broadcast %433 : vector<1x8xf32> to vector<8x8xf32>
    %435 = arith.mulf %431, %434 : vector<8x8xf32>
    %436 = arith.addf %427, %435 : vector<8x8xf32>
    %c7_i32_137 = arith.constant 7 : i32
    %437 = arith.addi %303, %c7_i32_137 : i32
    %438 = arith.index_cast %437 : i32 to index
    %c0_138 = arith.constant 0 : index
    %c0_139 = arith.constant 0 : index
    %439 = vector.load %arg3[%438, %c0_138, %c0_139] : memref<48x8x8xf32, #tpu.memory_space<vmem>>, vector<1x8x8xf32>
    %440 = vector.shape_cast %439 : vector<1x8x8xf32> to vector<8x8xf32>
    %441 = vector.extract_strided_slice %302 {offsets = [7, 1, 0], sizes = [1, 1, 8], strides = [1, 1, 1]} : vector<8x4x8xf32> to vector<1x1x8xf32>
    %442 = vector.shape_cast %441 : vector<1x1x8xf32> to vector<1x8xf32>
    %443 = vector.broadcast %442 : vector<1x8xf32> to vector<8x8xf32>
    %444 = arith.mulf %440, %443 : vector<8x8xf32>
    %445 = arith.addf %436, %444 : vector<8x8xf32>
    %446 = arith.mulf %445, %445 : vector<8x8xf32>
    %447 = arith.addf %375, %446 : vector<8x8xf32>
    %448 = arith.index_cast %303 : i32 to index
    %c0_140 = arith.constant 0 : index
    %c0_141 = arith.constant 0 : index
    %449 = vector.load %arg3[%448, %c0_140, %c0_141] : memref<48x8x8xf32, #tpu.memory_space<vmem>>, vector<1x8x8xf32>
    %450 = vector.shape_cast %449 : vector<1x8x8xf32> to vector<8x8xf32>
    %451 = vector.extract_strided_slice %302 {offsets = [0, 2, 0], sizes = [1, 1, 8], strides = [1, 1, 1]} : vector<8x4x8xf32> to vector<1x1x8xf32>
    %452 = vector.shape_cast %451 : vector<1x1x8xf32> to vector<1x8xf32>
    %453 = vector.broadcast %452 : vector<1x8xf32> to vector<8x8xf32>
    %454 = arith.mulf %450, %453 : vector<8x8xf32>
    %c1_i32_142 = arith.constant 1 : i32
    %455 = arith.addi %303, %c1_i32_142 : i32
    %456 = arith.index_cast %455 : i32 to index
    %c0_143 = arith.constant 0 : index
    %c0_144 = arith.constant 0 : index
    %457 = vector.load %arg3[%456, %c0_143, %c0_144] : memref<48x8x8xf32, #tpu.memory_space<vmem>>, vector<1x8x8xf32>
    %458 = vector.shape_cast %457 : vector<1x8x8xf32> to vector<8x8xf32>
    %459 = vector.extract_strided_slice %302 {offsets = [1, 2, 0], sizes = [1, 1, 8], strides = [1, 1, 1]} : vector<8x4x8xf32> to vector<1x1x8xf32>
    %460 = vector.shape_cast %459 : vector<1x1x8xf32> to vector<1x8xf32>
    %461 = vector.broadcast %460 : vector<1x8xf32> to vector<8x8xf32>
    %462 = arith.mulf %458, %461 : vector<8x8xf32>
    %463 = arith.addf %454, %462 : vector<8x8xf32>
    %c2_i32_145 = arith.constant 2 : i32
    %464 = arith.addi %303, %c2_i32_145 : i32
    %465 = arith.index_cast %464 : i32 to index
    %c0_146 = arith.constant 0 : index
    %c0_147 = arith.constant 0 : index
    %466 = vector.load %arg3[%465, %c0_146, %c0_147] : memref<48x8x8xf32, #tpu.memory_space<vmem>>, vector<1x8x8xf32>
    %467 = vector.shape_cast %466 : vector<1x8x8xf32> to vector<8x8xf32>
    %468 = vector.extract_strided_slice %302 {offsets = [2, 2, 0], sizes = [1, 1, 8], strides = [1, 1, 1]} : vector<8x4x8xf32> to vector<1x1x8xf32>
    %469 = vector.shape_cast %468 : vector<1x1x8xf32> to vector<1x8xf32>
    %470 = vector.broadcast %469 : vector<1x8xf32> to vector<8x8xf32>
    %471 = arith.mulf %467, %470 : vector<8x8xf32>
    %472 = arith.addf %463, %471 : vector<8x8xf32>
    %c3_i32_148 = arith.constant 3 : i32
    %473 = arith.addi %303, %c3_i32_148 : i32
    %474 = arith.index_cast %473 : i32 to index
    %c0_149 = arith.constant 0 : index
    %c0_150 = arith.constant 0 : index
    %475 = vector.load %arg3[%474, %c0_149, %c0_150] : memref<48x8x8xf32, #tpu.memory_space<vmem>>, vector<1x8x8xf32>
    %476 = vector.shape_cast %475 : vector<1x8x8xf32> to vector<8x8xf32>
    %477 = vector.extract_strided_slice %302 {offsets = [3, 2, 0], sizes = [1, 1, 8], strides = [1, 1, 1]} : vector<8x4x8xf32> to vector<1x1x8xf32>
    %478 = vector.shape_cast %477 : vector<1x1x8xf32> to vector<1x8xf32>
    %479 = vector.broadcast %478 : vector<1x8xf32> to vector<8x8xf32>
    %480 = arith.mulf %476, %479 : vector<8x8xf32>
    %481 = arith.addf %472, %480 : vector<8x8xf32>
    %c4_i32_151 = arith.constant 4 : i32
    %482 = arith.addi %303, %c4_i32_151 : i32
    %483 = arith.index_cast %482 : i32 to index
    %c0_152 = arith.constant 0 : index
    %c0_153 = arith.constant 0 : index
    %484 = vector.load %arg3[%483, %c0_152, %c0_153] : memref<48x8x8xf32, #tpu.memory_space<vmem>>, vector<1x8x8xf32>
    %485 = vector.shape_cast %484 : vector<1x8x8xf32> to vector<8x8xf32>
    %486 = vector.extract_strided_slice %302 {offsets = [4, 2, 0], sizes = [1, 1, 8], strides = [1, 1, 1]} : vector<8x4x8xf32> to vector<1x1x8xf32>
    %487 = vector.shape_cast %486 : vector<1x1x8xf32> to vector<1x8xf32>
    %488 = vector.broadcast %487 : vector<1x8xf32> to vector<8x8xf32>
    %489 = arith.mulf %485, %488 : vector<8x8xf32>
    %490 = arith.addf %481, %489 : vector<8x8xf32>
    %c5_i32_154 = arith.constant 5 : i32
    %491 = arith.addi %303, %c5_i32_154 : i32
    %492 = arith.index_cast %491 : i32 to index
    %c0_155 = arith.constant 0 : index
    %c0_156 = arith.constant 0 : index
    %493 = vector.load %arg3[%492, %c0_155, %c0_156] : memref<48x8x8xf32, #tpu.memory_space<vmem>>, vector<1x8x8xf32>
    %494 = vector.shape_cast %493 : vector<1x8x8xf32> to vector<8x8xf32>
    %495 = vector.extract_strided_slice %302 {offsets = [5, 2, 0], sizes = [1, 1, 8], strides = [1, 1, 1]} : vector<8x4x8xf32> to vector<1x1x8xf32>
    %496 = vector.shape_cast %495 : vector<1x1x8xf32> to vector<1x8xf32>
    %497 = vector.broadcast %496 : vector<1x8xf32> to vector<8x8xf32>
    %498 = arith.mulf %494, %497 : vector<8x8xf32>
    %499 = arith.addf %490, %498 : vector<8x8xf32>
    %c6_i32_157 = arith.constant 6 : i32
    %500 = arith.addi %303, %c6_i32_157 : i32
    %501 = arith.index_cast %500 : i32 to index
    %c0_158 = arith.constant 0 : index
    %c0_159 = arith.constant 0 : index
    %502 = vector.load %arg3[%501, %c0_158, %c0_159] : memref<48x8x8xf32, #tpu.memory_space<vmem>>, vector<1x8x8xf32>
    %503 = vector.shape_cast %502 : vector<1x8x8xf32> to vector<8x8xf32>
    %504 = vector.extract_strided_slice %302 {offsets = [6, 2, 0], sizes = [1, 1, 8], strides = [1, 1, 1]} : vector<8x4x8xf32> to vector<1x1x8xf32>
    %505 = vector.shape_cast %504 : vector<1x1x8xf32> to vector<1x8xf32>
    %506 = vector.broadcast %505 : vector<1x8xf32> to vector<8x8xf32>
    %507 = arith.mulf %503, %506 : vector<8x8xf32>
    %508 = arith.addf %499, %507 : vector<8x8xf32>
    %c7_i32_160 = arith.constant 7 : i32
    %509 = arith.addi %303, %c7_i32_160 : i32
    %510 = arith.index_cast %509 : i32 to index
    %c0_161 = arith.constant 0 : index
    %c0_162 = arith.constant 0 : index
    %511 = vector.load %arg3[%510, %c0_161, %c0_162] : memref<48x8x8xf32, #tpu.memory_space<vmem>>, vector<1x8x8xf32>
    %512 = vector.shape_cast %511 : vector<1x8x8xf32> to vector<8x8xf32>
    %513 = vector.extract_strided_slice %302 {offsets = [7, 2, 0], sizes = [1, 1, 8], strides = [1, 1, 1]} : vector<8x4x8xf32> to vector<1x1x8xf32>
    %514 = vector.shape_cast %513 : vector<1x1x8xf32> to vector<1x8xf32>
    %515 = vector.broadcast %514 : vector<1x8xf32> to vector<8x8xf32>
    %516 = arith.mulf %512, %515 : vector<8x8xf32>
    %517 = arith.addf %508, %516 : vector<8x8xf32>
    %518 = arith.mulf %517, %517 : vector<8x8xf32>
    %519 = arith.addf %447, %518 : vector<8x8xf32>
    %520 = arith.index_cast %303 : i32 to index
    %c0_163 = arith.constant 0 : index
    %c0_164 = arith.constant 0 : index
    %521 = vector.load %arg3[%520, %c0_163, %c0_164] : memref<48x8x8xf32, #tpu.memory_space<vmem>>, vector<1x8x8xf32>
    %522 = vector.shape_cast %521 : vector<1x8x8xf32> to vector<8x8xf32>
    %523 = vector.extract_strided_slice %302 {offsets = [0, 3, 0], sizes = [1, 1, 8], strides = [1, 1, 1]} : vector<8x4x8xf32> to vector<1x1x8xf32>
    %524 = vector.shape_cast %523 : vector<1x1x8xf32> to vector<1x8xf32>
    %525 = vector.broadcast %524 : vector<1x8xf32> to vector<8x8xf32>
    %526 = arith.mulf %522, %525 : vector<8x8xf32>
    %c1_i32_165 = arith.constant 1 : i32
    %527 = arith.addi %303, %c1_i32_165 : i32
    %528 = arith.index_cast %527 : i32 to index
    %c0_166 = arith.constant 0 : index
    %c0_167 = arith.constant 0 : index
    %529 = vector.load %arg3[%528, %c0_166, %c0_167] : memref<48x8x8xf32, #tpu.memory_space<vmem>>, vector<1x8x8xf32>
    %530 = vector.shape_cast %529 : vector<1x8x8xf32> to vector<8x8xf32>
    %531 = vector.extract_strided_slice %302 {offsets = [1, 3, 0], sizes = [1, 1, 8], strides = [1, 1, 1]} : vector<8x4x8xf32> to vector<1x1x8xf32>
    %532 = vector.shape_cast %531 : vector<1x1x8xf32> to vector<1x8xf32>
    %533 = vector.broadcast %532 : vector<1x8xf32> to vector<8x8xf32>
    %534 = arith.mulf %530, %533 : vector<8x8xf32>
    %535 = arith.addf %526, %534 : vector<8x8xf32>
    %c2_i32_168 = arith.constant 2 : i32
    %536 = arith.addi %303, %c2_i32_168 : i32
    %537 = arith.index_cast %536 : i32 to index
    %c0_169 = arith.constant 0 : index
    %c0_170 = arith.constant 0 : index
    %538 = vector.load %arg3[%537, %c0_169, %c0_170] : memref<48x8x8xf32, #tpu.memory_space<vmem>>, vector<1x8x8xf32>
    %539 = vector.shape_cast %538 : vector<1x8x8xf32> to vector<8x8xf32>
    %540 = vector.extract_strided_slice %302 {offsets = [2, 3, 0], sizes = [1, 1, 8], strides = [1, 1, 1]} : vector<8x4x8xf32> to vector<1x1x8xf32>
    %541 = vector.shape_cast %540 : vector<1x1x8xf32> to vector<1x8xf32>
    %542 = vector.broadcast %541 : vector<1x8xf32> to vector<8x8xf32>
    %543 = arith.mulf %539, %542 : vector<8x8xf32>
    %544 = arith.addf %535, %543 : vector<8x8xf32>
    %c3_i32_171 = arith.constant 3 : i32
    %545 = arith.addi %303, %c3_i32_171 : i32
    %546 = arith.index_cast %545 : i32 to index
    %c0_172 = arith.constant 0 : index
    %c0_173 = arith.constant 0 : index
    %547 = vector.load %arg3[%546, %c0_172, %c0_173] : memref<48x8x8xf32, #tpu.memory_space<vmem>>, vector<1x8x8xf32>
    %548 = vector.shape_cast %547 : vector<1x8x8xf32> to vector<8x8xf32>
    %549 = vector.extract_strided_slice %302 {offsets = [3, 3, 0], sizes = [1, 1, 8], strides = [1, 1, 1]} : vector<8x4x8xf32> to vector<1x1x8xf32>
    %550 = vector.shape_cast %549 : vector<1x1x8xf32> to vector<1x8xf32>
    %551 = vector.broadcast %550 : vector<1x8xf32> to vector<8x8xf32>
    %552 = arith.mulf %548, %551 : vector<8x8xf32>
    %553 = arith.addf %544, %552 : vector<8x8xf32>
    %c4_i32_174 = arith.constant 4 : i32
    %554 = arith.addi %303, %c4_i32_174 : i32
    %555 = arith.index_cast %554 : i32 to index
    %c0_175 = arith.constant 0 : index
    %c0_176 = arith.constant 0 : index
    %556 = vector.load %arg3[%555, %c0_175, %c0_176] : memref<48x8x8xf32, #tpu.memory_space<vmem>>, vector<1x8x8xf32>
    %557 = vector.shape_cast %556 : vector<1x8x8xf32> to vector<8x8xf32>
    %558 = vector.extract_strided_slice %302 {offsets = [4, 3, 0], sizes = [1, 1, 8], strides = [1, 1, 1]} : vector<8x4x8xf32> to vector<1x1x8xf32>
    %559 = vector.shape_cast %558 : vector<1x1x8xf32> to vector<1x8xf32>
    %560 = vector.broadcast %559 : vector<1x8xf32> to vector<8x8xf32>
    %561 = arith.mulf %557, %560 : vector<8x8xf32>
    %562 = arith.addf %553, %561 : vector<8x8xf32>
    %c5_i32_177 = arith.constant 5 : i32
    %563 = arith.addi %303, %c5_i32_177 : i32
    %564 = arith.index_cast %563 : i32 to index
    %c0_178 = arith.constant 0 : index
    %c0_179 = arith.constant 0 : index
    %565 = vector.load %arg3[%564, %c0_178, %c0_179] : memref<48x8x8xf32, #tpu.memory_space<vmem>>, vector<1x8x8xf32>
    %566 = vector.shape_cast %565 : vector<1x8x8xf32> to vector<8x8xf32>
    %567 = vector.extract_strided_slice %302 {offsets = [5, 3, 0], sizes = [1, 1, 8], strides = [1, 1, 1]} : vector<8x4x8xf32> to vector<1x1x8xf32>
    %568 = vector.shape_cast %567 : vector<1x1x8xf32> to vector<1x8xf32>
    %569 = vector.broadcast %568 : vector<1x8xf32> to vector<8x8xf32>
    %570 = arith.mulf %566, %569 : vector<8x8xf32>
    %571 = arith.addf %562, %570 : vector<8x8xf32>
    %c6_i32_180 = arith.constant 6 : i32
    %572 = arith.addi %303, %c6_i32_180 : i32
    %573 = arith.index_cast %572 : i32 to index
    %c0_181 = arith.constant 0 : index
    %c0_182 = arith.constant 0 : index
    %574 = vector.load %arg3[%573, %c0_181, %c0_182] : memref<48x8x8xf32, #tpu.memory_space<vmem>>, vector<1x8x8xf32>
    %575 = vector.shape_cast %574 : vector<1x8x8xf32> to vector<8x8xf32>
    %576 = vector.extract_strided_slice %302 {offsets = [6, 3, 0], sizes = [1, 1, 8], strides = [1, 1, 1]} : vector<8x4x8xf32> to vector<1x1x8xf32>
    %577 = vector.shape_cast %576 : vector<1x1x8xf32> to vector<1x8xf32>
    %578 = vector.broadcast %577 : vector<1x8xf32> to vector<8x8xf32>
    %579 = arith.mulf %575, %578 : vector<8x8xf32>
    %580 = arith.addf %571, %579 : vector<8x8xf32>
    %c7_i32_183 = arith.constant 7 : i32
    %581 = arith.addi %303, %c7_i32_183 : i32
    %582 = arith.index_cast %581 : i32 to index
    %c0_184 = arith.constant 0 : index
    %c0_185 = arith.constant 0 : index
    %583 = vector.load %arg3[%582, %c0_184, %c0_185] : memref<48x8x8xf32, #tpu.memory_space<vmem>>, vector<1x8x8xf32>
    %584 = vector.shape_cast %583 : vector<1x8x8xf32> to vector<8x8xf32>
    %585 = vector.extract_strided_slice %302 {offsets = [7, 3, 0], sizes = [1, 1, 8], strides = [1, 1, 1]} : vector<8x4x8xf32> to vector<1x1x8xf32>
    %586 = vector.shape_cast %585 : vector<1x1x8xf32> to vector<1x8xf32>
    %587 = vector.broadcast %586 : vector<1x8xf32> to vector<8x8xf32>
    %588 = arith.mulf %584, %587 : vector<8x8xf32>
    %589 = arith.addf %580, %588 : vector<8x8xf32>
    %590 = arith.mulf %589, %589 : vector<8x8xf32>
    %591 = arith.addf %519, %590 : vector<8x8xf32>
    %c2_i32_186 = arith.constant 2 : i32
    %592 = arith.index_cast %c2_i32_186 : i32 to index
    %c0_187 = arith.constant 0 : index
    %c0_188 = arith.constant 0 : index
    %c0_189 = arith.constant 0 : index
    %593 = vector.load %arg4[%592, %c0_187, %c0_188, %c0_189] : memref<6x8x4x8xf32, #tpu.memory_space<vmem>>, vector<1x8x4x8xf32>
    %594 = vector.shape_cast %593 : vector<1x8x4x8xf32> to vector<8x4x8xf32>
    %595 = vector.shape_cast %0 : vector<4x8xf32> to vector<1x4x8xf32>
    %596 = vector.broadcast %595 : vector<1x4x8xf32> to vector<8x4x8xf32>
    %597 = arith.mulf %594, %596 : vector<8x4x8xf32>
    %c8_i32_190 = arith.constant 8 : i32
    %598 = arith.muli %c2_i32_186, %c8_i32_190 : i32
    %599 = arith.index_cast %598 : i32 to index
    %c0_191 = arith.constant 0 : index
    %c0_192 = arith.constant 0 : index
    %600 = vector.load %arg3[%599, %c0_191, %c0_192] : memref<48x8x8xf32, #tpu.memory_space<vmem>>, vector<1x8x8xf32>
    %601 = vector.shape_cast %600 : vector<1x8x8xf32> to vector<8x8xf32>
    %602 = vector.extract_strided_slice %597 {offsets = [0, 0, 0], sizes = [1, 1, 8], strides = [1, 1, 1]} : vector<8x4x8xf32> to vector<1x1x8xf32>
    %603 = vector.shape_cast %602 : vector<1x1x8xf32> to vector<1x8xf32>
    %604 = vector.broadcast %603 : vector<1x8xf32> to vector<8x8xf32>
    %605 = arith.mulf %601, %604 : vector<8x8xf32>
    %c1_i32_193 = arith.constant 1 : i32
    %606 = arith.addi %598, %c1_i32_193 : i32
    %607 = arith.index_cast %606 : i32 to index
    %c0_194 = arith.constant 0 : index
    %c0_195 = arith.constant 0 : index
    %608 = vector.load %arg3[%607, %c0_194, %c0_195] : memref<48x8x8xf32, #tpu.memory_space<vmem>>, vector<1x8x8xf32>
    %609 = vector.shape_cast %608 : vector<1x8x8xf32> to vector<8x8xf32>
    %610 = vector.extract_strided_slice %597 {offsets = [1, 0, 0], sizes = [1, 1, 8], strides = [1, 1, 1]} : vector<8x4x8xf32> to vector<1x1x8xf32>
    %611 = vector.shape_cast %610 : vector<1x1x8xf32> to vector<1x8xf32>
    %612 = vector.broadcast %611 : vector<1x8xf32> to vector<8x8xf32>
    %613 = arith.mulf %609, %612 : vector<8x8xf32>
    %614 = arith.addf %605, %613 : vector<8x8xf32>
    %c2_i32_196 = arith.constant 2 : i32
    %615 = arith.addi %598, %c2_i32_196 : i32
    %616 = arith.index_cast %615 : i32 to index
    %c0_197 = arith.constant 0 : index
    %c0_198 = arith.constant 0 : index
    %617 = vector.load %arg3[%616, %c0_197, %c0_198] : memref<48x8x8xf32, #tpu.memory_space<vmem>>, vector<1x8x8xf32>
    %618 = vector.shape_cast %617 : vector<1x8x8xf32> to vector<8x8xf32>
    %619 = vector.extract_strided_slice %597 {offsets = [2, 0, 0], sizes = [1, 1, 8], strides = [1, 1, 1]} : vector<8x4x8xf32> to vector<1x1x8xf32>
    %620 = vector.shape_cast %619 : vector<1x1x8xf32> to vector<1x8xf32>
    %621 = vector.broadcast %620 : vector<1x8xf32> to vector<8x8xf32>
    %622 = arith.mulf %618, %621 : vector<8x8xf32>
    %623 = arith.addf %614, %622 : vector<8x8xf32>
    %c3_i32_199 = arith.constant 3 : i32
    %624 = arith.addi %598, %c3_i32_199 : i32
    %625 = arith.index_cast %624 : i32 to index
    %c0_200 = arith.constant 0 : index
    %c0_201 = arith.constant 0 : index
    %626 = vector.load %arg3[%625, %c0_200, %c0_201] : memref<48x8x8xf32, #tpu.memory_space<vmem>>, vector<1x8x8xf32>
    %627 = vector.shape_cast %626 : vector<1x8x8xf32> to vector<8x8xf32>
    %628 = vector.extract_strided_slice %597 {offsets = [3, 0, 0], sizes = [1, 1, 8], strides = [1, 1, 1]} : vector<8x4x8xf32> to vector<1x1x8xf32>
    %629 = vector.shape_cast %628 : vector<1x1x8xf32> to vector<1x8xf32>
    %630 = vector.broadcast %629 : vector<1x8xf32> to vector<8x8xf32>
    %631 = arith.mulf %627, %630 : vector<8x8xf32>
    %632 = arith.addf %623, %631 : vector<8x8xf32>
    %c4_i32_202 = arith.constant 4 : i32
    %633 = arith.addi %598, %c4_i32_202 : i32
    %634 = arith.index_cast %633 : i32 to index
    %c0_203 = arith.constant 0 : index
    %c0_204 = arith.constant 0 : index
    %635 = vector.load %arg3[%634, %c0_203, %c0_204] : memref<48x8x8xf32, #tpu.memory_space<vmem>>, vector<1x8x8xf32>
    %636 = vector.shape_cast %635 : vector<1x8x8xf32> to vector<8x8xf32>
    %637 = vector.extract_strided_slice %597 {offsets = [4, 0, 0], sizes = [1, 1, 8], strides = [1, 1, 1]} : vector<8x4x8xf32> to vector<1x1x8xf32>
    %638 = vector.shape_cast %637 : vector<1x1x8xf32> to vector<1x8xf32>
    %639 = vector.broadcast %638 : vector<1x8xf32> to vector<8x8xf32>
    %640 = arith.mulf %636, %639 : vector<8x8xf32>
    %641 = arith.addf %632, %640 : vector<8x8xf32>
    %c5_i32_205 = arith.constant 5 : i32
    %642 = arith.addi %598, %c5_i32_205 : i32
    %643 = arith.index_cast %642 : i32 to index
    %c0_206 = arith.constant 0 : index
    %c0_207 = arith.constant 0 : index
    %644 = vector.load %arg3[%643, %c0_206, %c0_207] : memref<48x8x8xf32, #tpu.memory_space<vmem>>, vector<1x8x8xf32>
    %645 = vector.shape_cast %644 : vector<1x8x8xf32> to vector<8x8xf32>
    %646 = vector.extract_strided_slice %597 {offsets = [5, 0, 0], sizes = [1, 1, 8], strides = [1, 1, 1]} : vector<8x4x8xf32> to vector<1x1x8xf32>
    %647 = vector.shape_cast %646 : vector<1x1x8xf32> to vector<1x8xf32>
    %648 = vector.broadcast %647 : vector<1x8xf32> to vector<8x8xf32>
    %649 = arith.mulf %645, %648 : vector<8x8xf32>
    %650 = arith.addf %641, %649 : vector<8x8xf32>
    %c6_i32_208 = arith.constant 6 : i32
    %651 = arith.addi %598, %c6_i32_208 : i32
    %652 = arith.index_cast %651 : i32 to index
    %c0_209 = arith.constant 0 : index
    %c0_210 = arith.constant 0 : index
    %653 = vector.load %arg3[%652, %c0_209, %c0_210] : memref<48x8x8xf32, #tpu.memory_space<vmem>>, vector<1x8x8xf32>
    %654 = vector.shape_cast %653 : vector<1x8x8xf32> to vector<8x8xf32>
    %655 = vector.extract_strided_slice %597 {offsets = [6, 0, 0], sizes = [1, 1, 8], strides = [1, 1, 1]} : vector<8x4x8xf32> to vector<1x1x8xf32>
    %656 = vector.shape_cast %655 : vector<1x1x8xf32> to vector<1x8xf32>
    %657 = vector.broadcast %656 : vector<1x8xf32> to vector<8x8xf32>
    %658 = arith.mulf %654, %657 : vector<8x8xf32>
    %659 = arith.addf %650, %658 : vector<8x8xf32>
    %c7_i32_211 = arith.constant 7 : i32
    %660 = arith.addi %598, %c7_i32_211 : i32
    %661 = arith.index_cast %660 : i32 to index
    %c0_212 = arith.constant 0 : index
    %c0_213 = arith.constant 0 : index
    %662 = vector.load %arg3[%661, %c0_212, %c0_213] : memref<48x8x8xf32, #tpu.memory_space<vmem>>, vector<1x8x8xf32>
    %663 = vector.shape_cast %662 : vector<1x8x8xf32> to vector<8x8xf32>
    %664 = vector.extract_strided_slice %597 {offsets = [7, 0, 0], sizes = [1, 1, 8], strides = [1, 1, 1]} : vector<8x4x8xf32> to vector<1x1x8xf32>
    %665 = vector.shape_cast %664 : vector<1x1x8xf32> to vector<1x8xf32>
    %666 = vector.broadcast %665 : vector<1x8xf32> to vector<8x8xf32>
    %667 = arith.mulf %663, %666 : vector<8x8xf32>
    %668 = arith.addf %659, %667 : vector<8x8xf32>
    %669 = arith.mulf %668, %668 : vector<8x8xf32>
    %670 = arith.addf %591, %669 : vector<8x8xf32>
    %671 = arith.index_cast %598 : i32 to index
    %c0_214 = arith.constant 0 : index
    %c0_215 = arith.constant 0 : index
    %672 = vector.load %arg3[%671, %c0_214, %c0_215] : memref<48x8x8xf32, #tpu.memory_space<vmem>>, vector<1x8x8xf32>
    %673 = vector.shape_cast %672 : vector<1x8x8xf32> to vector<8x8xf32>
    %674 = vector.extract_strided_slice %597 {offsets = [0, 1, 0], sizes = [1, 1, 8], strides = [1, 1, 1]} : vector<8x4x8xf32> to vector<1x1x8xf32>
    %675 = vector.shape_cast %674 : vector<1x1x8xf32> to vector<1x8xf32>
    %676 = vector.broadcast %675 : vector<1x8xf32> to vector<8x8xf32>
    %677 = arith.mulf %673, %676 : vector<8x8xf32>
    %c1_i32_216 = arith.constant 1 : i32
    %678 = arith.addi %598, %c1_i32_216 : i32
    %679 = arith.index_cast %678 : i32 to index
    %c0_217 = arith.constant 0 : index
    %c0_218 = arith.constant 0 : index
    %680 = vector.load %arg3[%679, %c0_217, %c0_218] : memref<48x8x8xf32, #tpu.memory_space<vmem>>, vector<1x8x8xf32>
    %681 = vector.shape_cast %680 : vector<1x8x8xf32> to vector<8x8xf32>
    %682 = vector.extract_strided_slice %597 {offsets = [1, 1, 0], sizes = [1, 1, 8], strides = [1, 1, 1]} : vector<8x4x8xf32> to vector<1x1x8xf32>
    %683 = vector.shape_cast %682 : vector<1x1x8xf32> to vector<1x8xf32>
    %684 = vector.broadcast %683 : vector<1x8xf32> to vector<8x8xf32>
    %685 = arith.mulf %681, %684 : vector<8x8xf32>
    %686 = arith.addf %677, %685 : vector<8x8xf32>
    %c2_i32_219 = arith.constant 2 : i32
    %687 = arith.addi %598, %c2_i32_219 : i32
    %688 = arith.index_cast %687 : i32 to index
    %c0_220 = arith.constant 0 : index
    %c0_221 = arith.constant 0 : index
    %689 = vector.load %arg3[%688, %c0_220, %c0_221] : memref<48x8x8xf32, #tpu.memory_space<vmem>>, vector<1x8x8xf32>
    %690 = vector.shape_cast %689 : vector<1x8x8xf32> to vector<8x8xf32>
    %691 = vector.extract_strided_slice %597 {offsets = [2, 1, 0], sizes = [1, 1, 8], strides = [1, 1, 1]} : vector<8x4x8xf32> to vector<1x1x8xf32>
    %692 = vector.shape_cast %691 : vector<1x1x8xf32> to vector<1x8xf32>
    %693 = vector.broadcast %692 : vector<1x8xf32> to vector<8x8xf32>
    %694 = arith.mulf %690, %693 : vector<8x8xf32>
    %695 = arith.addf %686, %694 : vector<8x8xf32>
    %c3_i32_222 = arith.constant 3 : i32
    %696 = arith.addi %598, %c3_i32_222 : i32
    %697 = arith.index_cast %696 : i32 to index
    %c0_223 = arith.constant 0 : index
    %c0_224 = arith.constant 0 : index
    %698 = vector.load %arg3[%697, %c0_223, %c0_224] : memref<48x8x8xf32, #tpu.memory_space<vmem>>, vector<1x8x8xf32>
    %699 = vector.shape_cast %698 : vector<1x8x8xf32> to vector<8x8xf32>
    %700 = vector.extract_strided_slice %597 {offsets = [3, 1, 0], sizes = [1, 1, 8], strides = [1, 1, 1]} : vector<8x4x8xf32> to vector<1x1x8xf32>
    %701 = vector.shape_cast %700 : vector<1x1x8xf32> to vector<1x8xf32>
    %702 = vector.broadcast %701 : vector<1x8xf32> to vector<8x8xf32>
    %703 = arith.mulf %699, %702 : vector<8x8xf32>
    %704 = arith.addf %695, %703 : vector<8x8xf32>
    %c4_i32_225 = arith.constant 4 : i32
    %705 = arith.addi %598, %c4_i32_225 : i32
    %706 = arith.index_cast %705 : i32 to index
    %c0_226 = arith.constant 0 : index
    %c0_227 = arith.constant 0 : index
    %707 = vector.load %arg3[%706, %c0_226, %c0_227] : memref<48x8x8xf32, #tpu.memory_space<vmem>>, vector<1x8x8xf32>
    %708 = vector.shape_cast %707 : vector<1x8x8xf32> to vector<8x8xf32>
    %709 = vector.extract_strided_slice %597 {offsets = [4, 1, 0], sizes = [1, 1, 8], strides = [1, 1, 1]} : vector<8x4x8xf32> to vector<1x1x8xf32>
    %710 = vector.shape_cast %709 : vector<1x1x8xf32> to vector<1x8xf32>
    %711 = vector.broadcast %710 : vector<1x8xf32> to vector<8x8xf32>
    %712 = arith.mulf %708, %711 : vector<8x8xf32>
    %713 = arith.addf %704, %712 : vector<8x8xf32>
    %c5_i32_228 = arith.constant 5 : i32
    %714 = arith.addi %598, %c5_i32_228 : i32
    %715 = arith.index_cast %714 : i32 to index
    %c0_229 = arith.constant 0 : index
    %c0_230 = arith.constant 0 : index
    %716 = vector.load %arg3[%715, %c0_229, %c0_230] : memref<48x8x8xf32, #tpu.memory_space<vmem>>, vector<1x8x8xf32>
    %717 = vector.shape_cast %716 : vector<1x8x8xf32> to vector<8x8xf32>
    %718 = vector.extract_strided_slice %597 {offsets = [5, 1, 0], sizes = [1, 1, 8], strides = [1, 1, 1]} : vector<8x4x8xf32> to vector<1x1x8xf32>
    %719 = vector.shape_cast %718 : vector<1x1x8xf32> to vector<1x8xf32>
    %720 = vector.broadcast %719 : vector<1x8xf32> to vector<8x8xf32>
    %721 = arith.mulf %717, %720 : vector<8x8xf32>
    %722 = arith.addf %713, %721 : vector<8x8xf32>
    %c6_i32_231 = arith.constant 6 : i32
    %723 = arith.addi %598, %c6_i32_231 : i32
    %724 = arith.index_cast %723 : i32 to index
    %c0_232 = arith.constant 0 : index
    %c0_233 = arith.constant 0 : index
    %725 = vector.load %arg3[%724, %c0_232, %c0_233] : memref<48x8x8xf32, #tpu.memory_space<vmem>>, vector<1x8x8xf32>
    %726 = vector.shape_cast %725 : vector<1x8x8xf32> to vector<8x8xf32>
    %727 = vector.extract_strided_slice %597 {offsets = [6, 1, 0], sizes = [1, 1, 8], strides = [1, 1, 1]} : vector<8x4x8xf32> to vector<1x1x8xf32>
    %728 = vector.shape_cast %727 : vector<1x1x8xf32> to vector<1x8xf32>
    %729 = vector.broadcast %728 : vector<1x8xf32> to vector<8x8xf32>
    %730 = arith.mulf %726, %729 : vector<8x8xf32>
    %731 = arith.addf %722, %730 : vector<8x8xf32>
    %c7_i32_234 = arith.constant 7 : i32
    %732 = arith.addi %598, %c7_i32_234 : i32
    %733 = arith.index_cast %732 : i32 to index
    %c0_235 = arith.constant 0 : index
    %c0_236 = arith.constant 0 : index
    %734 = vector.load %arg3[%733, %c0_235, %c0_236] : memref<48x8x8xf32, #tpu.memory_space<vmem>>, vector<1x8x8xf32>
    %735 = vector.shape_cast %734 : vector<1x8x8xf32> to vector<8x8xf32>
    %736 = vector.extract_strided_slice %597 {offsets = [7, 1, 0], sizes = [1, 1, 8], strides = [1, 1, 1]} : vector<8x4x8xf32> to vector<1x1x8xf32>
    %737 = vector.shape_cast %736 : vector<1x1x8xf32> to vector<1x8xf32>
    %738 = vector.broadcast %737 : vector<1x8xf32> to vector<8x8xf32>
    %739 = arith.mulf %735, %738 : vector<8x8xf32>
    %740 = arith.addf %731, %739 : vector<8x8xf32>
    %741 = arith.mulf %740, %740 : vector<8x8xf32>
    %742 = arith.addf %670, %741 : vector<8x8xf32>
    %743 = arith.index_cast %598 : i32 to index
    %c0_237 = arith.constant 0 : index
    %c0_238 = arith.constant 0 : index
    %744 = vector.load %arg3[%743, %c0_237, %c0_238] : memref<48x8x8xf32, #tpu.memory_space<vmem>>, vector<1x8x8xf32>
    %745 = vector.shape_cast %744 : vector<1x8x8xf32> to vector<8x8xf32>
    %746 = vector.extract_strided_slice %597 {offsets = [0, 2, 0], sizes = [1, 1, 8], strides = [1, 1, 1]} : vector<8x4x8xf32> to vector<1x1x8xf32>
    %747 = vector.shape_cast %746 : vector<1x1x8xf32> to vector<1x8xf32>
    %748 = vector.broadcast %747 : vector<1x8xf32> to vector<8x8xf32>
    %749 = arith.mulf %745, %748 : vector<8x8xf32>
    %c1_i32_239 = arith.constant 1 : i32
    %750 = arith.addi %598, %c1_i32_239 : i32
    %751 = arith.index_cast %750 : i32 to index
    %c0_240 = arith.constant 0 : index
    %c0_241 = arith.constant 0 : index
    %752 = vector.load %arg3[%751, %c0_240, %c0_241] : memref<48x8x8xf32, #tpu.memory_space<vmem>>, vector<1x8x8xf32>
    %753 = vector.shape_cast %752 : vector<1x8x8xf32> to vector<8x8xf32>
    %754 = vector.extract_strided_slice %597 {offsets = [1, 2, 0], sizes = [1, 1, 8], strides = [1, 1, 1]} : vector<8x4x8xf32> to vector<1x1x8xf32>
    %755 = vector.shape_cast %754 : vector<1x1x8xf32> to vector<1x8xf32>
    %756 = vector.broadcast %755 : vector<1x8xf32> to vector<8x8xf32>
    %757 = arith.mulf %753, %756 : vector<8x8xf32>
    %758 = arith.addf %749, %757 : vector<8x8xf32>
    %c2_i32_242 = arith.constant 2 : i32
    %759 = arith.addi %598, %c2_i32_242 : i32
    %760 = arith.index_cast %759 : i32 to index
    %c0_243 = arith.constant 0 : index
    %c0_244 = arith.constant 0 : index
    %761 = vector.load %arg3[%760, %c0_243, %c0_244] : memref<48x8x8xf32, #tpu.memory_space<vmem>>, vector<1x8x8xf32>
    %762 = vector.shape_cast %761 : vector<1x8x8xf32> to vector<8x8xf32>
    %763 = vector.extract_strided_slice %597 {offsets = [2, 2, 0], sizes = [1, 1, 8], strides = [1, 1, 1]} : vector<8x4x8xf32> to vector<1x1x8xf32>
    %764 = vector.shape_cast %763 : vector<1x1x8xf32> to vector<1x8xf32>
    %765 = vector.broadcast %764 : vector<1x8xf32> to vector<8x8xf32>
    %766 = arith.mulf %762, %765 : vector<8x8xf32>
    %767 = arith.addf %758, %766 : vector<8x8xf32>
    %c3_i32_245 = arith.constant 3 : i32
    %768 = arith.addi %598, %c3_i32_245 : i32
    %769 = arith.index_cast %768 : i32 to index
    %c0_246 = arith.constant 0 : index
    %c0_247 = arith.constant 0 : index
    %770 = vector.load %arg3[%769, %c0_246, %c0_247] : memref<48x8x8xf32, #tpu.memory_space<vmem>>, vector<1x8x8xf32>
    %771 = vector.shape_cast %770 : vector<1x8x8xf32> to vector<8x8xf32>
    %772 = vector.extract_strided_slice %597 {offsets = [3, 2, 0], sizes = [1, 1, 8], strides = [1, 1, 1]} : vector<8x4x8xf32> to vector<1x1x8xf32>
    %773 = vector.shape_cast %772 : vector<1x1x8xf32> to vector<1x8xf32>
    %774 = vector.broadcast %773 : vector<1x8xf32> to vector<8x8xf32>
    %775 = arith.mulf %771, %774 : vector<8x8xf32>
    %776 = arith.addf %767, %775 : vector<8x8xf32>
    %c4_i32_248 = arith.constant 4 : i32
    %777 = arith.addi %598, %c4_i32_248 : i32
    %778 = arith.index_cast %777 : i32 to index
    %c0_249 = arith.constant 0 : index
    %c0_250 = arith.constant 0 : index
    %779 = vector.load %arg3[%778, %c0_249, %c0_250] : memref<48x8x8xf32, #tpu.memory_space<vmem>>, vector<1x8x8xf32>
    %780 = vector.shape_cast %779 : vector<1x8x8xf32> to vector<8x8xf32>
    %781 = vector.extract_strided_slice %597 {offsets = [4, 2, 0], sizes = [1, 1, 8], strides = [1, 1, 1]} : vector<8x4x8xf32> to vector<1x1x8xf32>
    %782 = vector.shape_cast %781 : vector<1x1x8xf32> to vector<1x8xf32>
    %783 = vector.broadcast %782 : vector<1x8xf32> to vector<8x8xf32>
    %784 = arith.mulf %780, %783 : vector<8x8xf32>
    %785 = arith.addf %776, %784 : vector<8x8xf32>
    %c5_i32_251 = arith.constant 5 : i32
    %786 = arith.addi %598, %c5_i32_251 : i32
    %787 = arith.index_cast %786 : i32 to index
    %c0_252 = arith.constant 0 : index
    %c0_253 = arith.constant 0 : index
    %788 = vector.load %arg3[%787, %c0_252, %c0_253] : memref<48x8x8xf32, #tpu.memory_space<vmem>>, vector<1x8x8xf32>
    %789 = vector.shape_cast %788 : vector<1x8x8xf32> to vector<8x8xf32>
    %790 = vector.extract_strided_slice %597 {offsets = [5, 2, 0], sizes = [1, 1, 8], strides = [1, 1, 1]} : vector<8x4x8xf32> to vector<1x1x8xf32>
    %791 = vector.shape_cast %790 : vector<1x1x8xf32> to vector<1x8xf32>
    %792 = vector.broadcast %791 : vector<1x8xf32> to vector<8x8xf32>
    %793 = arith.mulf %789, %792 : vector<8x8xf32>
    %794 = arith.addf %785, %793 : vector<8x8xf32>
    %c6_i32_254 = arith.constant 6 : i32
    %795 = arith.addi %598, %c6_i32_254 : i32
    %796 = arith.index_cast %795 : i32 to index
    %c0_255 = arith.constant 0 : index
    %c0_256 = arith.constant 0 : index
    %797 = vector.load %arg3[%796, %c0_255, %c0_256] : memref<48x8x8xf32, #tpu.memory_space<vmem>>, vector<1x8x8xf32>
    %798 = vector.shape_cast %797 : vector<1x8x8xf32> to vector<8x8xf32>
    %799 = vector.extract_strided_slice %597 {offsets = [6, 2, 0], sizes = [1, 1, 8], strides = [1, 1, 1]} : vector<8x4x8xf32> to vector<1x1x8xf32>
    %800 = vector.shape_cast %799 : vector<1x1x8xf32> to vector<1x8xf32>
    %801 = vector.broadcast %800 : vector<1x8xf32> to vector<8x8xf32>
    %802 = arith.mulf %798, %801 : vector<8x8xf32>
    %803 = arith.addf %794, %802 : vector<8x8xf32>
    %c7_i32_257 = arith.constant 7 : i32
    %804 = arith.addi %598, %c7_i32_257 : i32
    %805 = arith.index_cast %804 : i32 to index
    %c0_258 = arith.constant 0 : index
    %c0_259 = arith.constant 0 : index
    %806 = vector.load %arg3[%805, %c0_258, %c0_259] : memref<48x8x8xf32, #tpu.memory_space<vmem>>, vector<1x8x8xf32>
    %807 = vector.shape_cast %806 : vector<1x8x8xf32> to vector<8x8xf32>
    %808 = vector.extract_strided_slice %597 {offsets = [7, 2, 0], sizes = [1, 1, 8], strides = [1, 1, 1]} : vector<8x4x8xf32> to vector<1x1x8xf32>
    %809 = vector.shape_cast %808 : vector<1x1x8xf32> to vector<1x8xf32>
    %810 = vector.broadcast %809 : vector<1x8xf32> to vector<8x8xf32>
    %811 = arith.mulf %807, %810 : vector<8x8xf32>
    %812 = arith.addf %803, %811 : vector<8x8xf32>
    %813 = arith.mulf %812, %812 : vector<8x8xf32>
    %814 = arith.addf %742, %813 : vector<8x8xf32>
    %815 = arith.index_cast %598 : i32 to index
    %c0_260 = arith.constant 0 : index
    %c0_261 = arith.constant 0 : index
    %816 = vector.load %arg3[%815, %c0_260, %c0_261] : memref<48x8x8xf32, #tpu.memory_space<vmem>>, vector<1x8x8xf32>
    %817 = vector.shape_cast %816 : vector<1x8x8xf32> to vector<8x8xf32>
    %818 = vector.extract_strided_slice %597 {offsets = [0, 3, 0], sizes = [1, 1, 8], strides = [1, 1, 1]} : vector<8x4x8xf32> to vector<1x1x8xf32>
    %819 = vector.shape_cast %818 : vector<1x1x8xf32> to vector<1x8xf32>
    %820 = vector.broadcast %819 : vector<1x8xf32> to vector<8x8xf32>
    %821 = arith.mulf %817, %820 : vector<8x8xf32>
    %c1_i32_262 = arith.constant 1 : i32
    %822 = arith.addi %598, %c1_i32_262 : i32
    %823 = arith.index_cast %822 : i32 to index
    %c0_263 = arith.constant 0 : index
    %c0_264 = arith.constant 0 : index
    %824 = vector.load %arg3[%823, %c0_263, %c0_264] : memref<48x8x8xf32, #tpu.memory_space<vmem>>, vector<1x8x8xf32>
    %825 = vector.shape_cast %824 : vector<1x8x8xf32> to vector<8x8xf32>
    %826 = vector.extract_strided_slice %597 {offsets = [1, 3, 0], sizes = [1, 1, 8], strides = [1, 1, 1]} : vector<8x4x8xf32> to vector<1x1x8xf32>
    %827 = vector.shape_cast %826 : vector<1x1x8xf32> to vector<1x8xf32>
    %828 = vector.broadcast %827 : vector<1x8xf32> to vector<8x8xf32>
    %829 = arith.mulf %825, %828 : vector<8x8xf32>
    %830 = arith.addf %821, %829 : vector<8x8xf32>
    %c2_i32_265 = arith.constant 2 : i32
    %831 = arith.addi %598, %c2_i32_265 : i32
    %832 = arith.index_cast %831 : i32 to index
    %c0_266 = arith.constant 0 : index
    %c0_267 = arith.constant 0 : index
    %833 = vector.load %arg3[%832, %c0_266, %c0_267] : memref<48x8x8xf32, #tpu.memory_space<vmem>>, vector<1x8x8xf32>
    %834 = vector.shape_cast %833 : vector<1x8x8xf32> to vector<8x8xf32>
    %835 = vector.extract_strided_slice %597 {offsets = [2, 3, 0], sizes = [1, 1, 8], strides = [1, 1, 1]} : vector<8x4x8xf32> to vector<1x1x8xf32>
    %836 = vector.shape_cast %835 : vector<1x1x8xf32> to vector<1x8xf32>
    %837 = vector.broadcast %836 : vector<1x8xf32> to vector<8x8xf32>
    %838 = arith.mulf %834, %837 : vector<8x8xf32>
    %839 = arith.addf %830, %838 : vector<8x8xf32>
    %c3_i32_268 = arith.constant 3 : i32
    %840 = arith.addi %598, %c3_i32_268 : i32
    %841 = arith.index_cast %840 : i32 to index
    %c0_269 = arith.constant 0 : index
    %c0_270 = arith.constant 0 : index
    %842 = vector.load %arg3[%841, %c0_269, %c0_270] : memref<48x8x8xf32, #tpu.memory_space<vmem>>, vector<1x8x8xf32>
    %843 = vector.shape_cast %842 : vector<1x8x8xf32> to vector<8x8xf32>
    %844 = vector.extract_strided_slice %597 {offsets = [3, 3, 0], sizes = [1, 1, 8], strides = [1, 1, 1]} : vector<8x4x8xf32> to vector<1x1x8xf32>
    %845 = vector.shape_cast %844 : vector<1x1x8xf32> to vector<1x8xf32>
    %846 = vector.broadcast %845 : vector<1x8xf32> to vector<8x8xf32>
    %847 = arith.mulf %843, %846 : vector<8x8xf32>
    %848 = arith.addf %839, %847 : vector<8x8xf32>
    %c4_i32_271 = arith.constant 4 : i32
    %849 = arith.addi %598, %c4_i32_271 : i32
    %850 = arith.index_cast %849 : i32 to index
    %c0_272 = arith.constant 0 : index
    %c0_273 = arith.constant 0 : index
    %851 = vector.load %arg3[%850, %c0_272, %c0_273] : memref<48x8x8xf32, #tpu.memory_space<vmem>>, vector<1x8x8xf32>
    %852 = vector.shape_cast %851 : vector<1x8x8xf32> to vector<8x8xf32>
    %853 = vector.extract_strided_slice %597 {offsets = [4, 3, 0], sizes = [1, 1, 8], strides = [1, 1, 1]} : vector<8x4x8xf32> to vector<1x1x8xf32>
    %854 = vector.shape_cast %853 : vector<1x1x8xf32> to vector<1x8xf32>
    %855 = vector.broadcast %854 : vector<1x8xf32> to vector<8x8xf32>
    %856 = arith.mulf %852, %855 : vector<8x8xf32>
    %857 = arith.addf %848, %856 : vector<8x8xf32>
    %c5_i32_274 = arith.constant 5 : i32
    %858 = arith.addi %598, %c5_i32_274 : i32
    %859 = arith.index_cast %858 : i32 to index
    %c0_275 = arith.constant 0 : index
    %c0_276 = arith.constant 0 : index
    %860 = vector.load %arg3[%859, %c0_275, %c0_276] : memref<48x8x8xf32, #tpu.memory_space<vmem>>, vector<1x8x8xf32>
    %861 = vector.shape_cast %860 : vector<1x8x8xf32> to vector<8x8xf32>
    %862 = vector.extract_strided_slice %597 {offsets = [5, 3, 0], sizes = [1, 1, 8], strides = [1, 1, 1]} : vector<8x4x8xf32> to vector<1x1x8xf32>
    %863 = vector.shape_cast %862 : vector<1x1x8xf32> to vector<1x8xf32>
    %864 = vector.broadcast %863 : vector<1x8xf32> to vector<8x8xf32>
    %865 = arith.mulf %861, %864 : vector<8x8xf32>
    %866 = arith.addf %857, %865 : vector<8x8xf32>
    %c6_i32_277 = arith.constant 6 : i32
    %867 = arith.addi %598, %c6_i32_277 : i32
    %868 = arith.index_cast %867 : i32 to index
    %c0_278 = arith.constant 0 : index
    %c0_279 = arith.constant 0 : index
    %869 = vector.load %arg3[%868, %c0_278, %c0_279] : memref<48x8x8xf32, #tpu.memory_space<vmem>>, vector<1x8x8xf32>
    %870 = vector.shape_cast %869 : vector<1x8x8xf32> to vector<8x8xf32>
    %871 = vector.extract_strided_slice %597 {offsets = [6, 3, 0], sizes = [1, 1, 8], strides = [1, 1, 1]} : vector<8x4x8xf32> to vector<1x1x8xf32>
    %872 = vector.shape_cast %871 : vector<1x1x8xf32> to vector<1x8xf32>
    %873 = vector.broadcast %872 : vector<1x8xf32> to vector<8x8xf32>
    %874 = arith.mulf %870, %873 : vector<8x8xf32>
    %875 = arith.addf %866, %874 : vector<8x8xf32>
    %c7_i32_280 = arith.constant 7 : i32
    %876 = arith.addi %598, %c7_i32_280 : i32
    %877 = arith.index_cast %876 : i32 to index
    %c0_281 = arith.constant 0 : index
    %c0_282 = arith.constant 0 : index
    %878 = vector.load %arg3[%877, %c0_281, %c0_282] : memref<48x8x8xf32, #tpu.memory_space<vmem>>, vector<1x8x8xf32>
    %879 = vector.shape_cast %878 : vector<1x8x8xf32> to vector<8x8xf32>
    %880 = vector.extract_strided_slice %597 {offsets = [7, 3, 0], sizes = [1, 1, 8], strides = [1, 1, 1]} : vector<8x4x8xf32> to vector<1x1x8xf32>
    %881 = vector.shape_cast %880 : vector<1x1x8xf32> to vector<1x8xf32>
    %882 = vector.broadcast %881 : vector<1x8xf32> to vector<8x8xf32>
    %883 = arith.mulf %879, %882 : vector<8x8xf32>
    %884 = arith.addf %875, %883 : vector<8x8xf32>
    %885 = arith.mulf %884, %884 : vector<8x8xf32>
    %886 = arith.addf %814, %885 : vector<8x8xf32>
    %c3_i32_283 = arith.constant 3 : i32
    %887 = arith.index_cast %c3_i32_283 : i32 to index
    %c0_284 = arith.constant 0 : index
    %c0_285 = arith.constant 0 : index
    %c0_286 = arith.constant 0 : index
    %888 = vector.load %arg4[%887, %c0_284, %c0_285, %c0_286] : memref<6x8x4x8xf32, #tpu.memory_space<vmem>>, vector<1x8x4x8xf32>
    %889 = vector.shape_cast %888 : vector<1x8x4x8xf32> to vector<8x4x8xf32>
    %890 = vector.shape_cast %0 : vector<4x8xf32> to vector<1x4x8xf32>
    %891 = vector.broadcast %890 : vector<1x4x8xf32> to vector<8x4x8xf32>
    %892 = arith.mulf %889, %891 : vector<8x4x8xf32>
    %c8_i32_287 = arith.constant 8 : i32
    %893 = arith.muli %c3_i32_283, %c8_i32_287 : i32
    %894 = arith.index_cast %893 : i32 to index
    %c0_288 = arith.constant 0 : index
    %c0_289 = arith.constant 0 : index
    %895 = vector.load %arg3[%894, %c0_288, %c0_289] : memref<48x8x8xf32, #tpu.memory_space<vmem>>, vector<1x8x8xf32>
    %896 = vector.shape_cast %895 : vector<1x8x8xf32> to vector<8x8xf32>
    %897 = vector.extract_strided_slice %892 {offsets = [0, 0, 0], sizes = [1, 1, 8], strides = [1, 1, 1]} : vector<8x4x8xf32> to vector<1x1x8xf32>
    %898 = vector.shape_cast %897 : vector<1x1x8xf32> to vector<1x8xf32>
    %899 = vector.broadcast %898 : vector<1x8xf32> to vector<8x8xf32>
    %900 = arith.mulf %896, %899 : vector<8x8xf32>
    %c1_i32_290 = arith.constant 1 : i32
    %901 = arith.addi %893, %c1_i32_290 : i32
    %902 = arith.index_cast %901 : i32 to index
    %c0_291 = arith.constant 0 : index
    %c0_292 = arith.constant 0 : index
    %903 = vector.load %arg3[%902, %c0_291, %c0_292] : memref<48x8x8xf32, #tpu.memory_space<vmem>>, vector<1x8x8xf32>
    %904 = vector.shape_cast %903 : vector<1x8x8xf32> to vector<8x8xf32>
    %905 = vector.extract_strided_slice %892 {offsets = [1, 0, 0], sizes = [1, 1, 8], strides = [1, 1, 1]} : vector<8x4x8xf32> to vector<1x1x8xf32>
    %906 = vector.shape_cast %905 : vector<1x1x8xf32> to vector<1x8xf32>
    %907 = vector.broadcast %906 : vector<1x8xf32> to vector<8x8xf32>
    %908 = arith.mulf %904, %907 : vector<8x8xf32>
    %909 = arith.addf %900, %908 : vector<8x8xf32>
    %c2_i32_293 = arith.constant 2 : i32
    %910 = arith.addi %893, %c2_i32_293 : i32
    %911 = arith.index_cast %910 : i32 to index
    %c0_294 = arith.constant 0 : index
    %c0_295 = arith.constant 0 : index
    %912 = vector.load %arg3[%911, %c0_294, %c0_295] : memref<48x8x8xf32, #tpu.memory_space<vmem>>, vector<1x8x8xf32>
    %913 = vector.shape_cast %912 : vector<1x8x8xf32> to vector<8x8xf32>
    %914 = vector.extract_strided_slice %892 {offsets = [2, 0, 0], sizes = [1, 1, 8], strides = [1, 1, 1]} : vector<8x4x8xf32> to vector<1x1x8xf32>
    %915 = vector.shape_cast %914 : vector<1x1x8xf32> to vector<1x8xf32>
    %916 = vector.broadcast %915 : vector<1x8xf32> to vector<8x8xf32>
    %917 = arith.mulf %913, %916 : vector<8x8xf32>
    %918 = arith.addf %909, %917 : vector<8x8xf32>
    %c3_i32_296 = arith.constant 3 : i32
    %919 = arith.addi %893, %c3_i32_296 : i32
    %920 = arith.index_cast %919 : i32 to index
    %c0_297 = arith.constant 0 : index
    %c0_298 = arith.constant 0 : index
    %921 = vector.load %arg3[%920, %c0_297, %c0_298] : memref<48x8x8xf32, #tpu.memory_space<vmem>>, vector<1x8x8xf32>
    %922 = vector.shape_cast %921 : vector<1x8x8xf32> to vector<8x8xf32>
    %923 = vector.extract_strided_slice %892 {offsets = [3, 0, 0], sizes = [1, 1, 8], strides = [1, 1, 1]} : vector<8x4x8xf32> to vector<1x1x8xf32>
    %924 = vector.shape_cast %923 : vector<1x1x8xf32> to vector<1x8xf32>
    %925 = vector.broadcast %924 : vector<1x8xf32> to vector<8x8xf32>
    %926 = arith.mulf %922, %925 : vector<8x8xf32>
    %927 = arith.addf %918, %926 : vector<8x8xf32>
    %c4_i32_299 = arith.constant 4 : i32
    %928 = arith.addi %893, %c4_i32_299 : i32
    %929 = arith.index_cast %928 : i32 to index
    %c0_300 = arith.constant 0 : index
    %c0_301 = arith.constant 0 : index
    %930 = vector.load %arg3[%929, %c0_300, %c0_301] : memref<48x8x8xf32, #tpu.memory_space<vmem>>, vector<1x8x8xf32>
    %931 = vector.shape_cast %930 : vector<1x8x8xf32> to vector<8x8xf32>
    %932 = vector.extract_strided_slice %892 {offsets = [4, 0, 0], sizes = [1, 1, 8], strides = [1, 1, 1]} : vector<8x4x8xf32> to vector<1x1x8xf32>
    %933 = vector.shape_cast %932 : vector<1x1x8xf32> to vector<1x8xf32>
    %934 = vector.broadcast %933 : vector<1x8xf32> to vector<8x8xf32>
    %935 = arith.mulf %931, %934 : vector<8x8xf32>
    %936 = arith.addf %927, %935 : vector<8x8xf32>
    %c5_i32_302 = arith.constant 5 : i32
    %937 = arith.addi %893, %c5_i32_302 : i32
    %938 = arith.index_cast %937 : i32 to index
    %c0_303 = arith.constant 0 : index
    %c0_304 = arith.constant 0 : index
    %939 = vector.load %arg3[%938, %c0_303, %c0_304] : memref<48x8x8xf32, #tpu.memory_space<vmem>>, vector<1x8x8xf32>
    %940 = vector.shape_cast %939 : vector<1x8x8xf32> to vector<8x8xf32>
    %941 = vector.extract_strided_slice %892 {offsets = [5, 0, 0], sizes = [1, 1, 8], strides = [1, 1, 1]} : vector<8x4x8xf32> to vector<1x1x8xf32>
    %942 = vector.shape_cast %941 : vector<1x1x8xf32> to vector<1x8xf32>
    %943 = vector.broadcast %942 : vector<1x8xf32> to vector<8x8xf32>
    %944 = arith.mulf %940, %943 : vector<8x8xf32>
    %945 = arith.addf %936, %944 : vector<8x8xf32>
    %c6_i32_305 = arith.constant 6 : i32
    %946 = arith.addi %893, %c6_i32_305 : i32
    %947 = arith.index_cast %946 : i32 to index
    %c0_306 = arith.constant 0 : index
    %c0_307 = arith.constant 0 : index
    %948 = vector.load %arg3[%947, %c0_306, %c0_307] : memref<48x8x8xf32, #tpu.memory_space<vmem>>, vector<1x8x8xf32>
    %949 = vector.shape_cast %948 : vector<1x8x8xf32> to vector<8x8xf32>
    %950 = vector.extract_strided_slice %892 {offsets = [6, 0, 0], sizes = [1, 1, 8], strides = [1, 1, 1]} : vector<8x4x8xf32> to vector<1x1x8xf32>
    %951 = vector.shape_cast %950 : vector<1x1x8xf32> to vector<1x8xf32>
    %952 = vector.broadcast %951 : vector<1x8xf32> to vector<8x8xf32>
    %953 = arith.mulf %949, %952 : vector<8x8xf32>
    %954 = arith.addf %945, %953 : vector<8x8xf32>
    %c7_i32_308 = arith.constant 7 : i32
    %955 = arith.addi %893, %c7_i32_308 : i32
    %956 = arith.index_cast %955 : i32 to index
    %c0_309 = arith.constant 0 : index
    %c0_310 = arith.constant 0 : index
    %957 = vector.load %arg3[%956, %c0_309, %c0_310] : memref<48x8x8xf32, #tpu.memory_space<vmem>>, vector<1x8x8xf32>
    %958 = vector.shape_cast %957 : vector<1x8x8xf32> to vector<8x8xf32>
    %959 = vector.extract_strided_slice %892 {offsets = [7, 0, 0], sizes = [1, 1, 8], strides = [1, 1, 1]} : vector<8x4x8xf32> to vector<1x1x8xf32>
    %960 = vector.shape_cast %959 : vector<1x1x8xf32> to vector<1x8xf32>
    %961 = vector.broadcast %960 : vector<1x8xf32> to vector<8x8xf32>
    %962 = arith.mulf %958, %961 : vector<8x8xf32>
    %963 = arith.addf %954, %962 : vector<8x8xf32>
    %964 = arith.mulf %963, %963 : vector<8x8xf32>
    %965 = arith.addf %886, %964 : vector<8x8xf32>
    %966 = arith.index_cast %893 : i32 to index
    %c0_311 = arith.constant 0 : index
    %c0_312 = arith.constant 0 : index
    %967 = vector.load %arg3[%966, %c0_311, %c0_312] : memref<48x8x8xf32, #tpu.memory_space<vmem>>, vector<1x8x8xf32>
    %968 = vector.shape_cast %967 : vector<1x8x8xf32> to vector<8x8xf32>
    %969 = vector.extract_strided_slice %892 {offsets = [0, 1, 0], sizes = [1, 1, 8], strides = [1, 1, 1]} : vector<8x4x8xf32> to vector<1x1x8xf32>
    %970 = vector.shape_cast %969 : vector<1x1x8xf32> to vector<1x8xf32>
    %971 = vector.broadcast %970 : vector<1x8xf32> to vector<8x8xf32>
    %972 = arith.mulf %968, %971 : vector<8x8xf32>
    %c1_i32_313 = arith.constant 1 : i32
    %973 = arith.addi %893, %c1_i32_313 : i32
    %974 = arith.index_cast %973 : i32 to index
    %c0_314 = arith.constant 0 : index
    %c0_315 = arith.constant 0 : index
    %975 = vector.load %arg3[%974, %c0_314, %c0_315] : memref<48x8x8xf32, #tpu.memory_space<vmem>>, vector<1x8x8xf32>
    %976 = vector.shape_cast %975 : vector<1x8x8xf32> to vector<8x8xf32>
    %977 = vector.extract_strided_slice %892 {offsets = [1, 1, 0], sizes = [1, 1, 8], strides = [1, 1, 1]} : vector<8x4x8xf32> to vector<1x1x8xf32>
    %978 = vector.shape_cast %977 : vector<1x1x8xf32> to vector<1x8xf32>
    %979 = vector.broadcast %978 : vector<1x8xf32> to vector<8x8xf32>
    %980 = arith.mulf %976, %979 : vector<8x8xf32>
    %981 = arith.addf %972, %980 : vector<8x8xf32>
    %c2_i32_316 = arith.constant 2 : i32
    %982 = arith.addi %893, %c2_i32_316 : i32
    %983 = arith.index_cast %982 : i32 to index
    %c0_317 = arith.constant 0 : index
    %c0_318 = arith.constant 0 : index
    %984 = vector.load %arg3[%983, %c0_317, %c0_318] : memref<48x8x8xf32, #tpu.memory_space<vmem>>, vector<1x8x8xf32>
    %985 = vector.shape_cast %984 : vector<1x8x8xf32> to vector<8x8xf32>
    %986 = vector.extract_strided_slice %892 {offsets = [2, 1, 0], sizes = [1, 1, 8], strides = [1, 1, 1]} : vector<8x4x8xf32> to vector<1x1x8xf32>
    %987 = vector.shape_cast %986 : vector<1x1x8xf32> to vector<1x8xf32>
    %988 = vector.broadcast %987 : vector<1x8xf32> to vector<8x8xf32>
    %989 = arith.mulf %985, %988 : vector<8x8xf32>
    %990 = arith.addf %981, %989 : vector<8x8xf32>
    %c3_i32_319 = arith.constant 3 : i32
    %991 = arith.addi %893, %c3_i32_319 : i32
    %992 = arith.index_cast %991 : i32 to index
    %c0_320 = arith.constant 0 : index
    %c0_321 = arith.constant 0 : index
    %993 = vector.load %arg3[%992, %c0_320, %c0_321] : memref<48x8x8xf32, #tpu.memory_space<vmem>>, vector<1x8x8xf32>
    %994 = vector.shape_cast %993 : vector<1x8x8xf32> to vector<8x8xf32>
    %995 = vector.extract_strided_slice %892 {offsets = [3, 1, 0], sizes = [1, 1, 8], strides = [1, 1, 1]} : vector<8x4x8xf32> to vector<1x1x8xf32>
    %996 = vector.shape_cast %995 : vector<1x1x8xf32> to vector<1x8xf32>
    %997 = vector.broadcast %996 : vector<1x8xf32> to vector<8x8xf32>
    %998 = arith.mulf %994, %997 : vector<8x8xf32>
    %999 = arith.addf %990, %998 : vector<8x8xf32>
    %c4_i32_322 = arith.constant 4 : i32
    %1000 = arith.addi %893, %c4_i32_322 : i32
    %1001 = arith.index_cast %1000 : i32 to index
    %c0_323 = arith.constant 0 : index
    %c0_324 = arith.constant 0 : index
    %1002 = vector.load %arg3[%1001, %c0_323, %c0_324] : memref<48x8x8xf32, #tpu.memory_space<vmem>>, vector<1x8x8xf32>
    %1003 = vector.shape_cast %1002 : vector<1x8x8xf32> to vector<8x8xf32>
    %1004 = vector.extract_strided_slice %892 {offsets = [4, 1, 0], sizes = [1, 1, 8], strides = [1, 1, 1]} : vector<8x4x8xf32> to vector<1x1x8xf32>
    %1005 = vector.shape_cast %1004 : vector<1x1x8xf32> to vector<1x8xf32>
    %1006 = vector.broadcast %1005 : vector<1x8xf32> to vector<8x8xf32>
    %1007 = arith.mulf %1003, %1006 : vector<8x8xf32>
    %1008 = arith.addf %999, %1007 : vector<8x8xf32>
    %c5_i32_325 = arith.constant 5 : i32
    %1009 = arith.addi %893, %c5_i32_325 : i32
    %1010 = arith.index_cast %1009 : i32 to index
    %c0_326 = arith.constant 0 : index
    %c0_327 = arith.constant 0 : index
    %1011 = vector.load %arg3[%1010, %c0_326, %c0_327] : memref<48x8x8xf32, #tpu.memory_space<vmem>>, vector<1x8x8xf32>
    %1012 = vector.shape_cast %1011 : vector<1x8x8xf32> to vector<8x8xf32>
    %1013 = vector.extract_strided_slice %892 {offsets = [5, 1, 0], sizes = [1, 1, 8], strides = [1, 1, 1]} : vector<8x4x8xf32> to vector<1x1x8xf32>
    %1014 = vector.shape_cast %1013 : vector<1x1x8xf32> to vector<1x8xf32>
    %1015 = vector.broadcast %1014 : vector<1x8xf32> to vector<8x8xf32>
    %1016 = arith.mulf %1012, %1015 : vector<8x8xf32>
    %1017 = arith.addf %1008, %1016 : vector<8x8xf32>
    %c6_i32_328 = arith.constant 6 : i32
    %1018 = arith.addi %893, %c6_i32_328 : i32
    %1019 = arith.index_cast %1018 : i32 to index
    %c0_329 = arith.constant 0 : index
    %c0_330 = arith.constant 0 : index
    %1020 = vector.load %arg3[%1019, %c0_329, %c0_330] : memref<48x8x8xf32, #tpu.memory_space<vmem>>, vector<1x8x8xf32>
    %1021 = vector.shape_cast %1020 : vector<1x8x8xf32> to vector<8x8xf32>
    %1022 = vector.extract_strided_slice %892 {offsets = [6, 1, 0], sizes = [1, 1, 8], strides = [1, 1, 1]} : vector<8x4x8xf32> to vector<1x1x8xf32>
    %1023 = vector.shape_cast %1022 : vector<1x1x8xf32> to vector<1x8xf32>
    %1024 = vector.broadcast %1023 : vector<1x8xf32> to vector<8x8xf32>
    %1025 = arith.mulf %1021, %1024 : vector<8x8xf32>
    %1026 = arith.addf %1017, %1025 : vector<8x8xf32>
    %c7_i32_331 = arith.constant 7 : i32
    %1027 = arith.addi %893, %c7_i32_331 : i32
    %1028 = arith.index_cast %1027 : i32 to index
    %c0_332 = arith.constant 0 : index
    %c0_333 = arith.constant 0 : index
    %1029 = vector.load %arg3[%1028, %c0_332, %c0_333] : memref<48x8x8xf32, #tpu.memory_space<vmem>>, vector<1x8x8xf32>
    %1030 = vector.shape_cast %1029 : vector<1x8x8xf32> to vector<8x8xf32>
    %1031 = vector.extract_strided_slice %892 {offsets = [7, 1, 0], sizes = [1, 1, 8], strides = [1, 1, 1]} : vector<8x4x8xf32> to vector<1x1x8xf32>
    %1032 = vector.shape_cast %1031 : vector<1x1x8xf32> to vector<1x8xf32>
    %1033 = vector.broadcast %1032 : vector<1x8xf32> to vector<8x8xf32>
    %1034 = arith.mulf %1030, %1033 : vector<8x8xf32>
    %1035 = arith.addf %1026, %1034 : vector<8x8xf32>
    %1036 = arith.mulf %1035, %1035 : vector<8x8xf32>
    %1037 = arith.addf %965, %1036 : vector<8x8xf32>
    %1038 = arith.index_cast %893 : i32 to index
    %c0_334 = arith.constant 0 : index
    %c0_335 = arith.constant 0 : index
    %1039 = vector.load %arg3[%1038, %c0_334, %c0_335] : memref<48x8x8xf32, #tpu.memory_space<vmem>>, vector<1x8x8xf32>
    %1040 = vector.shape_cast %1039 : vector<1x8x8xf32> to vector<8x8xf32>
    %1041 = vector.extract_strided_slice %892 {offsets = [0, 2, 0], sizes = [1, 1, 8], strides = [1, 1, 1]} : vector<8x4x8xf32> to vector<1x1x8xf32>
    %1042 = vector.shape_cast %1041 : vector<1x1x8xf32> to vector<1x8xf32>
    %1043 = vector.broadcast %1042 : vector<1x8xf32> to vector<8x8xf32>
    %1044 = arith.mulf %1040, %1043 : vector<8x8xf32>
    %c1_i32_336 = arith.constant 1 : i32
    %1045 = arith.addi %893, %c1_i32_336 : i32
    %1046 = arith.index_cast %1045 : i32 to index
    %c0_337 = arith.constant 0 : index
    %c0_338 = arith.constant 0 : index
    %1047 = vector.load %arg3[%1046, %c0_337, %c0_338] : memref<48x8x8xf32, #tpu.memory_space<vmem>>, vector<1x8x8xf32>
    %1048 = vector.shape_cast %1047 : vector<1x8x8xf32> to vector<8x8xf32>
    %1049 = vector.extract_strided_slice %892 {offsets = [1, 2, 0], sizes = [1, 1, 8], strides = [1, 1, 1]} : vector<8x4x8xf32> to vector<1x1x8xf32>
    %1050 = vector.shape_cast %1049 : vector<1x1x8xf32> to vector<1x8xf32>
    %1051 = vector.broadcast %1050 : vector<1x8xf32> to vector<8x8xf32>
    %1052 = arith.mulf %1048, %1051 : vector<8x8xf32>
    %1053 = arith.addf %1044, %1052 : vector<8x8xf32>
    %c2_i32_339 = arith.constant 2 : i32
    %1054 = arith.addi %893, %c2_i32_339 : i32
    %1055 = arith.index_cast %1054 : i32 to index
    %c0_340 = arith.constant 0 : index
    %c0_341 = arith.constant 0 : index
    %1056 = vector.load %arg3[%1055, %c0_340, %c0_341] : memref<48x8x8xf32, #tpu.memory_space<vmem>>, vector<1x8x8xf32>
    %1057 = vector.shape_cast %1056 : vector<1x8x8xf32> to vector<8x8xf32>
    %1058 = vector.extract_strided_slice %892 {offsets = [2, 2, 0], sizes = [1, 1, 8], strides = [1, 1, 1]} : vector<8x4x8xf32> to vector<1x1x8xf32>
    %1059 = vector.shape_cast %1058 : vector<1x1x8xf32> to vector<1x8xf32>
    %1060 = vector.broadcast %1059 : vector<1x8xf32> to vector<8x8xf32>
    %1061 = arith.mulf %1057, %1060 : vector<8x8xf32>
    %1062 = arith.addf %1053, %1061 : vector<8x8xf32>
    %c3_i32_342 = arith.constant 3 : i32
    %1063 = arith.addi %893, %c3_i32_342 : i32
    %1064 = arith.index_cast %1063 : i32 to index
    %c0_343 = arith.constant 0 : index
    %c0_344 = arith.constant 0 : index
    %1065 = vector.load %arg3[%1064, %c0_343, %c0_344] : memref<48x8x8xf32, #tpu.memory_space<vmem>>, vector<1x8x8xf32>
    %1066 = vector.shape_cast %1065 : vector<1x8x8xf32> to vector<8x8xf32>
    %1067 = vector.extract_strided_slice %892 {offsets = [3, 2, 0], sizes = [1, 1, 8], strides = [1, 1, 1]} : vector<8x4x8xf32> to vector<1x1x8xf32>
    %1068 = vector.shape_cast %1067 : vector<1x1x8xf32> to vector<1x8xf32>
    %1069 = vector.broadcast %1068 : vector<1x8xf32> to vector<8x8xf32>
    %1070 = arith.mulf %1066, %1069 : vector<8x8xf32>
    %1071 = arith.addf %1062, %1070 : vector<8x8xf32>
    %c4_i32_345 = arith.constant 4 : i32
    %1072 = arith.addi %893, %c4_i32_345 : i32
    %1073 = arith.index_cast %1072 : i32 to index
    %c0_346 = arith.constant 0 : index
    %c0_347 = arith.constant 0 : index
    %1074 = vector.load %arg3[%1073, %c0_346, %c0_347] : memref<48x8x8xf32, #tpu.memory_space<vmem>>, vector<1x8x8xf32>
    %1075 = vector.shape_cast %1074 : vector<1x8x8xf32> to vector<8x8xf32>
    %1076 = vector.extract_strided_slice %892 {offsets = [4, 2, 0], sizes = [1, 1, 8], strides = [1, 1, 1]} : vector<8x4x8xf32> to vector<1x1x8xf32>
    %1077 = vector.shape_cast %1076 : vector<1x1x8xf32> to vector<1x8xf32>
    %1078 = vector.broadcast %1077 : vector<1x8xf32> to vector<8x8xf32>
    %1079 = arith.mulf %1075, %1078 : vector<8x8xf32>
    %1080 = arith.addf %1071, %1079 : vector<8x8xf32>
    %c5_i32_348 = arith.constant 5 : i32
    %1081 = arith.addi %893, %c5_i32_348 : i32
    %1082 = arith.index_cast %1081 : i32 to index
    %c0_349 = arith.constant 0 : index
    %c0_350 = arith.constant 0 : index
    %1083 = vector.load %arg3[%1082, %c0_349, %c0_350] : memref<48x8x8xf32, #tpu.memory_space<vmem>>, vector<1x8x8xf32>
    %1084 = vector.shape_cast %1083 : vector<1x8x8xf32> to vector<8x8xf32>
    %1085 = vector.extract_strided_slice %892 {offsets = [5, 2, 0], sizes = [1, 1, 8], strides = [1, 1, 1]} : vector<8x4x8xf32> to vector<1x1x8xf32>
    %1086 = vector.shape_cast %1085 : vector<1x1x8xf32> to vector<1x8xf32>
    %1087 = vector.broadcast %1086 : vector<1x8xf32> to vector<8x8xf32>
    %1088 = arith.mulf %1084, %1087 : vector<8x8xf32>
    %1089 = arith.addf %1080, %1088 : vector<8x8xf32>
    %c6_i32_351 = arith.constant 6 : i32
    %1090 = arith.addi %893, %c6_i32_351 : i32
    %1091 = arith.index_cast %1090 : i32 to index
    %c0_352 = arith.constant 0 : index
    %c0_353 = arith.constant 0 : index
    %1092 = vector.load %arg3[%1091, %c0_352, %c0_353] : memref<48x8x8xf32, #tpu.memory_space<vmem>>, vector<1x8x8xf32>
    %1093 = vector.shape_cast %1092 : vector<1x8x8xf32> to vector<8x8xf32>
    %1094 = vector.extract_strided_slice %892 {offsets = [6, 2, 0], sizes = [1, 1, 8], strides = [1, 1, 1]} : vector<8x4x8xf32> to vector<1x1x8xf32>
    %1095 = vector.shape_cast %1094 : vector<1x1x8xf32> to vector<1x8xf32>
    %1096 = vector.broadcast %1095 : vector<1x8xf32> to vector<8x8xf32>
    %1097 = arith.mulf %1093, %1096 : vector<8x8xf32>
    %1098 = arith.addf %1089, %1097 : vector<8x8xf32>
    %c7_i32_354 = arith.constant 7 : i32
    %1099 = arith.addi %893, %c7_i32_354 : i32
    %1100 = arith.index_cast %1099 : i32 to index
    %c0_355 = arith.constant 0 : index
    %c0_356 = arith.constant 0 : index
    %1101 = vector.load %arg3[%1100, %c0_355, %c0_356] : memref<48x8x8xf32, #tpu.memory_space<vmem>>, vector<1x8x8xf32>
    %1102 = vector.shape_cast %1101 : vector<1x8x8xf32> to vector<8x8xf32>
    %1103 = vector.extract_strided_slice %892 {offsets = [7, 2, 0], sizes = [1, 1, 8], strides = [1, 1, 1]} : vector<8x4x8xf32> to vector<1x1x8xf32>
    %1104 = vector.shape_cast %1103 : vector<1x1x8xf32> to vector<1x8xf32>
    %1105 = vector.broadcast %1104 : vector<1x8xf32> to vector<8x8xf32>
    %1106 = arith.mulf %1102, %1105 : vector<8x8xf32>
    %1107 = arith.addf %1098, %1106 : vector<8x8xf32>
    %1108 = arith.mulf %1107, %1107 : vector<8x8xf32>
    %1109 = arith.addf %1037, %1108 : vector<8x8xf32>
    %1110 = arith.index_cast %893 : i32 to index
    %c0_357 = arith.constant 0 : index
    %c0_358 = arith.constant 0 : index
    %1111 = vector.load %arg3[%1110, %c0_357, %c0_358] : memref<48x8x8xf32, #tpu.memory_space<vmem>>, vector<1x8x8xf32>
    %1112 = vector.shape_cast %1111 : vector<1x8x8xf32> to vector<8x8xf32>
    %1113 = vector.extract_strided_slice %892 {offsets = [0, 3, 0], sizes = [1, 1, 8], strides = [1, 1, 1]} : vector<8x4x8xf32> to vector<1x1x8xf32>
    %1114 = vector.shape_cast %1113 : vector<1x1x8xf32> to vector<1x8xf32>
    %1115 = vector.broadcast %1114 : vector<1x8xf32> to vector<8x8xf32>
    %1116 = arith.mulf %1112, %1115 : vector<8x8xf32>
    %c1_i32_359 = arith.constant 1 : i32
    %1117 = arith.addi %893, %c1_i32_359 : i32
    %1118 = arith.index_cast %1117 : i32 to index
    %c0_360 = arith.constant 0 : index
    %c0_361 = arith.constant 0 : index
    %1119 = vector.load %arg3[%1118, %c0_360, %c0_361] : memref<48x8x8xf32, #tpu.memory_space<vmem>>, vector<1x8x8xf32>
    %1120 = vector.shape_cast %1119 : vector<1x8x8xf32> to vector<8x8xf32>
    %1121 = vector.extract_strided_slice %892 {offsets = [1, 3, 0], sizes = [1, 1, 8], strides = [1, 1, 1]} : vector<8x4x8xf32> to vector<1x1x8xf32>
    %1122 = vector.shape_cast %1121 : vector<1x1x8xf32> to vector<1x8xf32>
    %1123 = vector.broadcast %1122 : vector<1x8xf32> to vector<8x8xf32>
    %1124 = arith.mulf %1120, %1123 : vector<8x8xf32>
    %1125 = arith.addf %1116, %1124 : vector<8x8xf32>
    %c2_i32_362 = arith.constant 2 : i32
    %1126 = arith.addi %893, %c2_i32_362 : i32
    %1127 = arith.index_cast %1126 : i32 to index
    %c0_363 = arith.constant 0 : index
    %c0_364 = arith.constant 0 : index
    %1128 = vector.load %arg3[%1127, %c0_363, %c0_364] : memref<48x8x8xf32, #tpu.memory_space<vmem>>, vector<1x8x8xf32>
    %1129 = vector.shape_cast %1128 : vector<1x8x8xf32> to vector<8x8xf32>
    %1130 = vector.extract_strided_slice %892 {offsets = [2, 3, 0], sizes = [1, 1, 8], strides = [1, 1, 1]} : vector<8x4x8xf32> to vector<1x1x8xf32>
    %1131 = vector.shape_cast %1130 : vector<1x1x8xf32> to vector<1x8xf32>
    %1132 = vector.broadcast %1131 : vector<1x8xf32> to vector<8x8xf32>
    %1133 = arith.mulf %1129, %1132 : vector<8x8xf32>
    %1134 = arith.addf %1125, %1133 : vector<8x8xf32>
    %c3_i32_365 = arith.constant 3 : i32
    %1135 = arith.addi %893, %c3_i32_365 : i32
    %1136 = arith.index_cast %1135 : i32 to index
    %c0_366 = arith.constant 0 : index
    %c0_367 = arith.constant 0 : index
    %1137 = vector.load %arg3[%1136, %c0_366, %c0_367] : memref<48x8x8xf32, #tpu.memory_space<vmem>>, vector<1x8x8xf32>
    %1138 = vector.shape_cast %1137 : vector<1x8x8xf32> to vector<8x8xf32>
    %1139 = vector.extract_strided_slice %892 {offsets = [3, 3, 0], sizes = [1, 1, 8], strides = [1, 1, 1]} : vector<8x4x8xf32> to vector<1x1x8xf32>
    %1140 = vector.shape_cast %1139 : vector<1x1x8xf32> to vector<1x8xf32>
    %1141 = vector.broadcast %1140 : vector<1x8xf32> to vector<8x8xf32>
    %1142 = arith.mulf %1138, %1141 : vector<8x8xf32>
    %1143 = arith.addf %1134, %1142 : vector<8x8xf32>
    %c4_i32_368 = arith.constant 4 : i32
    %1144 = arith.addi %893, %c4_i32_368 : i32
    %1145 = arith.index_cast %1144 : i32 to index
    %c0_369 = arith.constant 0 : index
    %c0_370 = arith.constant 0 : index
    %1146 = vector.load %arg3[%1145, %c0_369, %c0_370] : memref<48x8x8xf32, #tpu.memory_space<vmem>>, vector<1x8x8xf32>
    %1147 = vector.shape_cast %1146 : vector<1x8x8xf32> to vector<8x8xf32>
    %1148 = vector.extract_strided_slice %892 {offsets = [4, 3, 0], sizes = [1, 1, 8], strides = [1, 1, 1]} : vector<8x4x8xf32> to vector<1x1x8xf32>
    %1149 = vector.shape_cast %1148 : vector<1x1x8xf32> to vector<1x8xf32>
    %1150 = vector.broadcast %1149 : vector<1x8xf32> to vector<8x8xf32>
    %1151 = arith.mulf %1147, %1150 : vector<8x8xf32>
    %1152 = arith.addf %1143, %1151 : vector<8x8xf32>
    %c5_i32_371 = arith.constant 5 : i32
    %1153 = arith.addi %893, %c5_i32_371 : i32
    %1154 = arith.index_cast %1153 : i32 to index
    %c0_372 = arith.constant 0 : index
    %c0_373 = arith.constant 0 : index
    %1155 = vector.load %arg3[%1154, %c0_372, %c0_373] : memref<48x8x8xf32, #tpu.memory_space<vmem>>, vector<1x8x8xf32>
    %1156 = vector.shape_cast %1155 : vector<1x8x8xf32> to vector<8x8xf32>
    %1157 = vector.extract_strided_slice %892 {offsets = [5, 3, 0], sizes = [1, 1, 8], strides = [1, 1, 1]} : vector<8x4x8xf32> to vector<1x1x8xf32>
    %1158 = vector.shape_cast %1157 : vector<1x1x8xf32> to vector<1x8xf32>
    %1159 = vector.broadcast %1158 : vector<1x8xf32> to vector<8x8xf32>
    %1160 = arith.mulf %1156, %1159 : vector<8x8xf32>
    %1161 = arith.addf %1152, %1160 : vector<8x8xf32>
    %c6_i32_374 = arith.constant 6 : i32
    %1162 = arith.addi %893, %c6_i32_374 : i32
    %1163 = arith.index_cast %1162 : i32 to index
    %c0_375 = arith.constant 0 : index
    %c0_376 = arith.constant 0 : index
    %1164 = vector.load %arg3[%1163, %c0_375, %c0_376] : memref<48x8x8xf32, #tpu.memory_space<vmem>>, vector<1x8x8xf32>
    %1165 = vector.shape_cast %1164 : vector<1x8x8xf32> to vector<8x8xf32>
    %1166 = vector.extract_strided_slice %892 {offsets = [6, 3, 0], sizes = [1, 1, 8], strides = [1, 1, 1]} : vector<8x4x8xf32> to vector<1x1x8xf32>
    %1167 = vector.shape_cast %1166 : vector<1x1x8xf32> to vector<1x8xf32>
    %1168 = vector.broadcast %1167 : vector<1x8xf32> to vector<8x8xf32>
    %1169 = arith.mulf %1165, %1168 : vector<8x8xf32>
    %1170 = arith.addf %1161, %1169 : vector<8x8xf32>
    %c7_i32_377 = arith.constant 7 : i32
    %1171 = arith.addi %893, %c7_i32_377 : i32
    %1172 = arith.index_cast %1171 : i32 to index
    %c0_378 = arith.constant 0 : index
    %c0_379 = arith.constant 0 : index
    %1173 = vector.load %arg3[%1172, %c0_378, %c0_379] : memref<48x8x8xf32, #tpu.memory_space<vmem>>, vector<1x8x8xf32>
    %1174 = vector.shape_cast %1173 : vector<1x8x8xf32> to vector<8x8xf32>
    %1175 = vector.extract_strided_slice %892 {offsets = [7, 3, 0], sizes = [1, 1, 8], strides = [1, 1, 1]} : vector<8x4x8xf32> to vector<1x1x8xf32>
    %1176 = vector.shape_cast %1175 : vector<1x1x8xf32> to vector<1x8xf32>
    %1177 = vector.broadcast %1176 : vector<1x8xf32> to vector<8x8xf32>
    %1178 = arith.mulf %1174, %1177 : vector<8x8xf32>
    %1179 = arith.addf %1170, %1178 : vector<8x8xf32>
    %1180 = arith.mulf %1179, %1179 : vector<8x8xf32>
    %1181 = arith.addf %1109, %1180 : vector<8x8xf32>
    %c4_i32_380 = arith.constant 4 : i32
    %1182 = arith.index_cast %c4_i32_380 : i32 to index
    %c0_381 = arith.constant 0 : index
    %c0_382 = arith.constant 0 : index
    %c0_383 = arith.constant 0 : index
    %1183 = vector.load %arg4[%1182, %c0_381, %c0_382, %c0_383] : memref<6x8x4x8xf32, #tpu.memory_space<vmem>>, vector<1x8x4x8xf32>
    %1184 = vector.shape_cast %1183 : vector<1x8x4x8xf32> to vector<8x4x8xf32>
    %1185 = vector.shape_cast %0 : vector<4x8xf32> to vector<1x4x8xf32>
    %1186 = vector.broadcast %1185 : vector<1x4x8xf32> to vector<8x4x8xf32>
    %1187 = arith.mulf %1184, %1186 : vector<8x4x8xf32>
    %c8_i32_384 = arith.constant 8 : i32
    %1188 = arith.muli %c4_i32_380, %c8_i32_384 : i32
    %1189 = arith.index_cast %1188 : i32 to index
    %c0_385 = arith.constant 0 : index
    %c0_386 = arith.constant 0 : index
    %1190 = vector.load %arg3[%1189, %c0_385, %c0_386] : memref<48x8x8xf32, #tpu.memory_space<vmem>>, vector<1x8x8xf32>
    %1191 = vector.shape_cast %1190 : vector<1x8x8xf32> to vector<8x8xf32>
    %1192 = vector.extract_strided_slice %1187 {offsets = [0, 0, 0], sizes = [1, 1, 8], strides = [1, 1, 1]} : vector<8x4x8xf32> to vector<1x1x8xf32>
    %1193 = vector.shape_cast %1192 : vector<1x1x8xf32> to vector<1x8xf32>
    %1194 = vector.broadcast %1193 : vector<1x8xf32> to vector<8x8xf32>
    %1195 = arith.mulf %1191, %1194 : vector<8x8xf32>
    %c1_i32_387 = arith.constant 1 : i32
    %1196 = arith.addi %1188, %c1_i32_387 : i32
    %1197 = arith.index_cast %1196 : i32 to index
    %c0_388 = arith.constant 0 : index
    %c0_389 = arith.constant 0 : index
    %1198 = vector.load %arg3[%1197, %c0_388, %c0_389] : memref<48x8x8xf32, #tpu.memory_space<vmem>>, vector<1x8x8xf32>
    %1199 = vector.shape_cast %1198 : vector<1x8x8xf32> to vector<8x8xf32>
    %1200 = vector.extract_strided_slice %1187 {offsets = [1, 0, 0], sizes = [1, 1, 8], strides = [1, 1, 1]} : vector<8x4x8xf32> to vector<1x1x8xf32>
    %1201 = vector.shape_cast %1200 : vector<1x1x8xf32> to vector<1x8xf32>
    %1202 = vector.broadcast %1201 : vector<1x8xf32> to vector<8x8xf32>
    %1203 = arith.mulf %1199, %1202 : vector<8x8xf32>
    %1204 = arith.addf %1195, %1203 : vector<8x8xf32>
    %c2_i32_390 = arith.constant 2 : i32
    %1205 = arith.addi %1188, %c2_i32_390 : i32
    %1206 = arith.index_cast %1205 : i32 to index
    %c0_391 = arith.constant 0 : index
    %c0_392 = arith.constant 0 : index
    %1207 = vector.load %arg3[%1206, %c0_391, %c0_392] : memref<48x8x8xf32, #tpu.memory_space<vmem>>, vector<1x8x8xf32>
    %1208 = vector.shape_cast %1207 : vector<1x8x8xf32> to vector<8x8xf32>
    %1209 = vector.extract_strided_slice %1187 {offsets = [2, 0, 0], sizes = [1, 1, 8], strides = [1, 1, 1]} : vector<8x4x8xf32> to vector<1x1x8xf32>
    %1210 = vector.shape_cast %1209 : vector<1x1x8xf32> to vector<1x8xf32>
    %1211 = vector.broadcast %1210 : vector<1x8xf32> to vector<8x8xf32>
    %1212 = arith.mulf %1208, %1211 : vector<8x8xf32>
    %1213 = arith.addf %1204, %1212 : vector<8x8xf32>
    %c3_i32_393 = arith.constant 3 : i32
    %1214 = arith.addi %1188, %c3_i32_393 : i32
    %1215 = arith.index_cast %1214 : i32 to index
    %c0_394 = arith.constant 0 : index
    %c0_395 = arith.constant 0 : index
    %1216 = vector.load %arg3[%1215, %c0_394, %c0_395] : memref<48x8x8xf32, #tpu.memory_space<vmem>>, vector<1x8x8xf32>
    %1217 = vector.shape_cast %1216 : vector<1x8x8xf32> to vector<8x8xf32>
    %1218 = vector.extract_strided_slice %1187 {offsets = [3, 0, 0], sizes = [1, 1, 8], strides = [1, 1, 1]} : vector<8x4x8xf32> to vector<1x1x8xf32>
    %1219 = vector.shape_cast %1218 : vector<1x1x8xf32> to vector<1x8xf32>
    %1220 = vector.broadcast %1219 : vector<1x8xf32> to vector<8x8xf32>
    %1221 = arith.mulf %1217, %1220 : vector<8x8xf32>
    %1222 = arith.addf %1213, %1221 : vector<8x8xf32>
    %c4_i32_396 = arith.constant 4 : i32
    %1223 = arith.addi %1188, %c4_i32_396 : i32
    %1224 = arith.index_cast %1223 : i32 to index
    %c0_397 = arith.constant 0 : index
    %c0_398 = arith.constant 0 : index
    %1225 = vector.load %arg3[%1224, %c0_397, %c0_398] : memref<48x8x8xf32, #tpu.memory_space<vmem>>, vector<1x8x8xf32>
    %1226 = vector.shape_cast %1225 : vector<1x8x8xf32> to vector<8x8xf32>
    %1227 = vector.extract_strided_slice %1187 {offsets = [4, 0, 0], sizes = [1, 1, 8], strides = [1, 1, 1]} : vector<8x4x8xf32> to vector<1x1x8xf32>
    %1228 = vector.shape_cast %1227 : vector<1x1x8xf32> to vector<1x8xf32>
    %1229 = vector.broadcast %1228 : vector<1x8xf32> to vector<8x8xf32>
    %1230 = arith.mulf %1226, %1229 : vector<8x8xf32>
    %1231 = arith.addf %1222, %1230 : vector<8x8xf32>
    %c5_i32_399 = arith.constant 5 : i32
    %1232 = arith.addi %1188, %c5_i32_399 : i32
    %1233 = arith.index_cast %1232 : i32 to index
    %c0_400 = arith.constant 0 : index
    %c0_401 = arith.constant 0 : index
    %1234 = vector.load %arg3[%1233, %c0_400, %c0_401] : memref<48x8x8xf32, #tpu.memory_space<vmem>>, vector<1x8x8xf32>
    %1235 = vector.shape_cast %1234 : vector<1x8x8xf32> to vector<8x8xf32>
    %1236 = vector.extract_strided_slice %1187 {offsets = [5, 0, 0], sizes = [1, 1, 8], strides = [1, 1, 1]} : vector<8x4x8xf32> to vector<1x1x8xf32>
    %1237 = vector.shape_cast %1236 : vector<1x1x8xf32> to vector<1x8xf32>
    %1238 = vector.broadcast %1237 : vector<1x8xf32> to vector<8x8xf32>
    %1239 = arith.mulf %1235, %1238 : vector<8x8xf32>
    %1240 = arith.addf %1231, %1239 : vector<8x8xf32>
    %c6_i32_402 = arith.constant 6 : i32
    %1241 = arith.addi %1188, %c6_i32_402 : i32
    %1242 = arith.index_cast %1241 : i32 to index
    %c0_403 = arith.constant 0 : index
    %c0_404 = arith.constant 0 : index
    %1243 = vector.load %arg3[%1242, %c0_403, %c0_404] : memref<48x8x8xf32, #tpu.memory_space<vmem>>, vector<1x8x8xf32>
    %1244 = vector.shape_cast %1243 : vector<1x8x8xf32> to vector<8x8xf32>
    %1245 = vector.extract_strided_slice %1187 {offsets = [6, 0, 0], sizes = [1, 1, 8], strides = [1, 1, 1]} : vector<8x4x8xf32> to vector<1x1x8xf32>
    %1246 = vector.shape_cast %1245 : vector<1x1x8xf32> to vector<1x8xf32>
    %1247 = vector.broadcast %1246 : vector<1x8xf32> to vector<8x8xf32>
    %1248 = arith.mulf %1244, %1247 : vector<8x8xf32>
    %1249 = arith.addf %1240, %1248 : vector<8x8xf32>
    %c7_i32_405 = arith.constant 7 : i32
    %1250 = arith.addi %1188, %c7_i32_405 : i32
    %1251 = arith.index_cast %1250 : i32 to index
    %c0_406 = arith.constant 0 : index
    %c0_407 = arith.constant 0 : index
    %1252 = vector.load %arg3[%1251, %c0_406, %c0_407] : memref<48x8x8xf32, #tpu.memory_space<vmem>>, vector<1x8x8xf32>
    %1253 = vector.shape_cast %1252 : vector<1x8x8xf32> to vector<8x8xf32>
    %1254 = vector.extract_strided_slice %1187 {offsets = [7, 0, 0], sizes = [1, 1, 8], strides = [1, 1, 1]} : vector<8x4x8xf32> to vector<1x1x8xf32>
    %1255 = vector.shape_cast %1254 : vector<1x1x8xf32> to vector<1x8xf32>
    %1256 = vector.broadcast %1255 : vector<1x8xf32> to vector<8x8xf32>
    %1257 = arith.mulf %1253, %1256 : vector<8x8xf32>
    %1258 = arith.addf %1249, %1257 : vector<8x8xf32>
    %1259 = arith.mulf %1258, %1258 : vector<8x8xf32>
    %1260 = arith.addf %1181, %1259 : vector<8x8xf32>
    %1261 = arith.index_cast %1188 : i32 to index
    %c0_408 = arith.constant 0 : index
    %c0_409 = arith.constant 0 : index
    %1262 = vector.load %arg3[%1261, %c0_408, %c0_409] : memref<48x8x8xf32, #tpu.memory_space<vmem>>, vector<1x8x8xf32>
    %1263 = vector.shape_cast %1262 : vector<1x8x8xf32> to vector<8x8xf32>
    %1264 = vector.extract_strided_slice %1187 {offsets = [0, 1, 0], sizes = [1, 1, 8], strides = [1, 1, 1]} : vector<8x4x8xf32> to vector<1x1x8xf32>
    %1265 = vector.shape_cast %1264 : vector<1x1x8xf32> to vector<1x8xf32>
    %1266 = vector.broadcast %1265 : vector<1x8xf32> to vector<8x8xf32>
    %1267 = arith.mulf %1263, %1266 : vector<8x8xf32>
    %c1_i32_410 = arith.constant 1 : i32
    %1268 = arith.addi %1188, %c1_i32_410 : i32
    %1269 = arith.index_cast %1268 : i32 to index
    %c0_411 = arith.constant 0 : index
    %c0_412 = arith.constant 0 : index
    %1270 = vector.load %arg3[%1269, %c0_411, %c0_412] : memref<48x8x8xf32, #tpu.memory_space<vmem>>, vector<1x8x8xf32>
    %1271 = vector.shape_cast %1270 : vector<1x8x8xf32> to vector<8x8xf32>
    %1272 = vector.extract_strided_slice %1187 {offsets = [1, 1, 0], sizes = [1, 1, 8], strides = [1, 1, 1]} : vector<8x4x8xf32> to vector<1x1x8xf32>
    %1273 = vector.shape_cast %1272 : vector<1x1x8xf32> to vector<1x8xf32>
    %1274 = vector.broadcast %1273 : vector<1x8xf32> to vector<8x8xf32>
    %1275 = arith.mulf %1271, %1274 : vector<8x8xf32>
    %1276 = arith.addf %1267, %1275 : vector<8x8xf32>
    %c2_i32_413 = arith.constant 2 : i32
    %1277 = arith.addi %1188, %c2_i32_413 : i32
    %1278 = arith.index_cast %1277 : i32 to index
    %c0_414 = arith.constant 0 : index
    %c0_415 = arith.constant 0 : index
    %1279 = vector.load %arg3[%1278, %c0_414, %c0_415] : memref<48x8x8xf32, #tpu.memory_space<vmem>>, vector<1x8x8xf32>
    %1280 = vector.shape_cast %1279 : vector<1x8x8xf32> to vector<8x8xf32>
    %1281 = vector.extract_strided_slice %1187 {offsets = [2, 1, 0], sizes = [1, 1, 8], strides = [1, 1, 1]} : vector<8x4x8xf32> to vector<1x1x8xf32>
    %1282 = vector.shape_cast %1281 : vector<1x1x8xf32> to vector<1x8xf32>
    %1283 = vector.broadcast %1282 : vector<1x8xf32> to vector<8x8xf32>
    %1284 = arith.mulf %1280, %1283 : vector<8x8xf32>
    %1285 = arith.addf %1276, %1284 : vector<8x8xf32>
    %c3_i32_416 = arith.constant 3 : i32
    %1286 = arith.addi %1188, %c3_i32_416 : i32
    %1287 = arith.index_cast %1286 : i32 to index
    %c0_417 = arith.constant 0 : index
    %c0_418 = arith.constant 0 : index
    %1288 = vector.load %arg3[%1287, %c0_417, %c0_418] : memref<48x8x8xf32, #tpu.memory_space<vmem>>, vector<1x8x8xf32>
    %1289 = vector.shape_cast %1288 : vector<1x8x8xf32> to vector<8x8xf32>
    %1290 = vector.extract_strided_slice %1187 {offsets = [3, 1, 0], sizes = [1, 1, 8], strides = [1, 1, 1]} : vector<8x4x8xf32> to vector<1x1x8xf32>
    %1291 = vector.shape_cast %1290 : vector<1x1x8xf32> to vector<1x8xf32>
    %1292 = vector.broadcast %1291 : vector<1x8xf32> to vector<8x8xf32>
    %1293 = arith.mulf %1289, %1292 : vector<8x8xf32>
    %1294 = arith.addf %1285, %1293 : vector<8x8xf32>
    %c4_i32_419 = arith.constant 4 : i32
    %1295 = arith.addi %1188, %c4_i32_419 : i32
    %1296 = arith.index_cast %1295 : i32 to index
    %c0_420 = arith.constant 0 : index
    %c0_421 = arith.constant 0 : index
    %1297 = vector.load %arg3[%1296, %c0_420, %c0_421] : memref<48x8x8xf32, #tpu.memory_space<vmem>>, vector<1x8x8xf32>
    %1298 = vector.shape_cast %1297 : vector<1x8x8xf32> to vector<8x8xf32>
    %1299 = vector.extract_strided_slice %1187 {offsets = [4, 1, 0], sizes = [1, 1, 8], strides = [1, 1, 1]} : vector<8x4x8xf32> to vector<1x1x8xf32>
    %1300 = vector.shape_cast %1299 : vector<1x1x8xf32> to vector<1x8xf32>
    %1301 = vector.broadcast %1300 : vector<1x8xf32> to vector<8x8xf32>
    %1302 = arith.mulf %1298, %1301 : vector<8x8xf32>
    %1303 = arith.addf %1294, %1302 : vector<8x8xf32>
    %c5_i32_422 = arith.constant 5 : i32
    %1304 = arith.addi %1188, %c5_i32_422 : i32
    %1305 = arith.index_cast %1304 : i32 to index
    %c0_423 = arith.constant 0 : index
    %c0_424 = arith.constant 0 : index
    %1306 = vector.load %arg3[%1305, %c0_423, %c0_424] : memref<48x8x8xf32, #tpu.memory_space<vmem>>, vector<1x8x8xf32>
    %1307 = vector.shape_cast %1306 : vector<1x8x8xf32> to vector<8x8xf32>
    %1308 = vector.extract_strided_slice %1187 {offsets = [5, 1, 0], sizes = [1, 1, 8], strides = [1, 1, 1]} : vector<8x4x8xf32> to vector<1x1x8xf32>
    %1309 = vector.shape_cast %1308 : vector<1x1x8xf32> to vector<1x8xf32>
    %1310 = vector.broadcast %1309 : vector<1x8xf32> to vector<8x8xf32>
    %1311 = arith.mulf %1307, %1310 : vector<8x8xf32>
    %1312 = arith.addf %1303, %1311 : vector<8x8xf32>
    %c6_i32_425 = arith.constant 6 : i32
    %1313 = arith.addi %1188, %c6_i32_425 : i32
    %1314 = arith.index_cast %1313 : i32 to index
    %c0_426 = arith.constant 0 : index
    %c0_427 = arith.constant 0 : index
    %1315 = vector.load %arg3[%1314, %c0_426, %c0_427] : memref<48x8x8xf32, #tpu.memory_space<vmem>>, vector<1x8x8xf32>
    %1316 = vector.shape_cast %1315 : vector<1x8x8xf32> to vector<8x8xf32>
    %1317 = vector.extract_strided_slice %1187 {offsets = [6, 1, 0], sizes = [1, 1, 8], strides = [1, 1, 1]} : vector<8x4x8xf32> to vector<1x1x8xf32>
    %1318 = vector.shape_cast %1317 : vector<1x1x8xf32> to vector<1x8xf32>
    %1319 = vector.broadcast %1318 : vector<1x8xf32> to vector<8x8xf32>
    %1320 = arith.mulf %1316, %1319 : vector<8x8xf32>
    %1321 = arith.addf %1312, %1320 : vector<8x8xf32>
    %c7_i32_428 = arith.constant 7 : i32
    %1322 = arith.addi %1188, %c7_i32_428 : i32
    %1323 = arith.index_cast %1322 : i32 to index
    %c0_429 = arith.constant 0 : index
    %c0_430 = arith.constant 0 : index
    %1324 = vector.load %arg3[%1323, %c0_429, %c0_430] : memref<48x8x8xf32, #tpu.memory_space<vmem>>, vector<1x8x8xf32>
    %1325 = vector.shape_cast %1324 : vector<1x8x8xf32> to vector<8x8xf32>
    %1326 = vector.extract_strided_slice %1187 {offsets = [7, 1, 0], sizes = [1, 1, 8], strides = [1, 1, 1]} : vector<8x4x8xf32> to vector<1x1x8xf32>
    %1327 = vector.shape_cast %1326 : vector<1x1x8xf32> to vector<1x8xf32>
    %1328 = vector.broadcast %1327 : vector<1x8xf32> to vector<8x8xf32>
    %1329 = arith.mulf %1325, %1328 : vector<8x8xf32>
    %1330 = arith.addf %1321, %1329 : vector<8x8xf32>
    %1331 = arith.mulf %1330, %1330 : vector<8x8xf32>
    %1332 = arith.addf %1260, %1331 : vector<8x8xf32>
    %1333 = arith.index_cast %1188 : i32 to index
    %c0_431 = arith.constant 0 : index
    %c0_432 = arith.constant 0 : index
    %1334 = vector.load %arg3[%1333, %c0_431, %c0_432] : memref<48x8x8xf32, #tpu.memory_space<vmem>>, vector<1x8x8xf32>
    %1335 = vector.shape_cast %1334 : vector<1x8x8xf32> to vector<8x8xf32>
    %1336 = vector.extract_strided_slice %1187 {offsets = [0, 2, 0], sizes = [1, 1, 8], strides = [1, 1, 1]} : vector<8x4x8xf32> to vector<1x1x8xf32>
    %1337 = vector.shape_cast %1336 : vector<1x1x8xf32> to vector<1x8xf32>
    %1338 = vector.broadcast %1337 : vector<1x8xf32> to vector<8x8xf32>
    %1339 = arith.mulf %1335, %1338 : vector<8x8xf32>
    %c1_i32_433 = arith.constant 1 : i32
    %1340 = arith.addi %1188, %c1_i32_433 : i32
    %1341 = arith.index_cast %1340 : i32 to index
    %c0_434 = arith.constant 0 : index
    %c0_435 = arith.constant 0 : index
    %1342 = vector.load %arg3[%1341, %c0_434, %c0_435] : memref<48x8x8xf32, #tpu.memory_space<vmem>>, vector<1x8x8xf32>
    %1343 = vector.shape_cast %1342 : vector<1x8x8xf32> to vector<8x8xf32>
    %1344 = vector.extract_strided_slice %1187 {offsets = [1, 2, 0], sizes = [1, 1, 8], strides = [1, 1, 1]} : vector<8x4x8xf32> to vector<1x1x8xf32>
    %1345 = vector.shape_cast %1344 : vector<1x1x8xf32> to vector<1x8xf32>
    %1346 = vector.broadcast %1345 : vector<1x8xf32> to vector<8x8xf32>
    %1347 = arith.mulf %1343, %1346 : vector<8x8xf32>
    %1348 = arith.addf %1339, %1347 : vector<8x8xf32>
    %c2_i32_436 = arith.constant 2 : i32
    %1349 = arith.addi %1188, %c2_i32_436 : i32
    %1350 = arith.index_cast %1349 : i32 to index
    %c0_437 = arith.constant 0 : index
    %c0_438 = arith.constant 0 : index
    %1351 = vector.load %arg3[%1350, %c0_437, %c0_438] : memref<48x8x8xf32, #tpu.memory_space<vmem>>, vector<1x8x8xf32>
    %1352 = vector.shape_cast %1351 : vector<1x8x8xf32> to vector<8x8xf32>
    %1353 = vector.extract_strided_slice %1187 {offsets = [2, 2, 0], sizes = [1, 1, 8], strides = [1, 1, 1]} : vector<8x4x8xf32> to vector<1x1x8xf32>
    %1354 = vector.shape_cast %1353 : vector<1x1x8xf32> to vector<1x8xf32>
    %1355 = vector.broadcast %1354 : vector<1x8xf32> to vector<8x8xf32>
    %1356 = arith.mulf %1352, %1355 : vector<8x8xf32>
    %1357 = arith.addf %1348, %1356 : vector<8x8xf32>
    %c3_i32_439 = arith.constant 3 : i32
    %1358 = arith.addi %1188, %c3_i32_439 : i32
    %1359 = arith.index_cast %1358 : i32 to index
    %c0_440 = arith.constant 0 : index
    %c0_441 = arith.constant 0 : index
    %1360 = vector.load %arg3[%1359, %c0_440, %c0_441] : memref<48x8x8xf32, #tpu.memory_space<vmem>>, vector<1x8x8xf32>
    %1361 = vector.shape_cast %1360 : vector<1x8x8xf32> to vector<8x8xf32>
    %1362 = vector.extract_strided_slice %1187 {offsets = [3, 2, 0], sizes = [1, 1, 8], strides = [1, 1, 1]} : vector<8x4x8xf32> to vector<1x1x8xf32>
    %1363 = vector.shape_cast %1362 : vector<1x1x8xf32> to vector<1x8xf32>
    %1364 = vector.broadcast %1363 : vector<1x8xf32> to vector<8x8xf32>
    %1365 = arith.mulf %1361, %1364 : vector<8x8xf32>
    %1366 = arith.addf %1357, %1365 : vector<8x8xf32>
    %c4_i32_442 = arith.constant 4 : i32
    %1367 = arith.addi %1188, %c4_i32_442 : i32
    %1368 = arith.index_cast %1367 : i32 to index
    %c0_443 = arith.constant 0 : index
    %c0_444 = arith.constant 0 : index
    %1369 = vector.load %arg3[%1368, %c0_443, %c0_444] : memref<48x8x8xf32, #tpu.memory_space<vmem>>, vector<1x8x8xf32>
    %1370 = vector.shape_cast %1369 : vector<1x8x8xf32> to vector<8x8xf32>
    %1371 = vector.extract_strided_slice %1187 {offsets = [4, 2, 0], sizes = [1, 1, 8], strides = [1, 1, 1]} : vector<8x4x8xf32> to vector<1x1x8xf32>
    %1372 = vector.shape_cast %1371 : vector<1x1x8xf32> to vector<1x8xf32>
    %1373 = vector.broadcast %1372 : vector<1x8xf32> to vector<8x8xf32>
    %1374 = arith.mulf %1370, %1373 : vector<8x8xf32>
    %1375 = arith.addf %1366, %1374 : vector<8x8xf32>
    %c5_i32_445 = arith.constant 5 : i32
    %1376 = arith.addi %1188, %c5_i32_445 : i32
    %1377 = arith.index_cast %1376 : i32 to index
    %c0_446 = arith.constant 0 : index
    %c0_447 = arith.constant 0 : index
    %1378 = vector.load %arg3[%1377, %c0_446, %c0_447] : memref<48x8x8xf32, #tpu.memory_space<vmem>>, vector<1x8x8xf32>
    %1379 = vector.shape_cast %1378 : vector<1x8x8xf32> to vector<8x8xf32>
    %1380 = vector.extract_strided_slice %1187 {offsets = [5, 2, 0], sizes = [1, 1, 8], strides = [1, 1, 1]} : vector<8x4x8xf32> to vector<1x1x8xf32>
    %1381 = vector.shape_cast %1380 : vector<1x1x8xf32> to vector<1x8xf32>
    %1382 = vector.broadcast %1381 : vector<1x8xf32> to vector<8x8xf32>
    %1383 = arith.mulf %1379, %1382 : vector<8x8xf32>
    %1384 = arith.addf %1375, %1383 : vector<8x8xf32>
    %c6_i32_448 = arith.constant 6 : i32
    %1385 = arith.addi %1188, %c6_i32_448 : i32
    %1386 = arith.index_cast %1385 : i32 to index
    %c0_449 = arith.constant 0 : index
    %c0_450 = arith.constant 0 : index
    %1387 = vector.load %arg3[%1386, %c0_449, %c0_450] : memref<48x8x8xf32, #tpu.memory_space<vmem>>, vector<1x8x8xf32>
    %1388 = vector.shape_cast %1387 : vector<1x8x8xf32> to vector<8x8xf32>
    %1389 = vector.extract_strided_slice %1187 {offsets = [6, 2, 0], sizes = [1, 1, 8], strides = [1, 1, 1]} : vector<8x4x8xf32> to vector<1x1x8xf32>
    %1390 = vector.shape_cast %1389 : vector<1x1x8xf32> to vector<1x8xf32>
    %1391 = vector.broadcast %1390 : vector<1x8xf32> to vector<8x8xf32>
    %1392 = arith.mulf %1388, %1391 : vector<8x8xf32>
    %1393 = arith.addf %1384, %1392 : vector<8x8xf32>
    %c7_i32_451 = arith.constant 7 : i32
    %1394 = arith.addi %1188, %c7_i32_451 : i32
    %1395 = arith.index_cast %1394 : i32 to index
    %c0_452 = arith.constant 0 : index
    %c0_453 = arith.constant 0 : index
    %1396 = vector.load %arg3[%1395, %c0_452, %c0_453] : memref<48x8x8xf32, #tpu.memory_space<vmem>>, vector<1x8x8xf32>
    %1397 = vector.shape_cast %1396 : vector<1x8x8xf32> to vector<8x8xf32>
    %1398 = vector.extract_strided_slice %1187 {offsets = [7, 2, 0], sizes = [1, 1, 8], strides = [1, 1, 1]} : vector<8x4x8xf32> to vector<1x1x8xf32>
    %1399 = vector.shape_cast %1398 : vector<1x1x8xf32> to vector<1x8xf32>
    %1400 = vector.broadcast %1399 : vector<1x8xf32> to vector<8x8xf32>
    %1401 = arith.mulf %1397, %1400 : vector<8x8xf32>
    %1402 = arith.addf %1393, %1401 : vector<8x8xf32>
    %1403 = arith.mulf %1402, %1402 : vector<8x8xf32>
    %1404 = arith.addf %1332, %1403 : vector<8x8xf32>
    %1405 = arith.index_cast %1188 : i32 to index
    %c0_454 = arith.constant 0 : index
    %c0_455 = arith.constant 0 : index
    %1406 = vector.load %arg3[%1405, %c0_454, %c0_455] : memref<48x8x8xf32, #tpu.memory_space<vmem>>, vector<1x8x8xf32>
    %1407 = vector.shape_cast %1406 : vector<1x8x8xf32> to vector<8x8xf32>
    %1408 = vector.extract_strided_slice %1187 {offsets = [0, 3, 0], sizes = [1, 1, 8], strides = [1, 1, 1]} : vector<8x4x8xf32> to vector<1x1x8xf32>
    %1409 = vector.shape_cast %1408 : vector<1x1x8xf32> to vector<1x8xf32>
    %1410 = vector.broadcast %1409 : vector<1x8xf32> to vector<8x8xf32>
    %1411 = arith.mulf %1407, %1410 : vector<8x8xf32>
    %c1_i32_456 = arith.constant 1 : i32
    %1412 = arith.addi %1188, %c1_i32_456 : i32
    %1413 = arith.index_cast %1412 : i32 to index
    %c0_457 = arith.constant 0 : index
    %c0_458 = arith.constant 0 : index
    %1414 = vector.load %arg3[%1413, %c0_457, %c0_458] : memref<48x8x8xf32, #tpu.memory_space<vmem>>, vector<1x8x8xf32>
    %1415 = vector.shape_cast %1414 : vector<1x8x8xf32> to vector<8x8xf32>
    %1416 = vector.extract_strided_slice %1187 {offsets = [1, 3, 0], sizes = [1, 1, 8], strides = [1, 1, 1]} : vector<8x4x8xf32> to vector<1x1x8xf32>
    %1417 = vector.shape_cast %1416 : vector<1x1x8xf32> to vector<1x8xf32>
    %1418 = vector.broadcast %1417 : vector<1x8xf32> to vector<8x8xf32>
    %1419 = arith.mulf %1415, %1418 : vector<8x8xf32>
    %1420 = arith.addf %1411, %1419 : vector<8x8xf32>
    %c2_i32_459 = arith.constant 2 : i32
    %1421 = arith.addi %1188, %c2_i32_459 : i32
    %1422 = arith.index_cast %1421 : i32 to index
    %c0_460 = arith.constant 0 : index
    %c0_461 = arith.constant 0 : index
    %1423 = vector.load %arg3[%1422, %c0_460, %c0_461] : memref<48x8x8xf32, #tpu.memory_space<vmem>>, vector<1x8x8xf32>
    %1424 = vector.shape_cast %1423 : vector<1x8x8xf32> to vector<8x8xf32>
    %1425 = vector.extract_strided_slice %1187 {offsets = [2, 3, 0], sizes = [1, 1, 8], strides = [1, 1, 1]} : vector<8x4x8xf32> to vector<1x1x8xf32>
    %1426 = vector.shape_cast %1425 : vector<1x1x8xf32> to vector<1x8xf32>
    %1427 = vector.broadcast %1426 : vector<1x8xf32> to vector<8x8xf32>
    %1428 = arith.mulf %1424, %1427 : vector<8x8xf32>
    %1429 = arith.addf %1420, %1428 : vector<8x8xf32>
    %c3_i32_462 = arith.constant 3 : i32
    %1430 = arith.addi %1188, %c3_i32_462 : i32
    %1431 = arith.index_cast %1430 : i32 to index
    %c0_463 = arith.constant 0 : index
    %c0_464 = arith.constant 0 : index
    %1432 = vector.load %arg3[%1431, %c0_463, %c0_464] : memref<48x8x8xf32, #tpu.memory_space<vmem>>, vector<1x8x8xf32>
    %1433 = vector.shape_cast %1432 : vector<1x8x8xf32> to vector<8x8xf32>
    %1434 = vector.extract_strided_slice %1187 {offsets = [3, 3, 0], sizes = [1, 1, 8], strides = [1, 1, 1]} : vector<8x4x8xf32> to vector<1x1x8xf32>
    %1435 = vector.shape_cast %1434 : vector<1x1x8xf32> to vector<1x8xf32>
    %1436 = vector.broadcast %1435 : vector<1x8xf32> to vector<8x8xf32>
    %1437 = arith.mulf %1433, %1436 : vector<8x8xf32>
    %1438 = arith.addf %1429, %1437 : vector<8x8xf32>
    %c4_i32_465 = arith.constant 4 : i32
    %1439 = arith.addi %1188, %c4_i32_465 : i32
    %1440 = arith.index_cast %1439 : i32 to index
    %c0_466 = arith.constant 0 : index
    %c0_467 = arith.constant 0 : index
    %1441 = vector.load %arg3[%1440, %c0_466, %c0_467] : memref<48x8x8xf32, #tpu.memory_space<vmem>>, vector<1x8x8xf32>
    %1442 = vector.shape_cast %1441 : vector<1x8x8xf32> to vector<8x8xf32>
    %1443 = vector.extract_strided_slice %1187 {offsets = [4, 3, 0], sizes = [1, 1, 8], strides = [1, 1, 1]} : vector<8x4x8xf32> to vector<1x1x8xf32>
    %1444 = vector.shape_cast %1443 : vector<1x1x8xf32> to vector<1x8xf32>
    %1445 = vector.broadcast %1444 : vector<1x8xf32> to vector<8x8xf32>
    %1446 = arith.mulf %1442, %1445 : vector<8x8xf32>
    %1447 = arith.addf %1438, %1446 : vector<8x8xf32>
    %c5_i32_468 = arith.constant 5 : i32
    %1448 = arith.addi %1188, %c5_i32_468 : i32
    %1449 = arith.index_cast %1448 : i32 to index
    %c0_469 = arith.constant 0 : index
    %c0_470 = arith.constant 0 : index
    %1450 = vector.load %arg3[%1449, %c0_469, %c0_470] : memref<48x8x8xf32, #tpu.memory_space<vmem>>, vector<1x8x8xf32>
    %1451 = vector.shape_cast %1450 : vector<1x8x8xf32> to vector<8x8xf32>
    %1452 = vector.extract_strided_slice %1187 {offsets = [5, 3, 0], sizes = [1, 1, 8], strides = [1, 1, 1]} : vector<8x4x8xf32> to vector<1x1x8xf32>
    %1453 = vector.shape_cast %1452 : vector<1x1x8xf32> to vector<1x8xf32>
    %1454 = vector.broadcast %1453 : vector<1x8xf32> to vector<8x8xf32>
    %1455 = arith.mulf %1451, %1454 : vector<8x8xf32>
    %1456 = arith.addf %1447, %1455 : vector<8x8xf32>
    %c6_i32_471 = arith.constant 6 : i32
    %1457 = arith.addi %1188, %c6_i32_471 : i32
    %1458 = arith.index_cast %1457 : i32 to index
    %c0_472 = arith.constant 0 : index
    %c0_473 = arith.constant 0 : index
    %1459 = vector.load %arg3[%1458, %c0_472, %c0_473] : memref<48x8x8xf32, #tpu.memory_space<vmem>>, vector<1x8x8xf32>
    %1460 = vector.shape_cast %1459 : vector<1x8x8xf32> to vector<8x8xf32>
    %1461 = vector.extract_strided_slice %1187 {offsets = [6, 3, 0], sizes = [1, 1, 8], strides = [1, 1, 1]} : vector<8x4x8xf32> to vector<1x1x8xf32>
    %1462 = vector.shape_cast %1461 : vector<1x1x8xf32> to vector<1x8xf32>
    %1463 = vector.broadcast %1462 : vector<1x8xf32> to vector<8x8xf32>
    %1464 = arith.mulf %1460, %1463 : vector<8x8xf32>
    %1465 = arith.addf %1456, %1464 : vector<8x8xf32>
    %c7_i32_474 = arith.constant 7 : i32
    %1466 = arith.addi %1188, %c7_i32_474 : i32
    %1467 = arith.index_cast %1466 : i32 to index
    %c0_475 = arith.constant 0 : index
    %c0_476 = arith.constant 0 : index
    %1468 = vector.load %arg3[%1467, %c0_475, %c0_476] : memref<48x8x8xf32, #tpu.memory_space<vmem>>, vector<1x8x8xf32>
    %1469 = vector.shape_cast %1468 : vector<1x8x8xf32> to vector<8x8xf32>
    %1470 = vector.extract_strided_slice %1187 {offsets = [7, 3, 0], sizes = [1, 1, 8], strides = [1, 1, 1]} : vector<8x4x8xf32> to vector<1x1x8xf32>
    %1471 = vector.shape_cast %1470 : vector<1x1x8xf32> to vector<1x8xf32>
    %1472 = vector.broadcast %1471 : vector<1x8xf32> to vector<8x8xf32>
    %1473 = arith.mulf %1469, %1472 : vector<8x8xf32>
    %1474 = arith.addf %1465, %1473 : vector<8x8xf32>
    %1475 = arith.mulf %1474, %1474 : vector<8x8xf32>
    %1476 = arith.addf %1404, %1475 : vector<8x8xf32>
    %c5_i32_477 = arith.constant 5 : i32
    %1477 = arith.index_cast %c5_i32_477 : i32 to index
    %c0_478 = arith.constant 0 : index
    %c0_479 = arith.constant 0 : index
    %c0_480 = arith.constant 0 : index
    %1478 = vector.load %arg4[%1477, %c0_478, %c0_479, %c0_480] : memref<6x8x4x8xf32, #tpu.memory_space<vmem>>, vector<1x8x4x8xf32>
    %1479 = vector.shape_cast %1478 : vector<1x8x4x8xf32> to vector<8x4x8xf32>
    %1480 = vector.shape_cast %0 : vector<4x8xf32> to vector<1x4x8xf32>
    %1481 = vector.broadcast %1480 : vector<1x4x8xf32> to vector<8x4x8xf32>
    %1482 = arith.mulf %1479, %1481 : vector<8x4x8xf32>
    %c8_i32_481 = arith.constant 8 : i32
    %1483 = arith.muli %c5_i32_477, %c8_i32_481 : i32
    %1484 = arith.index_cast %1483 : i32 to index
    %c0_482 = arith.constant 0 : index
    %c0_483 = arith.constant 0 : index
    %1485 = vector.load %arg3[%1484, %c0_482, %c0_483] : memref<48x8x8xf32, #tpu.memory_space<vmem>>, vector<1x8x8xf32>
    %1486 = vector.shape_cast %1485 : vector<1x8x8xf32> to vector<8x8xf32>
    %1487 = vector.extract_strided_slice %1482 {offsets = [0, 0, 0], sizes = [1, 1, 8], strides = [1, 1, 1]} : vector<8x4x8xf32> to vector<1x1x8xf32>
    %1488 = vector.shape_cast %1487 : vector<1x1x8xf32> to vector<1x8xf32>
    %1489 = vector.broadcast %1488 : vector<1x8xf32> to vector<8x8xf32>
    %1490 = arith.mulf %1486, %1489 : vector<8x8xf32>
    %c1_i32_484 = arith.constant 1 : i32
    %1491 = arith.addi %1483, %c1_i32_484 : i32
    %1492 = arith.index_cast %1491 : i32 to index
    %c0_485 = arith.constant 0 : index
    %c0_486 = arith.constant 0 : index
    %1493 = vector.load %arg3[%1492, %c0_485, %c0_486] : memref<48x8x8xf32, #tpu.memory_space<vmem>>, vector<1x8x8xf32>
    %1494 = vector.shape_cast %1493 : vector<1x8x8xf32> to vector<8x8xf32>
    %1495 = vector.extract_strided_slice %1482 {offsets = [1, 0, 0], sizes = [1, 1, 8], strides = [1, 1, 1]} : vector<8x4x8xf32> to vector<1x1x8xf32>
    %1496 = vector.shape_cast %1495 : vector<1x1x8xf32> to vector<1x8xf32>
    %1497 = vector.broadcast %1496 : vector<1x8xf32> to vector<8x8xf32>
    %1498 = arith.mulf %1494, %1497 : vector<8x8xf32>
    %1499 = arith.addf %1490, %1498 : vector<8x8xf32>
    %c2_i32_487 = arith.constant 2 : i32
    %1500 = arith.addi %1483, %c2_i32_487 : i32
    %1501 = arith.index_cast %1500 : i32 to index
    %c0_488 = arith.constant 0 : index
    %c0_489 = arith.constant 0 : index
    %1502 = vector.load %arg3[%1501, %c0_488, %c0_489] : memref<48x8x8xf32, #tpu.memory_space<vmem>>, vector<1x8x8xf32>
    %1503 = vector.shape_cast %1502 : vector<1x8x8xf32> to vector<8x8xf32>
    %1504 = vector.extract_strided_slice %1482 {offsets = [2, 0, 0], sizes = [1, 1, 8], strides = [1, 1, 1]} : vector<8x4x8xf32> to vector<1x1x8xf32>
    %1505 = vector.shape_cast %1504 : vector<1x1x8xf32> to vector<1x8xf32>
    %1506 = vector.broadcast %1505 : vector<1x8xf32> to vector<8x8xf32>
    %1507 = arith.mulf %1503, %1506 : vector<8x8xf32>
    %1508 = arith.addf %1499, %1507 : vector<8x8xf32>
    %c3_i32_490 = arith.constant 3 : i32
    %1509 = arith.addi %1483, %c3_i32_490 : i32
    %1510 = arith.index_cast %1509 : i32 to index
    %c0_491 = arith.constant 0 : index
    %c0_492 = arith.constant 0 : index
    %1511 = vector.load %arg3[%1510, %c0_491, %c0_492] : memref<48x8x8xf32, #tpu.memory_space<vmem>>, vector<1x8x8xf32>
    %1512 = vector.shape_cast %1511 : vector<1x8x8xf32> to vector<8x8xf32>
    %1513 = vector.extract_strided_slice %1482 {offsets = [3, 0, 0], sizes = [1, 1, 8], strides = [1, 1, 1]} : vector<8x4x8xf32> to vector<1x1x8xf32>
    %1514 = vector.shape_cast %1513 : vector<1x1x8xf32> to vector<1x8xf32>
    %1515 = vector.broadcast %1514 : vector<1x8xf32> to vector<8x8xf32>
    %1516 = arith.mulf %1512, %1515 : vector<8x8xf32>
    %1517 = arith.addf %1508, %1516 : vector<8x8xf32>
    %c4_i32_493 = arith.constant 4 : i32
    %1518 = arith.addi %1483, %c4_i32_493 : i32
    %1519 = arith.index_cast %1518 : i32 to index
    %c0_494 = arith.constant 0 : index
    %c0_495 = arith.constant 0 : index
    %1520 = vector.load %arg3[%1519, %c0_494, %c0_495] : memref<48x8x8xf32, #tpu.memory_space<vmem>>, vector<1x8x8xf32>
    %1521 = vector.shape_cast %1520 : vector<1x8x8xf32> to vector<8x8xf32>
    %1522 = vector.extract_strided_slice %1482 {offsets = [4, 0, 0], sizes = [1, 1, 8], strides = [1, 1, 1]} : vector<8x4x8xf32> to vector<1x1x8xf32>
    %1523 = vector.shape_cast %1522 : vector<1x1x8xf32> to vector<1x8xf32>
    %1524 = vector.broadcast %1523 : vector<1x8xf32> to vector<8x8xf32>
    %1525 = arith.mulf %1521, %1524 : vector<8x8xf32>
    %1526 = arith.addf %1517, %1525 : vector<8x8xf32>
    %c5_i32_496 = arith.constant 5 : i32
    %1527 = arith.addi %1483, %c5_i32_496 : i32
    %1528 = arith.index_cast %1527 : i32 to index
    %c0_497 = arith.constant 0 : index
    %c0_498 = arith.constant 0 : index
    %1529 = vector.load %arg3[%1528, %c0_497, %c0_498] : memref<48x8x8xf32, #tpu.memory_space<vmem>>, vector<1x8x8xf32>
    %1530 = vector.shape_cast %1529 : vector<1x8x8xf32> to vector<8x8xf32>
    %1531 = vector.extract_strided_slice %1482 {offsets = [5, 0, 0], sizes = [1, 1, 8], strides = [1, 1, 1]} : vector<8x4x8xf32> to vector<1x1x8xf32>
    %1532 = vector.shape_cast %1531 : vector<1x1x8xf32> to vector<1x8xf32>
    %1533 = vector.broadcast %1532 : vector<1x8xf32> to vector<8x8xf32>
    %1534 = arith.mulf %1530, %1533 : vector<8x8xf32>
    %1535 = arith.addf %1526, %1534 : vector<8x8xf32>
    %c6_i32_499 = arith.constant 6 : i32
    %1536 = arith.addi %1483, %c6_i32_499 : i32
    %1537 = arith.index_cast %1536 : i32 to index
    %c0_500 = arith.constant 0 : index
    %c0_501 = arith.constant 0 : index
    %1538 = vector.load %arg3[%1537, %c0_500, %c0_501] : memref<48x8x8xf32, #tpu.memory_space<vmem>>, vector<1x8x8xf32>
    %1539 = vector.shape_cast %1538 : vector<1x8x8xf32> to vector<8x8xf32>
    %1540 = vector.extract_strided_slice %1482 {offsets = [6, 0, 0], sizes = [1, 1, 8], strides = [1, 1, 1]} : vector<8x4x8xf32> to vector<1x1x8xf32>
    %1541 = vector.shape_cast %1540 : vector<1x1x8xf32> to vector<1x8xf32>
    %1542 = vector.broadcast %1541 : vector<1x8xf32> to vector<8x8xf32>
    %1543 = arith.mulf %1539, %1542 : vector<8x8xf32>
    %1544 = arith.addf %1535, %1543 : vector<8x8xf32>
    %c7_i32_502 = arith.constant 7 : i32
    %1545 = arith.addi %1483, %c7_i32_502 : i32
    %1546 = arith.index_cast %1545 : i32 to index
    %c0_503 = arith.constant 0 : index
    %c0_504 = arith.constant 0 : index
    %1547 = vector.load %arg3[%1546, %c0_503, %c0_504] : memref<48x8x8xf32, #tpu.memory_space<vmem>>, vector<1x8x8xf32>
    %1548 = vector.shape_cast %1547 : vector<1x8x8xf32> to vector<8x8xf32>
    %1549 = vector.extract_strided_slice %1482 {offsets = [7, 0, 0], sizes = [1, 1, 8], strides = [1, 1, 1]} : vector<8x4x8xf32> to vector<1x1x8xf32>
    %1550 = vector.shape_cast %1549 : vector<1x1x8xf32> to vector<1x8xf32>
    %1551 = vector.broadcast %1550 : vector<1x8xf32> to vector<8x8xf32>
    %1552 = arith.mulf %1548, %1551 : vector<8x8xf32>
    %1553 = arith.addf %1544, %1552 : vector<8x8xf32>
    %1554 = arith.mulf %1553, %1553 : vector<8x8xf32>
    %1555 = arith.addf %1476, %1554 : vector<8x8xf32>
    %1556 = arith.index_cast %1483 : i32 to index
    %c0_505 = arith.constant 0 : index
    %c0_506 = arith.constant 0 : index
    %1557 = vector.load %arg3[%1556, %c0_505, %c0_506] : memref<48x8x8xf32, #tpu.memory_space<vmem>>, vector<1x8x8xf32>
    %1558 = vector.shape_cast %1557 : vector<1x8x8xf32> to vector<8x8xf32>
    %1559 = vector.extract_strided_slice %1482 {offsets = [0, 1, 0], sizes = [1, 1, 8], strides = [1, 1, 1]} : vector<8x4x8xf32> to vector<1x1x8xf32>
    %1560 = vector.shape_cast %1559 : vector<1x1x8xf32> to vector<1x8xf32>
    %1561 = vector.broadcast %1560 : vector<1x8xf32> to vector<8x8xf32>
    %1562 = arith.mulf %1558, %1561 : vector<8x8xf32>
    %c1_i32_507 = arith.constant 1 : i32
    %1563 = arith.addi %1483, %c1_i32_507 : i32
    %1564 = arith.index_cast %1563 : i32 to index
    %c0_508 = arith.constant 0 : index
    %c0_509 = arith.constant 0 : index
    %1565 = vector.load %arg3[%1564, %c0_508, %c0_509] : memref<48x8x8xf32, #tpu.memory_space<vmem>>, vector<1x8x8xf32>
    %1566 = vector.shape_cast %1565 : vector<1x8x8xf32> to vector<8x8xf32>
    %1567 = vector.extract_strided_slice %1482 {offsets = [1, 1, 0], sizes = [1, 1, 8], strides = [1, 1, 1]} : vector<8x4x8xf32> to vector<1x1x8xf32>
    %1568 = vector.shape_cast %1567 : vector<1x1x8xf32> to vector<1x8xf32>
    %1569 = vector.broadcast %1568 : vector<1x8xf32> to vector<8x8xf32>
    %1570 = arith.mulf %1566, %1569 : vector<8x8xf32>
    %1571 = arith.addf %1562, %1570 : vector<8x8xf32>
    %c2_i32_510 = arith.constant 2 : i32
    %1572 = arith.addi %1483, %c2_i32_510 : i32
    %1573 = arith.index_cast %1572 : i32 to index
    %c0_511 = arith.constant 0 : index
    %c0_512 = arith.constant 0 : index
    %1574 = vector.load %arg3[%1573, %c0_511, %c0_512] : memref<48x8x8xf32, #tpu.memory_space<vmem>>, vector<1x8x8xf32>
    %1575 = vector.shape_cast %1574 : vector<1x8x8xf32> to vector<8x8xf32>
    %1576 = vector.extract_strided_slice %1482 {offsets = [2, 1, 0], sizes = [1, 1, 8], strides = [1, 1, 1]} : vector<8x4x8xf32> to vector<1x1x8xf32>
    %1577 = vector.shape_cast %1576 : vector<1x1x8xf32> to vector<1x8xf32>
    %1578 = vector.broadcast %1577 : vector<1x8xf32> to vector<8x8xf32>
    %1579 = arith.mulf %1575, %1578 : vector<8x8xf32>
    %1580 = arith.addf %1571, %1579 : vector<8x8xf32>
    %c3_i32_513 = arith.constant 3 : i32
    %1581 = arith.addi %1483, %c3_i32_513 : i32
    %1582 = arith.index_cast %1581 : i32 to index
    %c0_514 = arith.constant 0 : index
    %c0_515 = arith.constant 0 : index
    %1583 = vector.load %arg3[%1582, %c0_514, %c0_515] : memref<48x8x8xf32, #tpu.memory_space<vmem>>, vector<1x8x8xf32>
    %1584 = vector.shape_cast %1583 : vector<1x8x8xf32> to vector<8x8xf32>
    %1585 = vector.extract_strided_slice %1482 {offsets = [3, 1, 0], sizes = [1, 1, 8], strides = [1, 1, 1]} : vector<8x4x8xf32> to vector<1x1x8xf32>
    %1586 = vector.shape_cast %1585 : vector<1x1x8xf32> to vector<1x8xf32>
    %1587 = vector.broadcast %1586 : vector<1x8xf32> to vector<8x8xf32>
    %1588 = arith.mulf %1584, %1587 : vector<8x8xf32>
    %1589 = arith.addf %1580, %1588 : vector<8x8xf32>
    %c4_i32_516 = arith.constant 4 : i32
    %1590 = arith.addi %1483, %c4_i32_516 : i32
    %1591 = arith.index_cast %1590 : i32 to index
    %c0_517 = arith.constant 0 : index
    %c0_518 = arith.constant 0 : index
    %1592 = vector.load %arg3[%1591, %c0_517, %c0_518] : memref<48x8x8xf32, #tpu.memory_space<vmem>>, vector<1x8x8xf32>
    %1593 = vector.shape_cast %1592 : vector<1x8x8xf32> to vector<8x8xf32>
    %1594 = vector.extract_strided_slice %1482 {offsets = [4, 1, 0], sizes = [1, 1, 8], strides = [1, 1, 1]} : vector<8x4x8xf32> to vector<1x1x8xf32>
    %1595 = vector.shape_cast %1594 : vector<1x1x8xf32> to vector<1x8xf32>
    %1596 = vector.broadcast %1595 : vector<1x8xf32> to vector<8x8xf32>
    %1597 = arith.mulf %1593, %1596 : vector<8x8xf32>
    %1598 = arith.addf %1589, %1597 : vector<8x8xf32>
    %c5_i32_519 = arith.constant 5 : i32
    %1599 = arith.addi %1483, %c5_i32_519 : i32
    %1600 = arith.index_cast %1599 : i32 to index
    %c0_520 = arith.constant 0 : index
    %c0_521 = arith.constant 0 : index
    %1601 = vector.load %arg3[%1600, %c0_520, %c0_521] : memref<48x8x8xf32, #tpu.memory_space<vmem>>, vector<1x8x8xf32>
    %1602 = vector.shape_cast %1601 : vector<1x8x8xf32> to vector<8x8xf32>
    %1603 = vector.extract_strided_slice %1482 {offsets = [5, 1, 0], sizes = [1, 1, 8], strides = [1, 1, 1]} : vector<8x4x8xf32> to vector<1x1x8xf32>
    %1604 = vector.shape_cast %1603 : vector<1x1x8xf32> to vector<1x8xf32>
    %1605 = vector.broadcast %1604 : vector<1x8xf32> to vector<8x8xf32>
    %1606 = arith.mulf %1602, %1605 : vector<8x8xf32>
    %1607 = arith.addf %1598, %1606 : vector<8x8xf32>
    %c6_i32_522 = arith.constant 6 : i32
    %1608 = arith.addi %1483, %c6_i32_522 : i32
    %1609 = arith.index_cast %1608 : i32 to index
    %c0_523 = arith.constant 0 : index
    %c0_524 = arith.constant 0 : index
    %1610 = vector.load %arg3[%1609, %c0_523, %c0_524] : memref<48x8x8xf32, #tpu.memory_space<vmem>>, vector<1x8x8xf32>
    %1611 = vector.shape_cast %1610 : vector<1x8x8xf32> to vector<8x8xf32>
    %1612 = vector.extract_strided_slice %1482 {offsets = [6, 1, 0], sizes = [1, 1, 8], strides = [1, 1, 1]} : vector<8x4x8xf32> to vector<1x1x8xf32>
    %1613 = vector.shape_cast %1612 : vector<1x1x8xf32> to vector<1x8xf32>
    %1614 = vector.broadcast %1613 : vector<1x8xf32> to vector<8x8xf32>
    %1615 = arith.mulf %1611, %1614 : vector<8x8xf32>
    %1616 = arith.addf %1607, %1615 : vector<8x8xf32>
    %c7_i32_525 = arith.constant 7 : i32
    %1617 = arith.addi %1483, %c7_i32_525 : i32
    %1618 = arith.index_cast %1617 : i32 to index
    %c0_526 = arith.constant 0 : index
    %c0_527 = arith.constant 0 : index
    %1619 = vector.load %arg3[%1618, %c0_526, %c0_527] : memref<48x8x8xf32, #tpu.memory_space<vmem>>, vector<1x8x8xf32>
    %1620 = vector.shape_cast %1619 : vector<1x8x8xf32> to vector<8x8xf32>
    %1621 = vector.extract_strided_slice %1482 {offsets = [7, 1, 0], sizes = [1, 1, 8], strides = [1, 1, 1]} : vector<8x4x8xf32> to vector<1x1x8xf32>
    %1622 = vector.shape_cast %1621 : vector<1x1x8xf32> to vector<1x8xf32>
    %1623 = vector.broadcast %1622 : vector<1x8xf32> to vector<8x8xf32>
    %1624 = arith.mulf %1620, %1623 : vector<8x8xf32>
    %1625 = arith.addf %1616, %1624 : vector<8x8xf32>
    %1626 = arith.mulf %1625, %1625 : vector<8x8xf32>
    %1627 = arith.addf %1555, %1626 : vector<8x8xf32>
    %1628 = arith.index_cast %1483 : i32 to index
    %c0_528 = arith.constant 0 : index
    %c0_529 = arith.constant 0 : index
    %1629 = vector.load %arg3[%1628, %c0_528, %c0_529] : memref<48x8x8xf32, #tpu.memory_space<vmem>>, vector<1x8x8xf32>
    %1630 = vector.shape_cast %1629 : vector<1x8x8xf32> to vector<8x8xf32>
    %1631 = vector.extract_strided_slice %1482 {offsets = [0, 2, 0], sizes = [1, 1, 8], strides = [1, 1, 1]} : vector<8x4x8xf32> to vector<1x1x8xf32>
    %1632 = vector.shape_cast %1631 : vector<1x1x8xf32> to vector<1x8xf32>
    %1633 = vector.broadcast %1632 : vector<1x8xf32> to vector<8x8xf32>
    %1634 = arith.mulf %1630, %1633 : vector<8x8xf32>
    %c1_i32_530 = arith.constant 1 : i32
    %1635 = arith.addi %1483, %c1_i32_530 : i32
    %1636 = arith.index_cast %1635 : i32 to index
    %c0_531 = arith.constant 0 : index
    %c0_532 = arith.constant 0 : index
    %1637 = vector.load %arg3[%1636, %c0_531, %c0_532] : memref<48x8x8xf32, #tpu.memory_space<vmem>>, vector<1x8x8xf32>
    %1638 = vector.shape_cast %1637 : vector<1x8x8xf32> to vector<8x8xf32>
    %1639 = vector.extract_strided_slice %1482 {offsets = [1, 2, 0], sizes = [1, 1, 8], strides = [1, 1, 1]} : vector<8x4x8xf32> to vector<1x1x8xf32>
    %1640 = vector.shape_cast %1639 : vector<1x1x8xf32> to vector<1x8xf32>
    %1641 = vector.broadcast %1640 : vector<1x8xf32> to vector<8x8xf32>
    %1642 = arith.mulf %1638, %1641 : vector<8x8xf32>
    %1643 = arith.addf %1634, %1642 : vector<8x8xf32>
    %c2_i32_533 = arith.constant 2 : i32
    %1644 = arith.addi %1483, %c2_i32_533 : i32
    %1645 = arith.index_cast %1644 : i32 to index
    %c0_534 = arith.constant 0 : index
    %c0_535 = arith.constant 0 : index
    %1646 = vector.load %arg3[%1645, %c0_534, %c0_535] : memref<48x8x8xf32, #tpu.memory_space<vmem>>, vector<1x8x8xf32>
    %1647 = vector.shape_cast %1646 : vector<1x8x8xf32> to vector<8x8xf32>
    %1648 = vector.extract_strided_slice %1482 {offsets = [2, 2, 0], sizes = [1, 1, 8], strides = [1, 1, 1]} : vector<8x4x8xf32> to vector<1x1x8xf32>
    %1649 = vector.shape_cast %1648 : vector<1x1x8xf32> to vector<1x8xf32>
    %1650 = vector.broadcast %1649 : vector<1x8xf32> to vector<8x8xf32>
    %1651 = arith.mulf %1647, %1650 : vector<8x8xf32>
    %1652 = arith.addf %1643, %1651 : vector<8x8xf32>
    %c3_i32_536 = arith.constant 3 : i32
    %1653 = arith.addi %1483, %c3_i32_536 : i32
    %1654 = arith.index_cast %1653 : i32 to index
    %c0_537 = arith.constant 0 : index
    %c0_538 = arith.constant 0 : index
    %1655 = vector.load %arg3[%1654, %c0_537, %c0_538] : memref<48x8x8xf32, #tpu.memory_space<vmem>>, vector<1x8x8xf32>
    %1656 = vector.shape_cast %1655 : vector<1x8x8xf32> to vector<8x8xf32>
    %1657 = vector.extract_strided_slice %1482 {offsets = [3, 2, 0], sizes = [1, 1, 8], strides = [1, 1, 1]} : vector<8x4x8xf32> to vector<1x1x8xf32>
    %1658 = vector.shape_cast %1657 : vector<1x1x8xf32> to vector<1x8xf32>
    %1659 = vector.broadcast %1658 : vector<1x8xf32> to vector<8x8xf32>
    %1660 = arith.mulf %1656, %1659 : vector<8x8xf32>
    %1661 = arith.addf %1652, %1660 : vector<8x8xf32>
    %c4_i32_539 = arith.constant 4 : i32
    %1662 = arith.addi %1483, %c4_i32_539 : i32
    %1663 = arith.index_cast %1662 : i32 to index
    %c0_540 = arith.constant 0 : index
    %c0_541 = arith.constant 0 : index
    %1664 = vector.load %arg3[%1663, %c0_540, %c0_541] : memref<48x8x8xf32, #tpu.memory_space<vmem>>, vector<1x8x8xf32>
    %1665 = vector.shape_cast %1664 : vector<1x8x8xf32> to vector<8x8xf32>
    %1666 = vector.extract_strided_slice %1482 {offsets = [4, 2, 0], sizes = [1, 1, 8], strides = [1, 1, 1]} : vector<8x4x8xf32> to vector<1x1x8xf32>
    %1667 = vector.shape_cast %1666 : vector<1x1x8xf32> to vector<1x8xf32>
    %1668 = vector.broadcast %1667 : vector<1x8xf32> to vector<8x8xf32>
    %1669 = arith.mulf %1665, %1668 : vector<8x8xf32>
    %1670 = arith.addf %1661, %1669 : vector<8x8xf32>
    %c5_i32_542 = arith.constant 5 : i32
    %1671 = arith.addi %1483, %c5_i32_542 : i32
    %1672 = arith.index_cast %1671 : i32 to index
    %c0_543 = arith.constant 0 : index
    %c0_544 = arith.constant 0 : index
    %1673 = vector.load %arg3[%1672, %c0_543, %c0_544] : memref<48x8x8xf32, #tpu.memory_space<vmem>>, vector<1x8x8xf32>
    %1674 = vector.shape_cast %1673 : vector<1x8x8xf32> to vector<8x8xf32>
    %1675 = vector.extract_strided_slice %1482 {offsets = [5, 2, 0], sizes = [1, 1, 8], strides = [1, 1, 1]} : vector<8x4x8xf32> to vector<1x1x8xf32>
    %1676 = vector.shape_cast %1675 : vector<1x1x8xf32> to vector<1x8xf32>
    %1677 = vector.broadcast %1676 : vector<1x8xf32> to vector<8x8xf32>
    %1678 = arith.mulf %1674, %1677 : vector<8x8xf32>
    %1679 = arith.addf %1670, %1678 : vector<8x8xf32>
    %c6_i32_545 = arith.constant 6 : i32
    %1680 = arith.addi %1483, %c6_i32_545 : i32
    %1681 = arith.index_cast %1680 : i32 to index
    %c0_546 = arith.constant 0 : index
    %c0_547 = arith.constant 0 : index
    %1682 = vector.load %arg3[%1681, %c0_546, %c0_547] : memref<48x8x8xf32, #tpu.memory_space<vmem>>, vector<1x8x8xf32>
    %1683 = vector.shape_cast %1682 : vector<1x8x8xf32> to vector<8x8xf32>
    %1684 = vector.extract_strided_slice %1482 {offsets = [6, 2, 0], sizes = [1, 1, 8], strides = [1, 1, 1]} : vector<8x4x8xf32> to vector<1x1x8xf32>
    %1685 = vector.shape_cast %1684 : vector<1x1x8xf32> to vector<1x8xf32>
    %1686 = vector.broadcast %1685 : vector<1x8xf32> to vector<8x8xf32>
    %1687 = arith.mulf %1683, %1686 : vector<8x8xf32>
    %1688 = arith.addf %1679, %1687 : vector<8x8xf32>
    %c7_i32_548 = arith.constant 7 : i32
    %1689 = arith.addi %1483, %c7_i32_548 : i32
    %1690 = arith.index_cast %1689 : i32 to index
    %c0_549 = arith.constant 0 : index
    %c0_550 = arith.constant 0 : index
    %1691 = vector.load %arg3[%1690, %c0_549, %c0_550] : memref<48x8x8xf32, #tpu.memory_space<vmem>>, vector<1x8x8xf32>
    %1692 = vector.shape_cast %1691 : vector<1x8x8xf32> to vector<8x8xf32>
    %1693 = vector.extract_strided_slice %1482 {offsets = [7, 2, 0], sizes = [1, 1, 8], strides = [1, 1, 1]} : vector<8x4x8xf32> to vector<1x1x8xf32>
    %1694 = vector.shape_cast %1693 : vector<1x1x8xf32> to vector<1x8xf32>
    %1695 = vector.broadcast %1694 : vector<1x8xf32> to vector<8x8xf32>
    %1696 = arith.mulf %1692, %1695 : vector<8x8xf32>
    %1697 = arith.addf %1688, %1696 : vector<8x8xf32>
    %1698 = arith.mulf %1697, %1697 : vector<8x8xf32>
    %1699 = arith.addf %1627, %1698 : vector<8x8xf32>
    %1700 = arith.index_cast %1483 : i32 to index
    %c0_551 = arith.constant 0 : index
    %c0_552 = arith.constant 0 : index
    %1701 = vector.load %arg3[%1700, %c0_551, %c0_552] : memref<48x8x8xf32, #tpu.memory_space<vmem>>, vector<1x8x8xf32>
    %1702 = vector.shape_cast %1701 : vector<1x8x8xf32> to vector<8x8xf32>
    %1703 = vector.extract_strided_slice %1482 {offsets = [0, 3, 0], sizes = [1, 1, 8], strides = [1, 1, 1]} : vector<8x4x8xf32> to vector<1x1x8xf32>
    %1704 = vector.shape_cast %1703 : vector<1x1x8xf32> to vector<1x8xf32>
    %1705 = vector.broadcast %1704 : vector<1x8xf32> to vector<8x8xf32>
    %1706 = arith.mulf %1702, %1705 : vector<8x8xf32>
    %c1_i32_553 = arith.constant 1 : i32
    %1707 = arith.addi %1483, %c1_i32_553 : i32
    %1708 = arith.index_cast %1707 : i32 to index
    %c0_554 = arith.constant 0 : index
    %c0_555 = arith.constant 0 : index
    %1709 = vector.load %arg3[%1708, %c0_554, %c0_555] : memref<48x8x8xf32, #tpu.memory_space<vmem>>, vector<1x8x8xf32>
    %1710 = vector.shape_cast %1709 : vector<1x8x8xf32> to vector<8x8xf32>
    %1711 = vector.extract_strided_slice %1482 {offsets = [1, 3, 0], sizes = [1, 1, 8], strides = [1, 1, 1]} : vector<8x4x8xf32> to vector<1x1x8xf32>
    %1712 = vector.shape_cast %1711 : vector<1x1x8xf32> to vector<1x8xf32>
    %1713 = vector.broadcast %1712 : vector<1x8xf32> to vector<8x8xf32>
    %1714 = arith.mulf %1710, %1713 : vector<8x8xf32>
    %1715 = arith.addf %1706, %1714 : vector<8x8xf32>
    %c2_i32_556 = arith.constant 2 : i32
    %1716 = arith.addi %1483, %c2_i32_556 : i32
    %1717 = arith.index_cast %1716 : i32 to index
    %c0_557 = arith.constant 0 : index
    %c0_558 = arith.constant 0 : index
    %1718 = vector.load %arg3[%1717, %c0_557, %c0_558] : memref<48x8x8xf32, #tpu.memory_space<vmem>>, vector<1x8x8xf32>
    %1719 = vector.shape_cast %1718 : vector<1x8x8xf32> to vector<8x8xf32>
    %1720 = vector.extract_strided_slice %1482 {offsets = [2, 3, 0], sizes = [1, 1, 8], strides = [1, 1, 1]} : vector<8x4x8xf32> to vector<1x1x8xf32>
    %1721 = vector.shape_cast %1720 : vector<1x1x8xf32> to vector<1x8xf32>
    %1722 = vector.broadcast %1721 : vector<1x8xf32> to vector<8x8xf32>
    %1723 = arith.mulf %1719, %1722 : vector<8x8xf32>
    %1724 = arith.addf %1715, %1723 : vector<8x8xf32>
    %c3_i32_559 = arith.constant 3 : i32
    %1725 = arith.addi %1483, %c3_i32_559 : i32
    %1726 = arith.index_cast %1725 : i32 to index
    %c0_560 = arith.constant 0 : index
    %c0_561 = arith.constant 0 : index
    %1727 = vector.load %arg3[%1726, %c0_560, %c0_561] : memref<48x8x8xf32, #tpu.memory_space<vmem>>, vector<1x8x8xf32>
    %1728 = vector.shape_cast %1727 : vector<1x8x8xf32> to vector<8x8xf32>
    %1729 = vector.extract_strided_slice %1482 {offsets = [3, 3, 0], sizes = [1, 1, 8], strides = [1, 1, 1]} : vector<8x4x8xf32> to vector<1x1x8xf32>
    %1730 = vector.shape_cast %1729 : vector<1x1x8xf32> to vector<1x8xf32>
    %1731 = vector.broadcast %1730 : vector<1x8xf32> to vector<8x8xf32>
    %1732 = arith.mulf %1728, %1731 : vector<8x8xf32>
    %1733 = arith.addf %1724, %1732 : vector<8x8xf32>
    %c4_i32_562 = arith.constant 4 : i32
    %1734 = arith.addi %1483, %c4_i32_562 : i32
    %1735 = arith.index_cast %1734 : i32 to index
    %c0_563 = arith.constant 0 : index
    %c0_564 = arith.constant 0 : index
    %1736 = vector.load %arg3[%1735, %c0_563, %c0_564] : memref<48x8x8xf32, #tpu.memory_space<vmem>>, vector<1x8x8xf32>
    %1737 = vector.shape_cast %1736 : vector<1x8x8xf32> to vector<8x8xf32>
    %1738 = vector.extract_strided_slice %1482 {offsets = [4, 3, 0], sizes = [1, 1, 8], strides = [1, 1, 1]} : vector<8x4x8xf32> to vector<1x1x8xf32>
    %1739 = vector.shape_cast %1738 : vector<1x1x8xf32> to vector<1x8xf32>
    %1740 = vector.broadcast %1739 : vector<1x8xf32> to vector<8x8xf32>
    %1741 = arith.mulf %1737, %1740 : vector<8x8xf32>
    %1742 = arith.addf %1733, %1741 : vector<8x8xf32>
    %c5_i32_565 = arith.constant 5 : i32
    %1743 = arith.addi %1483, %c5_i32_565 : i32
    %1744 = arith.index_cast %1743 : i32 to index
    %c0_566 = arith.constant 0 : index
    %c0_567 = arith.constant 0 : index
    %1745 = vector.load %arg3[%1744, %c0_566, %c0_567] : memref<48x8x8xf32, #tpu.memory_space<vmem>>, vector<1x8x8xf32>
    %1746 = vector.shape_cast %1745 : vector<1x8x8xf32> to vector<8x8xf32>
    %1747 = vector.extract_strided_slice %1482 {offsets = [5, 3, 0], sizes = [1, 1, 8], strides = [1, 1, 1]} : vector<8x4x8xf32> to vector<1x1x8xf32>
    %1748 = vector.shape_cast %1747 : vector<1x1x8xf32> to vector<1x8xf32>
    %1749 = vector.broadcast %1748 : vector<1x8xf32> to vector<8x8xf32>
    %1750 = arith.mulf %1746, %1749 : vector<8x8xf32>
    %1751 = arith.addf %1742, %1750 : vector<8x8xf32>
    %c6_i32_568 = arith.constant 6 : i32
    %1752 = arith.addi %1483, %c6_i32_568 : i32
    %1753 = arith.index_cast %1752 : i32 to index
    %c0_569 = arith.constant 0 : index
    %c0_570 = arith.constant 0 : index
    %1754 = vector.load %arg3[%1753, %c0_569, %c0_570] : memref<48x8x8xf32, #tpu.memory_space<vmem>>, vector<1x8x8xf32>
    %1755 = vector.shape_cast %1754 : vector<1x8x8xf32> to vector<8x8xf32>
    %1756 = vector.extract_strided_slice %1482 {offsets = [6, 3, 0], sizes = [1, 1, 8], strides = [1, 1, 1]} : vector<8x4x8xf32> to vector<1x1x8xf32>
    %1757 = vector.shape_cast %1756 : vector<1x1x8xf32> to vector<1x8xf32>
    %1758 = vector.broadcast %1757 : vector<1x8xf32> to vector<8x8xf32>
    %1759 = arith.mulf %1755, %1758 : vector<8x8xf32>
    %1760 = arith.addf %1751, %1759 : vector<8x8xf32>
    %c7_i32_571 = arith.constant 7 : i32
    %1761 = arith.addi %1483, %c7_i32_571 : i32
    %1762 = arith.index_cast %1761 : i32 to index
    %c0_572 = arith.constant 0 : index
    %c0_573 = arith.constant 0 : index
    %1763 = vector.load %arg3[%1762, %c0_572, %c0_573] : memref<48x8x8xf32, #tpu.memory_space<vmem>>, vector<1x8x8xf32>
    %1764 = vector.shape_cast %1763 : vector<1x8x8xf32> to vector<8x8xf32>
    %1765 = vector.extract_strided_slice %1482 {offsets = [7, 3, 0], sizes = [1, 1, 8], strides = [1, 1, 1]} : vector<8x4x8xf32> to vector<1x1x8xf32>
    %1766 = vector.shape_cast %1765 : vector<1x1x8xf32> to vector<1x8xf32>
    %1767 = vector.broadcast %1766 : vector<1x8xf32> to vector<8x8xf32>
    %1768 = arith.mulf %1764, %1767 : vector<8x8xf32>
    %1769 = arith.addf %1760, %1768 : vector<8x8xf32>
    %1770 = arith.mulf %1769, %1769 : vector<8x8xf32>
    %1771 = arith.addf %1699, %1770 : vector<8x8xf32>
    %c6_i32_574 = arith.constant 6 : i32
    %cst_575 = arith.constant 1.000000e+00 : f32
    %1772 = vector.broadcast %cst_575 : f32 to vector<8x8xf32>
    %1773 = arith.mulf %1771, %1772 : vector<8x8xf32>
    %c0_576 = arith.constant 0 : index
    %c0_577 = arith.constant 0 : index
    %1774 = vector.load %arg5[%c0_576, %c0_577] : memref<8x8xf32, #tpu.memory_space<vmem>>, vector<8x8xf32>
    tpu.vector_store %arg5[%c0_576, %c0_577], %1773 {strides = array<i32>} : memref<8x8xf32, #tpu.memory_space<vmem>>, vector<8x8xf32>,
    return
  }
  func.func @transform_0(%arg0: i32, %arg1: i32) -> (i32, i32) {
    %c0_i32 = arith.constant 0 : i32
    %c0_i32_0 = arith.constant 0 : i32
    return %c0_i32, %arg0 : i32, i32
  }
  func.func @transform_1(%arg0: i32, %arg1: i32) -> (i32, i32, i32) {
    %c0_i32 = arith.constant 0 : i32
    %c0_i32_0 = arith.constant 0 : i32
    return %c0_i32, %arg1, %arg0 : i32, i32, i32
  }
  func.func @transform_2(%arg0: i32, %arg1: i32) -> (i32, i32, i32, i32) {
    %c0_i32 = arith.constant 0 : i32
    %c0_i32_0 = arith.constant 0 : i32
    %c0_i32_1 = arith.constant 0 : i32
    %c0_i32_2 = arith.constant 0 : i32
    return %c0_i32, %c0_i32_0, %c0_i32_1, %arg0 : i32, i32, i32, i32
  }
  func.func @transform_3(%arg0: i32, %arg1: i32) -> (i32, i32) {
    %c0_i32 = arith.constant 0 : i32
    return %arg1, %arg0 : i32, i32
  }
}

</mosaic_0001>

<bundles_post_ra>
// kernel: _phonon_forward.1
= control target key start
LH: loop header
LB: loop body
LE: loop exit
PB: predicated region body
PF: predicated region fallthrough
CT: control target
= control target key end

     0   :  { %v32_v0 = vlaneseq  ;;  %vm1387_vm0 = vcmask 64512   ;;  %s2616_s0 = inlined_call_operand.vmem [shape: f32[4,8], index: 0, kind: input, shape index: {}]   ;;  %s2617_s2 = inlined_call_operand.vmem [shape: f32[6,8,4,8], index: 2, kind: input, shape index: {}]   ;;  %s2618_s1 = inlined_call_operand.vmem [shape: f32[48,8,8], index: 1, kind: input, shape index: {}]   ;;  %s2619_s3 = inlined_call_operand.vmem [shape: f32[8,8], index: 3, kind: output, shape index: {}]  }
   0x1   :  { %v1504_v1 = vld [vmem:[%s2616_s0] sm:$0xf]  ;;  %v16_v3 = vld [vmem:[%s2617_s2 + $0x4] sm:$0xf]  ;;  %v17_v4 = vld [vmem:[%s2617_s2 + $0x8] sm:$0xf] }
   0x2   :  { %v15_v2 = vld [vmem:[%s2617_s2] sm:$0xf]  ;;  %v18_v5 = vld [vmem:[%s2617_s2 + $0xc] sm:$0xf]  ;;  %v19_v6 = vld [vmem:[%s2617_s2 + $0x10] sm:$0xf]  ;;  %v1534_v11 = vmul.f32 %v16_v3, %v1504_v1  ;;  %v1537_v12 = vmul.f32 %v17_v4, %v1504_v1 }
   0x3   :  { %v20_v7 = vld [vmem:[%s2617_s2 + $0x14] sm:$0xf]  ;;  %v21_v8 = vld [vmem:[%s2617_s2 + $0x18] sm:$0xf]  ;;  %v22_v9 = vld [vmem:[%s2617_s2 + $0x1c] sm:$0xf]  ;;  %v1531_v10 = vmul.f32 %v15_v2, %v1504_v1  ;;  %v1540_v13 = vmul.f32 %v18_v5, %v1504_v1  ;;  %v1543_v15 = vmul.f32 %v19_v6, %v1504_v1 }
   0x4   :  { %v33_v14 = vshrl.u32 %v32_v0, 7  ;;  %v1546_v16 = vmul.f32 %v20_v7, %v1504_v1  ;;  %v1549_v17 = vmul.f32 %v21_v8, %v1504_v1  ;;  %v1552_v18 = vmul.f32 %v22_v9, %v1504_v1  ;;  %v1557_v19 = vld [vmem:[%s2618_s1] sm:$0xff]  ;;  %v1564_v21 = vld [vmem:[%s2618_s1 + $0x8] sm:$0xff]  ;;  %v1569_v22 = vld [vmem:[%s2618_s1 + $0x10] sm:$0xff] }
   0x5   :  { %v1574_v23 = vld [vmem:[%s2618_s1 + $0x18] sm:$0xff]  ;;  %v1579_v24 = vld [vmem:[%s2618_s1 + $0x20] sm:$0xff]  ;;  %v1598_v32 = vld [vmem:[%s2618_s1 + $0x28] sm:$0xff] }
   0x6   :  { %v1559_v20 = vsub.s32 0, %v33_v14  ;;  %v1581_v25 = vsub.s32 1, %v33_v14  ;;  %v1583_v26 = vsub.s32 2, %v33_v14  ;;  %v1585_v27 = vsub.s32 3, %v33_v14  ;;  %v1603_v33 = vld [vmem:[%s2618_s1 + $0x30] sm:$0xff]  ;;  %v1608_v34 = vld [vmem:[%s2618_s1 + $0x38] sm:$0xff] }
   0x8   :  { %v35_v28 = vrot.slane %v1531_v10, %v1559_v20  ;;  %v42_v29 = vrot.slane %v1534_v11, %v1559_v20  ;;  %v50_v30 = vrot.slane %v1537_v12, %v1559_v20  ;;  %v58_v31 = vrot.slane %v1540_v13, %v1559_v20 }
   0x9   :  { %v66_v35 = vrot.slane %v1543_v15, %v1559_v20  ;;  %v74_v36 = vrot.slane %v1546_v16, %v1559_v20  ;;  %v82_v37 = vrot.slane %v1549_v17, %v1559_v20  ;;  %v90_v38 = vrot.slane %v1552_v18, %v1559_v20 }
   0xa   :  { %v36_v39 = vmul.f32 %v35_v28, %v1557_v19  ;;  %v43_v40 = vmul.f32 %v1564_v21, %v42_v29  ;;  %v51_v41 = vmul.f32 %v1569_v22, %v50_v30  ;;  %v59_v42 = vmul.f32 %v1574_v23, %v58_v31 }
   0xb   :  { %v67_v43 = vmul.f32 %v1579_v24, %v66_v35  ;;  %v75_v44 = vmul.f32 %v1598_v32, %v74_v36  ;;  %v83_v45 = vmul.f32 %v1603_v33, %v82_v37  ;;  %v91_v46 = vmul.f32 %v1608_v34, %v90_v38 }
   0xc   :  { %v44_v47 = vadd.f32 %v43_v40, %v36_v39  ;;  %v98_v48 = vrot.slane %v1531_v10, %v1581_v25  ;;  %v103_v49 = vrot.slane %v1534_v11, %v1581_v25  ;;  %v109_v50 = vrot.slane %v1537_v12, %v1581_v25 }
   0xd   :  { %v115_v51 = vrot.slane %v1540_v13, %v1581_v25  ;;  %v121_v52 = vrot.slane %v1543_v15, %v1581_v25  ;;  %v127_v53 = vrot.slane %v1546_v16, %v1581_v25  ;;  %v133_v54 = vrot.slane %v1549_v17, %v1581_v25 }
   0xe   :  { %v52_v55 = vadd.f32 %v51_v41, %v44_v47  ;;  %v99_v56 = vmul.f32 %v98_v48, %v1557_v19  ;;  %v104_v57 = vmul.f32 %v1564_v21, %v103_v49  ;;  %v110_v58 = vmul.f32 %v1569_v22, %v109_v50 }
   0xf   :  { %v116_v59 = vmul.f32 %v1574_v23, %v115_v51  ;;  %v122_v60 = vmul.f32 %v1579_v24, %v121_v52  ;;  %v128_v61 = vmul.f32 %v1598_v32, %v127_v53  ;;  %v134_v62 = vmul.f32 %v1603_v33, %v133_v54 }
  0x10   :  { %v60_v63 = vadd.f32 %v59_v42, %v52_v55  ;;  %v105_v0 = vadd.f32 %v104_v57, %v99_v56  ;;  %v139_v2 = vrot.slane %v1552_v18, %v1581_v25  ;;  %v147_v3 = vrot.slane %v1531_v10, %v1583_v26 }
  0x11   :  { %v152_v4 = vrot.slane %v1534_v11, %v1583_v26  ;;  %v158_v5 = vrot.slane %v1537_v12, %v1583_v26  ;;  %v164_v6 = vrot.slane %v1540_v13, %v1583_v26  ;;  %v170_v7 = vrot.slane %v1543_v15, %v1583_v26 }
  0x12   :  { %v68_v8 = vadd.f32 %v67_v43, %v60_v63  ;;  %v111_v9 = vadd.f32 %v110_v58, %v105_v0  ;;  %v140_v14 = vmul.f32 %v1608_v34, %v139_v2  ;;  %v148_v28 = vmul.f32 %v147_v3, %v1557_v19  ;;  %v1404_v2 = vld [vmem:[%s2617_s2 + $0x30] sm:$0xf] }
  0x13   :  { %v153_v29 = vmul.f32 %v1564_v21, %v152_v4  ;;  %v159_v30 = vmul.f32 %v1569_v22, %v158_v5  ;;  %v165_v31 = vmul.f32 %v1574_v23, %v164_v6  ;;  %v171_v35 = vmul.f32 %v1579_v24, %v170_v7 }
  0x14   :  { %v76_v36 = vadd.f32 %v75_v44, %v68_v8  ;;  %v117_v37 = vadd.f32 %v116_v59, %v111_v9  ;;  %v176_v38 = vrot.slane %v1546_v16, %v1583_v26  ;;  %v182_v39 = vrot.slane %v1549_v17, %v1583_v26 }
  0x15   :  { %v154_v40 = vadd.f32 %v153_v29, %v148_v28  ;;  %v188_v41 = vrot.slane %v1552_v18, %v1583_v26  ;;  %v196_v42 = vrot.slane %v1531_v10, %v1585_v27  ;;  %v201_v43 = vrot.slane %v1534_v11, %v1585_v27 }
  0x16   :  { %v84_v47 = vadd.f32 %v83_v45, %v76_v36  ;;  %v123_v48 = vadd.f32 %v122_v60, %v117_v37  ;;  %v177_v44 = vmul.f32 %v1598_v32, %v176_v38  ;;  %v183_v49 = vmul.f32 %v1603_v33, %v182_v39  ;;  %v1756_v38 = vld [vmem:[%s2618_s1 + $0x48] sm:$0xff]  ;;  %v1761_v39 = vld [vmem:[%s2618_s1 + $0x50] sm:$0xff] }
  0x17   :  { %v160_v50 = vadd.f32 %v159_v30, %v154_v40  ;;  %v189_v51 = vmul.f32 %v1608_v34, %v188_v41  ;;  %v197_v52 = vmul.f32 %v196_v42, %v1557_v19  ;;  %v202_v53 = vmul.f32 %v1564_v21, %v201_v43  ;;  %v1400_v19 = vld [vmem:[%s2617_s2 + $0x20] sm:$0xf]  ;;  %v1766_v40 = vld [vmem:[%s2618_s1 + $0x58] sm:$0xff] }
  0x18   :  { %v92_v54 = vadd.f32 %v91_v46, %v84_v47  ;;  %v129_v55 = vadd.f32 %v128_v61, %v123_v48  ;;  %v207_v10 = vrot.slane %v1537_v12, %v1585_v27  ;;  %v213_v11 = vrot.slane %v1540_v13, %v1585_v27  ;;  %v1401_v13 = vld [vmem:[%s2617_s2 + $0x24] sm:$0xf] }
  0x19   :  { %v166_v45 = vadd.f32 %v165_v31, %v160_v50  ;;  %v203_v56 = vadd.f32 %v202_v53, %v197_v52  ;;  %v219_v57 = vrot.slane %v1543_v15, %v1585_v27  ;;  %v225_v58 = vrot.slane %v1546_v16, %v1585_v27  ;;  %v1402_v15 = vld [vmem:[%s2617_s2 + $0x28] sm:$0xf]  ;;  %v1746_v31 = vld [vmem:[%s2618_s1 + $0x40] sm:$0xff] }
  0x1a   :  { %v93_v21 = vmul.f32 %v92_v54, %v92_v54  ;;  %v135_v46 = vadd.f32 %v134_v62, %v129_v55  ;;  %v208_v59 = vmul.f32 %v1569_v22, %v207_v10  ;;  %v214_v12 = vmul.f32 %v1574_v23, %v213_v11  ;;  %v1403_v22 = vld [vmem:[%s2617_s2 + $0x2c] sm:$0xf]  ;;  %v1777_v48 = vld [vmem:[%s2618_s1 + $0x60] sm:$0xff]  ;;  %v1795_v11 = vld [vmem:[%s2618_s1 + $0x70] sm:$0xff] }
  0x1b   :  { %v172_v60 = vadd.f32 %v171_v35, %v166_v45  ;;  %v220_v16 = vmul.f32 %v1579_v24, %v219_v57  ;;  %v226_v61 = vmul.f32 %v1598_v32, %v225_v58  ;;  %v231_v62 = vrot.slane %v1549_v17, %v1585_v27  ;;  %v1405_v24 = vld [vmem:[%s2617_s2 + $0x34] sm:$0xf]  ;;  %v1406_v17 = vld [vmem:[%s2617_s2 + $0x38] sm:$0xf] }
  0x1c   :  { %v141_v23 = vadd.f32 %v140_v14, %v135_v46  ;;  %v209_v63 = vadd.f32 %v208_v59, %v203_v56  ;;  %v237_v0 = vrot.slane %v1552_v18, %v1585_v27  ;;  %v1718_v32 = vmul.f32 %v1400_v19, %v1504_v1  ;;  %v1407_v18 = vld [vmem:[%s2617_s2 + $0x3c] sm:$0xf] }
  0x1d   :  { %v178_v3 = vadd.f32 %v177_v44, %v172_v60  ;;  %v232_v4 = vmul.f32 %v1603_v33, %v231_v62  ;;  %v1725_v5 = vmul.f32 %v1401_v13, %v1504_v1  ;;  %v1728_v6 = vmul.f32 %v1402_v15, %v1504_v1  ;;  %v1782_v44 = vld [vmem:[%s2618_s1 + $0x68] sm:$0xff]  ;;  %v1804_v19 = vld [vmem:[%s2618_s1 + $0x78] sm:$0xff] }
  0x1e   :  { %v142_v7 = vmul.f32 %v141_v23, %v141_v23  ;;  %v215_v8 = vadd.f32 %v214_v12, %v209_v63  ;;  %v238_v9 = vmul.f32 %v1608_v34, %v237_v0  ;;  %v1732_v14 = vmul.f32 %v1403_v22, %v1504_v1 }
  0x1f   :  { %v184_v28 = vadd.f32 %v183_v49, %v178_v3  ;;  %v1735_v33 = vmul.f32 %v1404_v2, %v1504_v1  ;;  %v1738_v29 = vmul.f32 %v1405_v24, %v1504_v1  ;;  %v1741_v30 = vmul.f32 %v1406_v17, %v1504_v1 }
  0x20   :  { %v143_v35 = vadd.f32 %v142_v7, %v93_v21  ;;  %v221_v34 = vadd.f32 %v220_v16, %v215_v8  ;;  %v1749_v36 = vmul.f32 %v1407_v18, %v1504_v1  ;;  %v264_v37 = vrot.slane %v1718_v32, %v1559_v20 }
  0x21   :  { %v190_v41 = vadd.f32 %v189_v51, %v184_v28  ;;  %v271_v42 = vrot.slane %v1725_v5, %v1559_v20  ;;  %v279_v43 = vrot.slane %v1728_v6, %v1559_v20  ;;  %v287_v47 = vrot.slane %v1732_v14, %v1559_v20 }
  0x22   :  { %v227_v49 = vadd.f32 %v226_v61, %v221_v34  ;;  %v265_v50 = vmul.f32 %v1746_v31, %v264_v37  ;;  %v295_v51 = vrot.slane %v1735_v33, %v1559_v20  ;;  %v303_v52 = vrot.slane %v1738_v29, %v1559_v20 }
  0x23   :  { %v191_v53 = vmul.f32 %v190_v41, %v190_v41  ;;  %v272_v54 = vmul.f32 %v1756_v38, %v271_v42  ;;  %v280_v55 = vmul.f32 %v1761_v39, %v279_v43  ;;  %v288_v10 = vmul.f32 %v1766_v40, %v287_v47 }
  0x24   :  { %v233_v45 = vadd.f32 %v232_v4, %v227_v49  ;;  %v296_v56 = vmul.f32 %v1777_v48, %v295_v51  ;;  %v304_v57 = vmul.f32 %v1782_v44, %v303_v52  ;;  %v311_v58 = vrot.slane %v1741_v30, %v1559_v20 }
  0x25   :  { %v192_v21 = vadd.f32 %v191_v53, %v143_v35  ;;  %v273_v46 = vadd.f32 %v272_v54, %v265_v50  ;;  %v319_v59 = vrot.slane %v1749_v36, %v1559_v20  ;;  %v327_v12 = vrot.slane %v1718_v32, %v1581_v25 }
  0x26   :  { %v239_v13 = vadd.f32 %v238_v9, %v233_v45  ;;  %v312_v15 = vmul.f32 %v1795_v11, %v311_v58  ;;  %v332_v60 = vrot.slane %v1725_v5, %v1581_v25  ;;  %v338_v16 = vrot.slane %v1728_v6, %v1581_v25 }
  0x27   :  { %v281_v61 = vadd.f32 %v280_v55, %v273_v46  ;;  %v320_v62 = vmul.f32 %v1804_v19, %v319_v59  ;;  %v328_v22 = vmul.f32 %v1746_v31, %v327_v12  ;;  %v344_v23 = vrot.slane %v1732_v14, %v1581_v25 }
  0x28   :  { %v240_v63 = vmul.f32 %v239_v13, %v239_v13  ;;  %v333_v0 = vmul.f32 %v1756_v38, %v332_v60  ;;  %v339_v2 = vmul.f32 %v1761_v39, %v338_v16  ;;  %v350_v24 = vrot.slane %v1735_v33, %v1581_v25 }
  0x29   :  { %v289_v17 = vadd.f32 %v288_v10, %v281_v61  ;;  %v345_v3 = vmul.f32 %v1766_v40, %v344_v23  ;;  %v356_v4 = vrot.slane %v1738_v29, %v1581_v25  ;;  %v362_v18 = vrot.slane %v1741_v30, %v1581_v25 }
  0x2a   :  { %v241_v7 = vadd.f32 %v240_v63, %v192_v21  ;;  %v334_v8 = vadd.f32 %v333_v0, %v328_v22  ;;  %v351_v9 = vmul.f32 %v1777_v48, %v350_v24  ;;  %v368_v28 = vrot.slane %v1749_v36, %v1581_v25 }
  0x2b   :  { %v297_v35 = vadd.f32 %v296_v56, %v289_v17  ;;  %v357_v34 = vmul.f32 %v1782_v44, %v356_v4  ;;  %v363_v37 = vmul.f32 %v1795_v11, %v362_v18  ;;  %v376_v41 = vrot.slane %v1718_v32, %v1583_v26  ;;  %v1416_v18 = vld [vmem:[%s2617_s2 + $0x40] sm:$0xf] }
  0x2c   :  { %v340_v42 = vadd.f32 %v339_v2, %v334_v8  ;;  %v369_v43 = vmul.f32 %v1804_v19, %v368_v28  ;;  %v381_v47 = vrot.slane %v1725_v5, %v1583_v26  ;;  %v387_v49 = vrot.slane %v1728_v6, %v1583_v26 }
  0x2d   :  { %v305_v50 = vadd.f32 %v304_v57, %v297_v35  ;;  %v377_v51 = vmul.f32 %v1746_v31, %v376_v41  ;;  %v393_v52 = vrot.slane %v1732_v14, %v1583_v26  ;;  %v399_v53 = vrot.slane %v1735_v33, %v1583_v26 }
  0x2e   :  { %v346_v54 = vadd.f32 %v345_v3, %v340_v42  ;;  %v382_v55 = vmul.f32 %v1756_v38, %v381_v47  ;;  %v388_v10 = vmul.f32 %v1761_v39, %v387_v49  ;;  %v405_v45 = vrot.slane %v1738_v29, %v1583_v26 }
  0x2f   :  { %v313_v56 = vadd.f32 %v312_v15, %v305_v50  ;;  %v394_v58 = vmul.f32 %v1766_v40, %v393_v52  ;;  %v400_v57 = vmul.f32 %v1777_v48, %v399_v53  ;;  %v411_v21 = vrot.slane %v1741_v30, %v1583_v26 }
  0x30   :  { %v352_v46 = vadd.f32 %v351_v9, %v346_v54  ;;  %v383_v59 = vadd.f32 %v382_v55, %v377_v51  ;;  %v406_v12 = vmul.f32 %v1782_v44, %v405_v45  ;;  %v417_v13 = vrot.slane %v1749_v36, %v1583_v26 }
  0x31   :  { %v321_v60 = vadd.f32 %v320_v62, %v313_v56  ;;  %v412_v16 = vmul.f32 %v1795_v11, %v411_v21  ;;  %v425_v15 = vrot.slane %v1718_v32, %v1585_v27  ;;  %v430_v61 = vrot.slane %v1725_v5, %v1585_v27  ;;  %v1945_v21 = vld [vmem:[%s2618_s1 + $0x90] sm:$0xff] }
  0x32   :  { %v358_v22 = vadd.f32 %v357_v34, %v352_v46  ;;  %v389_v23 = vadd.f32 %v388_v10, %v383_v59  ;;  %v418_v63 = vmul.f32 %v1804_v19, %v417_v13  ;;  %v436_v0 = vrot.slane %v1728_v6, %v1585_v27  ;;  %v1927_v10 = vld [vmem:[%s2618_s1 + $0x80] sm:$0xff]  ;;  %v1950_v46 = vld [vmem:[%s2618_s1 + $0x98] sm:$0xff] }
  0x33   :  { %v322_v2 = vmul.f32 %v321_v60, %v321_v60  ;;  %v426_v24 = vmul.f32 %v1746_v31, %v425_v15  ;;  %v431_v62 = vmul.f32 %v1756_v38, %v430_v61  ;;  %v442_v17 = vrot.slane %v1732_v14, %v1585_v27  ;;  %v1417_v14 = vld [vmem:[%s2617_s2 + $0x44] sm:$0xf]  ;;  %v1966_v15 = vld [vmem:[%s2618_s1 + $0xa8] sm:$0xff] }
  0x34   :  { %v364_v3 = vadd.f32 %v363_v37, %v358_v22  ;;  %v395_v32 = vadd.f32 %v394_v58, %v389_v23  ;;  %v437_v4 = vmul.f32 %v1761_v39, %v436_v0  ;;  %v448_v5 = vrot.slane %v1735_v33, %v1585_v27 }
  0x35   :  { %v323_v6 = vadd.f32 %v322_v2, %v241_v7  ;;  %v432_v8 = vadd.f32 %v431_v62, %v426_v24  ;;  %v443_v31 = vmul.f32 %v1766_v40, %v442_v17  ;;  %v454_v38 = vrot.slane %v1738_v29, %v1585_v27  ;;  %v1418_v7 = vld [vmem:[%s2617_s2 + $0x48] sm:$0xf]  ;;  %v1419_v40 = vld [vmem:[%s2617_s2 + $0x4c] sm:$0xf]  ;;  %v1979_v17 = vld [vmem:[%s2618_s1 + $0xb0] sm:$0xff] }
  0x36   :  { %v370_v9 = vadd.f32 %v369_v43, %v364_v3  ;;  %v401_v39 = vadd.f32 %v400_v57, %v395_v32  ;;  %v449_v28 = vmul.f32 %v1777_v48, %v448_v5  ;;  %v460_v33 = vrot.slane %v1741_v30, %v1585_v27  ;;  %v1420_v48 = vld [vmem:[%s2617_s2 + $0x50] sm:$0xf]  ;;  %v1421_v30 = vld [vmem:[%s2617_s2 + $0x54] sm:$0xf]  ;;  %v1940_v57 = vld [vmem:[%s2618_s1 + $0x88] sm:$0xff] }
  0x37   :  { %v438_v29 = vadd.f32 %v437_v4, %v432_v8  ;;  %v455_v35 = vmul.f32 %v1782_v44, %v454_v38  ;;  %v466_v34 = vrot.slane %v1749_v36, %v1585_v27  ;;  %v1899_v37 = vmul.f32 %v1416_v18, %v1504_v1  ;;  %v1422_v44 = vld [vmem:[%s2617_s2 + $0x58] sm:$0xf]  ;;  %v1423_v36 = vld [vmem:[%s2617_s2 + $0x5c] sm:$0xf] }
  0x38   :  { %v371_v41 = vmul.f32 %v370_v9, %v370_v9  ;;  %v407_v42 = vadd.f32 %v406_v12, %v401_v39  ;;  %v461_v43 = vmul.f32 %v1795_v11, %v460_v33  ;;  %v1909_v47 = vmul.f32 %v1417_v14, %v1504_v1  ;;  %v1988_v18 = vld [vmem:[%s2618_s1 + $0xb8] sm:$0xff] }
  0x39   :  { %v444_v49 = vadd.f32 %v443_v31, %v438_v29  ;;  %v467_v50 = vmul.f32 %v1804_v19, %v466_v34  ;;  %v1913_v51 = vmul.f32 %v1418_v7, %v1504_v1  ;;  %v1916_v52 = vmul.f32 %v1419_v40, %v1504_v1 }
  0x3a   :  { %v372_v11 = vadd.f32 %v371_v41, %v323_v6  ;;  %v413_v53 = vadd.f32 %v412_v16, %v407_v42  ;;  %v1919_v54 = vmul.f32 %v1420_v48, %v1504_v1  ;;  %v1922_v55 = vmul.f32 %v1421_v30, %v1504_v1  ;;  %v1961_v16 = vld [vmem:[%s2618_s1 + $0xa0] sm:$0xff] }
  0x3b   :  { %v450_v19 = vadd.f32 %v449_v28, %v444_v49  ;;  %v1930_v45 = vmul.f32 %v1422_v44, %v1504_v1  ;;  %v1933_v56 = vmul.f32 %v1423_v36, %v1504_v1  ;;  %v493_v58 = vrot.slane %v1899_v37, %v1559_v20 }
  0x3c   :  { %v419_v59 = vadd.f32 %v418_v63, %v413_v53  ;;  %v500_v12 = vrot.slane %v1909_v47, %v1559_v20  ;;  %v508_v13 = vrot.slane %v1913_v51, %v1559_v20  ;;  %v516_v60 = vrot.slane %v1916_v52, %v1559_v20 }
  0x3d   :  { %v456_v61 = vadd.f32 %v455_v35, %v450_v19  ;;  %v494_v22 = vmul.f32 %v1927_v10, %v493_v58  ;;  %v524_v23 = vrot.slane %v1919_v54, %v1559_v20  ;;  %v532_v63 = vrot.slane %v1922_v55, %v1559_v20 }
  0x3e   :  { %v420_v0 = vmul.f32 %v419_v59, %v419_v59  ;;  %v501_v2 = vmul.f32 %v1940_v57, %v500_v12  ;;  %v509_v24 = vmul.f32 %v1945_v21, %v508_v13  ;;  %v517_v62 = vmul.f32 %v1950_v46, %v516_v60 }
  0x3f   :  { %v462_v3 = vadd.f32 %v461_v43, %v456_v61  ;;  %v525_v32 = vmul.f32 %v1961_v16, %v524_v23  ;;  %v533_v4 = vmul.f32 %v1966_v15, %v532_v63  ;;  %v540_v5 = vrot.slane %v1930_v45, %v1559_v20 }
  0x40   :  { %v421_v6 = vadd.f32 %v420_v0, %v372_v11  ;;  %v502_v8 = vadd.f32 %v501_v2, %v494_v22  ;;  %v548_v31 = vrot.slane %v1933_v56, %v1559_v20  ;;  %v556_v38 = vrot.slane %v1899_v37, %v1581_v25 }
  0x41   :  { %v468_v14 = vadd.f32 %v467_v50, %v462_v3  ;;  %v541_v9 = vmul.f32 %v1979_v17, %v540_v5  ;;  %v561_v39 = vrot.slane %v1909_v47, %v1581_v25  ;;  %v567_v28 = vrot.slane %v1913_v51, %v1581_v25 }
  0x42   :  { %v510_v33 = vadd.f32 %v509_v24, %v502_v8  ;;  %v549_v7 = vmul.f32 %v1988_v18, %v548_v31  ;;  %v557_v40 = vmul.f32 %v1927_v10, %v556_v38  ;;  %v573_v29 = vrot.slane %v1916_v52, %v1581_v25 }
  0x43   :  { %v469_v35 = vmul.f32 %v468_v14, %v468_v14  ;;  %v562_v34 = vmul.f32 %v1940_v57, %v561_v39  ;;  %v568_v48 = vmul.f32 %v1945_v21, %v567_v28  ;;  %v579_v30 = vrot.slane %v1919_v54, %v1581_v25 }
  0x44   :  { %v518_v41 = vadd.f32 %v517_v62, %v510_v33  ;;  %v574_v42 = vmul.f32 %v1950_v46, %v573_v29  ;;  %v585_v43 = vrot.slane %v1922_v55, %v1581_v25  ;;  %v591_v44 = vrot.slane %v1930_v45, %v1581_v25 }
  0x45   :  { %v470_v36 = vadd.f32 %v469_v35, %v421_v6  ;;  %v563_v49 = vadd.f32 %v562_v34, %v557_v40  ;;  %v580_v50 = vmul.f32 %v1961_v16, %v579_v30  ;;  %v597_v11 = vrot.slane %v1933_v56, %v1581_v25 }
  0x46   :  { %v526_v53 = vadd.f32 %v525_v32, %v518_v41  ;;  %v586_v19 = vmul.f32 %v1966_v15, %v585_v43  ;;  %v592_v58 = vmul.f32 %v1979_v17, %v591_v44  ;;  %v605_v59 = vrot.slane %v1899_v37, %v1583_v26  ;;  %v1432_v44 = vld [vmem:[%s2617_s2 + $0x60] sm:$0xf] }
  0x47   :  { %v569_v12 = vadd.f32 %v568_v48, %v563_v49  ;;  %v598_v13 = vmul.f32 %v1988_v18, %v597_v11  ;;  %v610_v60 = vrot.slane %v1909_v47, %v1583_v26  ;;  %v616_v61 = vrot.slane %v1913_v51, %v1583_v26 }
  0x48   :  { %v534_v22 = vadd.f32 %v533_v4, %v526_v53  ;;  %v606_v23 = vmul.f32 %v1927_v10, %v605_v59  ;;  %v622_v63 = vrot.slane %v1916_v52, %v1583_v26  ;;  %v628_v0 = vrot.slane %v1919_v54, %v1583_v26 }
  0x49   :  { %v575_v2 = vadd.f32 %v574_v42, %v569_v12  ;;  %v611_v24 = vmul.f32 %v1940_v57, %v610_v60  ;;  %v617_v62 = vmul.f32 %v1945_v21, %v616_v61  ;;  %v634_v3 = vrot.slane %v1922_v55, %v1583_v26 }
  0x4a   :  { %v542_v32 = vadd.f32 %v541_v9, %v534_v22  ;;  %v623_v5 = vmul.f32 %v1950_v46, %v622_v63  ;;  %v629_v4 = vmul.f32 %v1961_v16, %v628_v0  ;;  %v640_v6 = vrot.slane %v1930_v45, %v1583_v26 }
  0x4b   :  { %v581_v8 = vadd.f32 %v580_v50, %v575_v2  ;;  %v612_v31 = vadd.f32 %v611_v24, %v606_v23  ;;  %v635_v38 = vmul.f32 %v1966_v15, %v634_v3  ;;  %v646_v14 = vrot.slane %v1933_v56, %v1583_v26 }
  0x4c   :  { %v550_v39 = vadd.f32 %v549_v7, %v542_v32  ;;  %v641_v28 = vmul.f32 %v1979_v17, %v640_v6  ;;  %v654_v9 = vrot.slane %v1899_v37, %v1585_v27  ;;  %v659_v33 = vrot.slane %v1909_v47, %v1585_v27  ;;  %v2129_v6 = vld [vmem:[%s2618_s1 + $0xd0] sm:$0xff] }
  0x4d   :  { %v587_v40 = vadd.f32 %v586_v19, %v581_v8  ;;  %v618_v29 = vadd.f32 %v617_v62, %v612_v31  ;;  %v647_v35 = vmul.f32 %v1988_v18, %v646_v14  ;;  %v665_v34 = vrot.slane %v1913_v51, %v1585_v27  ;;  %v2111_v62 = vld [vmem:[%s2618_s1 + $0xc0] sm:$0xff]  ;;  %v2134_v8 = vld [vmem:[%s2618_s1 + $0xd8] sm:$0xff] }
  0x4e   :  { %v551_v48 = vmul.f32 %v550_v39, %v550_v39  ;;  %v655_v30 = vmul.f32 %v1927_v10, %v654_v9  ;;  %v660_v7 = vmul.f32 %v1940_v57, %v659_v33  ;;  %v671_v41 = vrot.slane %v1916_v52, %v1585_v27  ;;  %v1433_v52 = vld [vmem:[%s2617_s2 + $0x64] sm:$0xf]  ;;  %v2150_v9 = vld [vmem:[%s2618_s1 + $0xe8] sm:$0xff] }
  0x4f   :  { %v593_v42 = vadd.f32 %v592_v58, %v587_v40  ;;  %v624_v37 = vadd.f32 %v623_v5, %v618_v29  ;;  %v666_v43 = vmul.f32 %v1945_v21, %v665_v34  ;;  %v677_v47 = vrot.slane %v1919_v54, %v1585_v27 }
  0x50   :  { %v552_v51 = vadd.f32 %v551_v48, %v470_v36  ;;  %v661_v49 = vadd.f32 %v660_v7, %v655_v30  ;;  %v672_v10 = vmul.f32 %v1950_v46, %v671_v41  ;;  %v683_v57 = vrot.slane %v1922_v55, %v1585_v27  ;;  %v1434_v36 = vld [vmem:[%s2617_s2 + $0x68] sm:$0xf]  ;;  %v1435_v46 = vld [vmem:[%s2617_s2 + $0x6c] sm:$0xf]  ;;  %v2163_v41 = vld [vmem:[%s2618_s1 + $0xf0] sm:$0xff] }
  0x51   :  { %v599_v50 = vadd.f32 %v598_v13, %v593_v42  ;;  %v630_v21 = vadd.f32 %v629_v4, %v624_v37  ;;  %v678_v11 = vmul.f32 %v1961_v16, %v677_v47  ;;  %v689_v54 = vrot.slane %v1930_v45, %v1585_v27  ;;  %v1436_v16 = vld [vmem:[%s2617_s2 + $0x70] sm:$0xf]  ;;  %v1437_v45 = vld [vmem:[%s2617_s2 + $0x74] sm:$0xf]  ;;  %v2124_v4 = vld [vmem:[%s2618_s1 + $0xc8] sm:$0xff] }
  0x52   :  { %v667_v55 = vadd.f32 %v666_v43, %v661_v49  ;;  %v684_v53 = vmul.f32 %v1966_v15, %v683_v57  ;;  %v695_v19 = vrot.slane %v1933_v56, %v1585_v27  ;;  %v2083_v58 = vmul.f32 %v1432_v44, %v1504_v1  ;;  %v1438_v15 = vld [vmem:[%s2617_s2 + $0x78] sm:$0xf]  ;;  %v1439_v56 = vld [vmem:[%s2617_s2 + $0x7c] sm:$0xf] }
  0x53   :  { %v600_v59 = vmul.f32 %v599_v50, %v599_v50  ;;  %v636_v12 = vadd.f32 %v635_v38, %v630_v21  ;;  %v690_v13 = vmul.f32 %v1979_v17, %v689_v54  ;;  %v2093_v60 = vmul.f32 %v1433_v52, %v1504_v1  ;;  %v2172_v44 = vld [vmem:[%s2618_s1 + $0xf8] sm:$0xff] }
  0x54   :  { %v673_v61 = vadd.f32 %v672_v10, %v667_v55  ;;  %v696_v22 = vmul.f32 %v1988_v18, %v695_v19  ;;  %v2097_v23 = vmul.f32 %v1434_v36, %v1504_v1  ;;  %v2100_v63 = vmul.f32 %v1435_v46, %v1504_v1 }
  0x55   :  { %v601_v17 = vadd.f32 %v600_v59, %v552_v51  ;;  %v642_v0 = vadd.f32 %v641_v28, %v636_v12  ;;  %v2103_v2 = vmul.f32 %v1436_v16, %v1504_v1  ;;  %v2106_v24 = vmul.f32 %v1437_v45, %v1504_v1  ;;  %v2145_v28 = vld [vmem:[%s2618_s1 + $0xe0] sm:$0xff] }
  0x56   :  { %v679_v18 = vadd.f32 %v678_v11, %v673_v61  ;;  %v2114_v3 = vmul.f32 %v1438_v15, %v1504_v1  ;;  %v2117_v32 = vmul.f32 %v1439_v56, %v1504_v1  ;;  %v722_v5 = vrot.slane %v2083_v58, %v1559_v20 }
  0x57   :  { %v648_v31 = vadd.f32 %v647_v35, %v642_v0  ;;  %v729_v38 = vrot.slane %v2093_v60, %v1559_v20  ;;  %v737_v14 = vrot.slane %v2097_v23, %v1559_v20  ;;  %v745_v39 = vrot.slane %v2100_v63, %v1559_v20 }
  0x58   :  { %v685_v33 = vadd.f32 %v684_v53, %v679_v18  ;;  %v723_v40 = vmul.f32 %v2111_v62, %v722_v5  ;;  %v753_v29 = vrot.slane %v2103_v2, %v1559_v20  ;;  %v761_v35 = vrot.slane %v2106_v24, %v1559_v20 }
  0x59   :  { %v649_v34 = vmul.f32 %v648_v31, %v648_v31  ;;  %v730_v48 = vmul.f32 %v2124_v4, %v729_v38  ;;  %v738_v30 = vmul.f32 %v2129_v6, %v737_v14  ;;  %v746_v7 = vmul.f32 %v2134_v8, %v745_v39 }
  0x5a   :  { %v691_v42 = vadd.f32 %v690_v13, %v685_v33  ;;  %v754_v37 = vmul.f32 %v2145_v28, %v753_v29  ;;  %v762_v43 = vmul.f32 %v2150_v9, %v761_v35  ;;  %v769_v47 = vrot.slane %v2114_v3, %v1559_v20 }
  0x5b   :  { %v650_v51 = vadd.f32 %v649_v34, %v601_v17  ;;  %v731_v49 = vadd.f32 %v730_v48, %v723_v40  ;;  %v777_v10 = vrot.slane %v2117_v32, %v1559_v20  ;;  %v785_v57 = vrot.slane %v2083_v58, %v1581_v25 }
  0x5c   :  { %v697_v52 = vadd.f32 %v696_v22, %v691_v42  ;;  %v770_v50 = vmul.f32 %v2163_v41, %v769_v47  ;;  %v790_v21 = vrot.slane %v2093_v60, %v1581_v25  ;;  %v796_v11 = vrot.slane %v2097_v23, %v1581_v25 }
  0x5d   :  { %v739_v54 = vadd.f32 %v738_v30, %v731_v49  ;;  %v778_v36 = vmul.f32 %v2172_v44, %v777_v10  ;;  %v786_v46 = vmul.f32 %v2111_v62, %v785_v57  ;;  %v802_v55 = vrot.slane %v2100_v63, %v1581_v25 }
  0x5e   :  { %v698_v53 = vmul.f32 %v697_v52, %v697_v52  ;;  %v791_v19 = vmul.f32 %v2124_v4, %v790_v21  ;;  %v797_v16 = vmul.f32 %v2129_v6, %v796_v11  ;;  %v808_v45 = vrot.slane %v2103_v2, %v1581_v25 }
  0x5f   :  { %v747_v59 = vadd.f32 %v746_v7, %v739_v54  ;;  %v803_v12 = vmul.f32 %v2134_v8, %v802_v55  ;;  %v814_v13 = vrot.slane %v2106_v24, %v1581_v25  ;;  %v820_v15 = vrot.slane %v2114_v3, %v1581_v25 }
  0x60   :  { %v699_v56 = vadd.f32 %v698_v53, %v650_v51  ;;  %v792_v61 = vadd.f32 %v791_v19, %v786_v46  ;;  %v809_v22 = vmul.f32 %v2145_v28, %v808_v45  ;;  %v826_v17 = vrot.slane %v2117_v32, %v1581_v25 }
  0x61   :  { %v755_v0 = vadd.f32 %v754_v37, %v747_v59  ;;  %v815_v18 = vmul.f32 %v2150_v9, %v814_v13  ;;  %v821_v5 = vmul.f32 %v2163_v41, %v820_v15  ;;  %v834_v31 = vrot.slane %v2083_v58, %v1583_v26  ;;  %v1448_v15 = vld [vmem:[%s2617_s2 + $0x80] sm:$0xf] }
  0x62   :  { %v798_v38 = vadd.f32 %v797_v16, %v792_v61  ;;  %v827_v14 = vmul.f32 %v2172_v44, %v826_v17  ;;  %v839_v39 = vrot.slane %v2093_v60, %v1583_v26  ;;  %v845_v33 = vrot.slane %v2097_v23, %v1583_v26 }
  0x63   :  { %v763_v40 = vadd.f32 %v762_v43, %v755_v0  ;;  %v835_v29 = vmul.f32 %v2111_v62, %v834_v31  ;;  %v851_v35 = vrot.slane %v2100_v63, %v1583_v26  ;;  %v857_v34 = vrot.slane %v2103_v2, %v1583_v26 }
  0x64   :  { %v804_v48 = vadd.f32 %v803_v12, %v798_v38  ;;  %v840_v30 = vmul.f32 %v2124_v4, %v839_v39  ;;  %v846_v7 = vmul.f32 %v2129_v6, %v845_v33  ;;  %v863_v42 = vrot.slane %v2106_v24, %v1583_v26 }
  0x65   :  { %v771_v37 = vadd.f32 %v770_v50, %v763_v40  ;;  %v852_v47 = vmul.f32 %v2134_v8, %v851_v35  ;;  %v858_v43 = vmul.f32 %v2145_v28, %v857_v34  ;;  %v869_v51 = vrot.slane %v2114_v3, %v1583_v26 }
  0x66   :  { %v810_v49 = vadd.f32 %v809_v22, %v804_v48  ;;  %v841_v10 = vadd.f32 %v840_v30, %v835_v29  ;;  %v864_v57 = vmul.f32 %v2150_v9, %v863_v42  ;;  %v875_v52 = vrot.slane %v2117_v32, %v1583_v26 }
  0x67   :  { %v779_v21 = vadd.f32 %v778_v36, %v771_v37  ;;  %v870_v11 = vmul.f32 %v2163_v41, %v869_v51  ;;  %v883_v50 = vrot.slane %v2083_v58, %v1585_v27  ;;  %v888_v54 = vrot.slane %v2093_v60, %v1585_v27  ;;  %v2313_v51 = vld [vmem:[%s2618_s1 + $0x110] sm:$0xff] }
  0x68   :  { %v816_v46 = vadd.f32 %v815_v18, %v810_v49  ;;  %v847_v55 = vadd.f32 %v846_v7, %v841_v10  ;;  %v876_v53 = vmul.f32 %v2172_v44, %v875_v52  ;;  %v894_v19 = vrot.slane %v2097_v23, %v1585_v27  ;;  %v2295_v7 = vld [vmem:[%s2618_s1 + $0x100] sm:$0xff] }
  0x69   :  { %v780_v16 = vmul.f32 %v779_v21, %v779_v21  ;;  %v884_v45 = vmul.f32 %v2111_v62, %v883_v50  ;;  %v889_v36 = vmul.f32 %v2124_v4, %v888_v54  ;;  %v900_v59 = vrot.slane %v2100_v63, %v1585_v27  ;;  %v1449_v63 = vld [vmem:[%s2617_s2 + $0x84] sm:$0xf] }
  0x6a   :  { %v822_v12 = vadd.f32 %v821_v5, %v816_v46  ;;  %v853_v58 = vadd.f32 %v852_v47, %v847_v55  ;;  %v895_v13 = vmul.f32 %v2129_v6, %v894_v19  ;;  %v906_v60 = vrot.slane %v2103_v2, %v1585_v27  ;;  %v2329_v21 = vld [vmem:[%s2618_s1 + $0x120] sm:$0xff]  ;;  %v2337_v46 = vld [vmem:[%s2618_s1 + $0x128] sm:$0xff] }
  0x6b   :  { %v781_v23 = vadd.f32 %v780_v16, %v699_v56  ;;  %v890_v61 = vadd.f32 %v889_v36, %v884_v45  ;;  %v901_v62 = vmul.f32 %v2134_v8, %v900_v59  ;;  %v912_v4 = vrot.slane %v2106_v24, %v1585_v27  ;;  %v1450_v56 = vld [vmem:[%s2617_s2 + $0x88] sm:$0xf]  ;;  %v1451_v8 = vld [vmem:[%s2617_s2 + $0x8c] sm:$0xf] }
  0x6c   :  { %v828_v22 = vadd.f32 %v827_v14, %v822_v12  ;;  %v859_v6 = vadd.f32 %v858_v43, %v853_v58  ;;  %v907_v17 = vmul.f32 %v2145_v28, %v906_v60  ;;  %v918_v2 = vrot.slane %v2114_v3, %v1585_v27  ;;  %v1452_v28 = vld [vmem:[%s2617_s2 + $0x90] sm:$0xf]  ;;  %v1453_v3 = vld [vmem:[%s2617_s2 + $0x94] sm:$0xf]  ;;  %v2308_v43 = vld [vmem:[%s2618_s1 + $0x108] sm:$0xff] }
  0x6d   :  { %v896_v24 = vadd.f32 %v895_v13, %v890_v61  ;;  %v913_v0 = vmul.f32 %v2150_v9, %v912_v4  ;;  %v924_v18 = vrot.slane %v2117_v32, %v1585_v27  ;;  %v2267_v5 = vmul.f32 %v1448_v15, %v1504_v1  ;;  %v1454_v9 = vld [vmem:[%s2617_s2 + $0x98] sm:$0xf]  ;;  %v1455_v32 = vld [vmem:[%s2617_s2 + $0x9c] sm:$0xf]  ;;  %v2348_v12 = vld [vmem:[%s2618_s1 + $0x130] sm:$0xff] }
  0x6e   :  { %v829_v31 = vmul.f32 %v828_v22, %v828_v22  ;;  %v865_v38 = vadd.f32 %v864_v57, %v859_v6  ;;  %v919_v14 = vmul.f32 %v2163_v41, %v918_v2  ;;  %v2277_v39 = vmul.f32 %v1449_v63, %v1504_v1  ;;  %v2322_v57 = vld [vmem:[%s2618_s1 + $0x118] sm:$0xff] }
  0x6f   :  { %v902_v33 = vadd.f32 %v901_v62, %v896_v24  ;;  %v925_v40 = vmul.f32 %v2172_v44, %v924_v18  ;;  %v2281_v29 = vmul.f32 %v1450_v56, %v1504_v1  ;;  %v2284_v35 = vmul.f32 %v1451_v8, %v1504_v1  ;;  %v2360_v4 = vld [vmem:[%s2618_s1 + $0x138] sm:$0xff] }
  0x70   :  { %v830_v41 = vadd.f32 %v829_v31, %v781_v23  ;;  %v871_v34 = vadd.f32 %v870_v11, %v865_v38  ;;  %v2287_v48 = vmul.f32 %v1452_v28, %v1504_v1  ;;  %v2290_v30 = vmul.f32 %v1453_v3, %v1504_v1 }
  0x71   :  { %v908_v44 = vadd.f32 %v907_v17, %v902_v33  ;;  %v2298_v42 = vmul.f32 %v1454_v9, %v1504_v1  ;;  %v2301_v37 = vmul.f32 %v1455_v32, %v1504_v1  ;;  %v951_v47 = vrot.slane %v2267_v5, %v1559_v20 }
  0x72   :  { %v877_v49 = vadd.f32 %v876_v53, %v871_v34  ;;  %v958_v10 = vrot.slane %v2277_v39, %v1559_v20  ;;  %v966_v1 = vrot.slane %v2281_v29, %v1559_v20  ;;  %v974_v52 = vrot.slane %v2284_v35, %v1559_v20 }
  0x73   :  { %v914_v11 = vadd.f32 %v913_v0, %v908_v44  ;;  %v952_v50 = vmul.f32 %v2295_v7, %v951_v47  ;;  %v982_v54 = vrot.slane %v2287_v48, %v1559_v20  ;;  %v990_v55 = vrot.slane %v2290_v30, %v1559_v20 }
  0x74   :  { %v878_v53 = vmul.f32 %v877_v49, %v877_v49  ;;  %v959_v19 = vmul.f32 %v2308_v43, %v958_v10  ;;  %v967_v16 = vmul.f32 %v2313_v51, %v966_v1  ;;  %v975_v36 = vmul.f32 %v2322_v57, %v974_v52 }
  0x75   :  { %v920_v45 = vadd.f32 %v919_v14, %v914_v11  ;;  %v983_v59 = vmul.f32 %v2329_v21, %v982_v54  ;;  %v998_v58 = vrot.slane %v2298_v42, %v1559_v20  ;;  %v991_v60 = vmul.f32 %v2337_v46, %v990_v55 }
  0x76   :  { %v960_v13 = vadd.f32 %v959_v19, %v952_v50  ;;  %v1006_v15 = vrot.slane %v2301_v37, %v1559_v20  ;;  %v1014_v23 = vrot.slane %v2267_v5, %v1581_v25  ;;  %v879_v61 = vadd.f32 %v878_v53, %v830_v41 }
  0x77   :  { %v926_v62 = vadd.f32 %v925_v40, %v920_v45  ;;  %v1019_v63 = vrot.slane %v2277_v39, %v1581_v25  ;;  %v1025_v22 = vrot.slane %v2281_v29, %v1581_v25  ;;  %v999_v17 = vmul.f32 %v2348_v12, %v998_v58 }
  0x78   :  { %v968_v6 = vadd.f32 %v967_v16, %v960_v13  ;;  %v1015_v2 = vmul.f32 %v2295_v7, %v1014_v23  ;;  %v1031_v56 = vrot.slane %v2284_v35, %v1581_v25  ;;  %v1037_v18 = vrot.slane %v2287_v48, %v1581_v25 }
  0x79   :  { %v927_v8 = vmul.f32 %v926_v62, %v926_v62  ;;  %v1020_v24 = vmul.f32 %v2308_v43, %v1019_v63  ;;  %v1026_v0 = vmul.f32 %v2313_v51, %v1025_v22  ;;  %v1007_v3 = vmul.f32 %v2360_v4, %v1006_v15 }
  0x7a   :  { %v976_v28 = vadd.f32 %v975_v36, %v968_v6  ;;  %v1043_v31 = vrot.slane %v2290_v30, %v1581_v25  ;;  %v1049_v38 = vrot.slane %v2298_v42, %v1581_v25  ;;  %v1032_v32 = vmul.f32 %v2322_v57, %v1031_v56 }
  0x7b   :  { %v928_v14 = vadd.f32 %v927_v8, %v879_v61  ;;  %v1021_v9 = vadd.f32 %v1020_v24, %v1015_v2  ;;  %v1038_v33 = vmul.f32 %v2329_v21, %v1037_v18  ;;  %v1055_v34 = vrot.slane %v2301_v37, %v1581_v25 }
  0x7c   :  { %v984_v40 = vadd.f32 %v983_v59, %v976_v28  ;;  %v1044_v41 = vmul.f32 %v2337_v46, %v1043_v31  ;;  %v1063_v44 = vrot.slane %v2267_v5, %v1583_v26  ;;  %v1050_v49 = vmul.f32 %v2348_v12, %v1049_v38  ;;  %v1464_v31 = vld [vmem:[%s2617_s2 + $0xa0] sm:$0xf] }
  0x7d   :  { %v1027_v47 = vadd.f32 %v1026_v0, %v1021_v9  ;;  %v1068_v10 = vrot.slane %v2277_v39, %v1583_v26  ;;  %v1074_v1 = vrot.slane %v2281_v29, %v1583_v26  ;;  %v1080_v50 = vrot.slane %v2284_v35, %v1583_v26 }
  0x7e   :  { %v992_v52 = vadd.f32 %v991_v60, %v984_v40  ;;  %v1064_v11 = vmul.f32 %v2295_v7, %v1063_v44  ;;  %v1086_v54 = vrot.slane %v2287_v48, %v1583_v26  ;;  %v1092_v16 = vrot.slane %v2290_v30, %v1583_v26 }
  0x7f   :  { %v1033_v55 = vadd.f32 %v1032_v32, %v1027_v47  ;;  %v1069_v53 = vmul.f32 %v2308_v43, %v1068_v10  ;;  %v1075_v19 = vmul.f32 %v2313_v51, %v1074_v1  ;;  %v1056_v36 = vmul.f32 %v2360_v4, %v1055_v34  ;;  %v1480_v34 = vld [vmem:[%s2616_s0] sm:$0xf]  ;;  %v1471_v10 = vld [vmem:[%s2617_s2 + $0xbc] sm:$0xf] }
  0x80   :  { %v1000_v45 = vadd.f32 %v999_v17, %v992_v52  ;;  %v1081_v59 = vmul.f32 %v2322_v57, %v1080_v50  ;;  %v1098_v58 = vrot.slane %v2298_v42, %v1583_v26  ;;  %v1087_v15 = vmul.f32 %v2329_v21, %v1086_v54 }
  0x81   :  { %v1039_v13 = vadd.f32 %v1038_v33, %v1033_v55  ;;  %v1070_v60 = vadd.f32 %v1069_v53, %v1064_v11  ;;  %v1093_v23 = vmul.f32 %v2337_v46, %v1092_v16  ;;  %v1104_v62 = vrot.slane %v2301_v37, %v1583_v26  ;;  %v1466_v33 = vld [vmem:[%s2617_s2 + $0xa8] sm:$0xf]  ;;  %v2476_v16 = vld [vmem:[%s2618_s1 + $0x140] sm:$0xff] }
  0x82   :  { %v1008_v61 = vadd.f32 %v1007_v3, %v1000_v45  ;;  %v1112_v63 = vrot.slane %v2267_v5, %v1585_v27  ;;  %v1117_v22 = vrot.slane %v2277_v39, %v1585_v27  ;;  %v1099_v2 = vmul.f32 %v2348_v12, %v1098_v58  ;;  %v2492_v58 = vld [vmem:[%s2618_s1 + $0x150] sm:$0xff] }
  0x83   :  { %v1045_v6 = vadd.f32 %v1044_v41, %v1039_v13  ;;  %v1076_v17 = vadd.f32 %v1075_v19, %v1070_v60  ;;  %v1123_v56 = vrot.slane %v2281_v29, %v1585_v27  ;;  %v1129_v18 = vrot.slane %v2284_v35, %v1585_v27  ;;  %v1465_v35 = vld [vmem:[%s2617_s2 + $0xa4] sm:$0xf] }
  0x84   :  { %v1009_v8 = vmul.f32 %v1008_v61, %v1008_v61  ;;  %v1113_v24 = vmul.f32 %v2295_v7, %v1112_v63  ;;  %v1118_v0 = vmul.f32 %v2308_v43, %v1117_v22  ;;  %v1135_v39 = vrot.slane %v2287_v48, %v1585_v27 }
  0x85   :  { %v1051_v28 = vadd.f32 %v1050_v49, %v1045_v6  ;;  %v1082_v5 = vadd.f32 %v1081_v59, %v1076_v17  ;;  %v1124_v3 = vmul.f32 %v2313_v51, %v1123_v56  ;;  %v1105_v29 = vmul.f32 %v2360_v4, %v1104_v62  ;;  %v2508_v62 = vld [vmem:[%s2618_s1 + $0x160] sm:$0xff] }
  0x86   :  { %v1119_v38 = vadd.f32 %v1118_v0, %v1113_v24  ;;  %v1130_v7 = vmul.f32 %v2322_v57, %v1129_v18  ;;  %v1141_v43 = vrot.slane %v2290_v30, %v1585_v27  ;;  %v1010_v51 = vadd.f32 %v1009_v8, %v928_v14  ;;  %v1467_v57 = vld [vmem:[%s2617_s2 + $0xac] sm:$0xf]  ;;  %v1468_v14 = vld [vmem:[%s2617_s2 + $0xb0] sm:$0xf] }
  0x87   :  { %v1057_v9 = vadd.f32 %v1056_v36, %v1051_v28  ;;  %v1088_v32 = vadd.f32 %v1087_v15, %v1082_v5  ;;  %v1147_v48 = vrot.slane %v2298_v42, %v1585_v27  ;;  %v1136_v30 = vmul.f32 %v2329_v21, %v1135_v39  ;;  %v1469_v42 = vld [vmem:[%s2617_s2 + $0xb4] sm:$0xf]  ;;  %v2522_v5 = vld [vmem:[%s2618_s1 + $0x168] sm:$0xff] }
  0x88   :  { %v1125_v40 = vadd.f32 %v1124_v3, %v1119_v38  ;;  %v1153_v41 = vrot.slane %v2301_v37, %v1585_v27  ;;  %v2452_v44 = vmul.f32 %v1480_v34, %v1464_v31  ;;  %v1142_v21 = vmul.f32 %v2337_v46, %v1141_v43  ;;  %v1470_v37 = vld [vmem:[%s2617_s2 + $0xb8] sm:$0xf]  ;;  %v2533_v43 = vld [vmem:[%s2618_s1 + $0x170] sm:$0xff] }
  0x89   :  { %v1058_v47 = vmul.f32 %v1057_v9, %v1057_v9  ;;  %v1094_v49 = vadd.f32 %v1093_v23, %v1088_v32  ;;  %v2461_v1 = vmul.f32 %v1480_v34, %v1465_v35  ;;  %v1148_v11 = vmul.f32 %v2348_v12, %v1147_v48  ;;  %v2501_v23 = vld [vmem:[%s2618_s1 + $0x158] sm:$0xff] }
  0x8a   :  { %v1131_v52 = vadd.f32 %v1130_v7, %v1125_v40  ;;  %v2464_v50 = vmul.f32 %v1480_v34, %v1466_v33  ;;  %v2466_v54 = vmul.f32 %v1480_v34, %v1467_v57  ;;  %v1154_v46 = vmul.f32 %v2360_v4, %v1153_v41  ;;  %v2487_v4 = vld [vmem:[%s2618_s1 + $0x148] sm:$0xff]  ;;  %v2538_v35 = vld [vmem:[%s2618_s1 + $0x178] sm:$0xff] }
  0x8b   :  { %v1100_v55 = vadd.f32 %v1099_v2, %v1094_v49  ;;  %v2469_v53 = vmul.f32 %v1480_v34, %v1468_v14  ;;  %v2471_v19 = vmul.f32 %v1480_v34, %v1469_v42  ;;  %v2478_v36 = vmul.f32 %v1480_v34, %v1470_v37 }
  0x8c   :  { %v1137_v45 = vadd.f32 %v1136_v30, %v1131_v52  ;;  %v2480_v12 = vmul.f32 %v1480_v34, %v1471_v10  ;;  %v1180_v59 = vrot.slane %v2452_v44, %v1559_v20  ;;  %v1187_v60 = vrot.slane %v2461_v1, %v1559_v20 }
  0x8d   :  { %v1106_v13 = vadd.f32 %v1105_v29, %v1100_v55  ;;  %v1195_v15 = vrot.slane %v2464_v50, %v1559_v20  ;;  %v1203_v61 = vrot.slane %v2466_v54, %v1559_v20  ;;  %v1059_v63 = vadd.f32 %v1058_v47, %v1010_v51 }
  0x8e   :  { %v1143_v22 = vadd.f32 %v1142_v21, %v1137_v45  ;;  %v1181_v6 = vmul.f32 %v2476_v16, %v1180_v59  ;;  %v1211_v17 = vrot.slane %v2469_v53, %v1559_v20  ;;  %v1188_v56 = vmul.f32 %v2487_v4, %v1187_v60 }
  0x8f   :  { %v1107_v2 = vmul.f32 %v1106_v13, %v1106_v13  ;;  %v1196_v8 = vmul.f32 %v2492_v58, %v1195_v15  ;;  %v1219_v24 = vrot.slane %v2471_v19, %v1559_v20  ;;  %v1204_v18 = vmul.f32 %v2501_v23, %v1203_v61 }
  0x90   :  { %v1149_v0 = vadd.f32 %v1148_v11, %v1143_v22  ;;  %v1212_v28 = vmul.f32 %v2508_v62, %v1211_v17  ;;  %v1189_v3 = vadd.f32 %v1188_v56, %v1181_v6  ;;  %v1227_v39 = vrot.slane %v2478_v36, %v1559_v20 }
  0x91   :  { %v1235_v31 = vrot.slane %v2480_v12, %v1559_v20  ;;  %v1243_v29 = vrot.slane %v2452_v44, %v1581_v25  ;;  %v1108_v38 = vadd.f32 %v1107_v2, %v1059_v63  ;;  %v1248_v51 = vrot.slane %v2461_v1, %v1581_v25 }
  0x92   :  { %v1155_v7 = vadd.f32 %v1154_v46, %v1149_v0  ;;  %v1254_v20 = vrot.slane %v2464_v50, %v1581_v25  ;;  %v1197_v9 = vadd.f32 %v1196_v8, %v1189_v3  ;;  %v1220_v32 = vmul.f32 %v2522_v5, %v1219_v24 }
  0x93   :  { %v1244_v48 = vmul.f32 %v2476_v16, %v1243_v29  ;;  %v1260_v33 = vrot.slane %v2466_v54, %v1581_v25  ;;  %v1249_v40 = vmul.f32 %v2487_v4, %v1248_v51  ;;  %v1266_v41 = vrot.slane %v2469_v53, %v1581_v25 }
  0x94   :  { %v1156_v57 = vmul.f32 %v1155_v7, %v1155_v7  ;;  %v1255_v30 = vmul.f32 %v2492_v58, %v1254_v20  ;;  %v1205_v14 = vadd.f32 %v1204_v18, %v1197_v9  ;;  %v1228_v42 = vmul.f32 %v2533_v43, %v1227_v39 }
  0x95   :  { %v1236_v34 = vmul.f32 %v2538_v35, %v1235_v31  ;;  %v1272_v47 = vrot.slane %v2471_v19, %v1581_v25  ;;  %v1250_v21 = vadd.f32 %v1249_v40, %v1244_v48  ;;  %v1261_v37 = vmul.f32 %v2501_v23, %v1260_v33 }
  0x96   :  { %v1157_v49 = vadd.f32 %v1156_v57, %v1108_v38  ;;  %v1278_v10 = vrot.slane %v2478_v36, %v1581_v25  ;;  %v1213_v52 = vadd.f32 %v1212_v28, %v1205_v14  ;;  %v1267_v11 = vmul.f32 %v2508_v62, %v1266_v41 }
  0x97   :  { %v1284_v55 = vrot.slane %v2480_v12, %v1581_v25  ;;  %v1292_v46 = vrot.slane %v2452_v44, %v1583_v26  ;;  %v1256_v45 = vadd.f32 %v1255_v30, %v1250_v21  ;;  %v1273_v59 = vmul.f32 %v2522_v5, %v1272_v47 }
  0x98   :  { %v1297_v13 = vrot.slane %v2461_v1, %v1583_v26  ;;  %v1303_v60 = vrot.slane %v2464_v50, %v1583_v26  ;;  %v1221_v15 = vadd.f32 %v1220_v32, %v1213_v52  ;;  %v1309_v63 = vrot.slane %v2466_v54, %v1583_v26 }
  0x99   :  { %v1293_v61 = vmul.f32 %v2476_v16, %v1292_v46  ;;  %v1315_v25 = vrot.slane %v2469_v53, %v1583_v26  ;;  %v1262_v22 = vadd.f32 %v1261_v37, %v1256_v45  ;;  %v1321_v2 = vrot.slane %v2471_v19, %v1583_v26 }
  0x9a   :  { %v1298_v6 = vmul.f32 %v2487_v4, %v1297_v13  ;;  %v1304_v17 = vmul.f32 %v2492_v58, %v1303_v60  ;;  %v1229_v56 = vadd.f32 %v1228_v42, %v1221_v15  ;;  %v1279_v8 = vmul.f32 %v2533_v43, %v1278_v10 }
  0x9b   :  { %v1285_v24 = vmul.f32 %v2538_v35, %v1284_v55  ;;  %v1310_v0 = vmul.f32 %v2501_v23, %v1309_v63  ;;  %v1268_v18 = vadd.f32 %v1267_v11, %v1262_v22  ;;  %v1316_v3 = vmul.f32 %v2508_v62, %v1315_v25 }
  0x9c   :  { %v1299_v28 = vadd.f32 %v1298_v6, %v1293_v61  ;;  %v1327_v39 = vrot.slane %v2478_v36, %v1583_v26  ;;  %v1237_v31 = vadd.f32 %v1236_v34, %v1229_v56  ;;  %v1322_v29 = vmul.f32 %v2522_v5, %v1321_v2 }
  0x9d   :  { %v1341_v38 = vrot.slane %v2452_v44, %v1585_v27  ;;  %v1346_v7 = vrot.slane %v2461_v1, %v1585_v27  ;;  %v1274_v51 = vadd.f32 %v1273_v59, %v1268_v18  ;;  %v1333_v9 = vrot.slane %v2480_v12, %v1583_v26 }
  0x9e   :  { %v1305_v20 = vadd.f32 %v1304_v17, %v1299_v28  ;;  %v1352_v32 = vrot.slane %v2464_v50, %v1585_v27  ;;  %v1238_v48 = vmul.f32 %v1237_v31, %v1237_v31  ;;  %v1358_v40 = vrot.slane %v2466_v54, %v1585_v27 }
  0x9f   :  { %v1342_v33 = vmul.f32 %v2476_v16, %v1341_v38  ;;  %v1347_v57 = vmul.f32 %v2487_v4, %v1346_v7  ;;  %v1280_v44 = vadd.f32 %v1279_v8, %v1274_v51  ;;  %v1364_v41 = vrot.slane %v2469_v53, %v1585_v27 }
  0xa0   :  { %v1311_v30 = vadd.f32 %v1310_v0, %v1305_v20  ;;  %v1353_v1 = vmul.f32 %v2492_v58, %v1352_v32  ;;  %v1359_v26 = vmul.f32 %v2501_v23, %v1358_v40  ;;  %v1370_v50 = vrot.slane %v2471_v19, %v1585_v27 }
  0xa1   :  { %v1348_v14 = vadd.f32 %v1347_v57, %v1342_v33  ;;  %v1286_v42 = vadd.f32 %v1285_v24, %v1280_v44  ;;  %v1328_v4 = vmul.f32 %v2533_v43, %v1327_v39  ;;  %v1365_v54 = vmul.f32 %v2508_v62, %v1364_v41 }
  0xa2   :  { %v1317_v16 = vadd.f32 %v1316_v3, %v1311_v30  ;;  %v1376_v47 = vrot.slane %v2478_v36, %v1585_v27  ;;  %v1239_v58 = vadd.f32 %v1238_v48, %v1157_v49  ;;  %v1334_v53 = vmul.f32 %v2538_v35, %v1333_v9 }
  0xa3   :  { %v1354_v34 = vadd.f32 %v1353_v1, %v1348_v14  ;;  %v1287_v37 = vmul.f32 %v1286_v42, %v1286_v42  ;;  %v1371_v23 = vmul.f32 %v2522_v5, %v1370_v50  ;;  %v1382_v19 = vrot.slane %v2480_v12, %v1585_v27 }
  0xa4   :  { %v1323_v21 = vadd.f32 %v1322_v29, %v1317_v16  ;;  %v1377_v55 = vmul.f32 %v2533_v43, %v1376_v47 }
  0xa5   :  { %v1360_v10 = vadd.f32 %v1359_v26, %v1354_v34  ;;  %v1288_v62 = vadd.f32 %v1287_v37, %v1239_v58  ;;  %v1383_v36 = vmul.f32 %v2538_v35, %v1382_v19 }
  0xa6   :  { %v1329_v52 = vadd.f32 %v1328_v4, %v1323_v21 }
  0xa7   :  { %v1366_v11 = vadd.f32 %v1365_v54, %v1360_v10 }
  0xa8   :  { %v1335_v46 = vadd.f32 %v1334_v53, %v1329_v52 }
  0xa9   :  { %v1372_v45 = vadd.f32 %v1371_v23, %v1366_v11 }
  0xaa   :  { %v1336_v49 = vmul.f32 %v1335_v46, %v1335_v46 }
  0xab   :  { %v1378_v59 = vadd.f32 %v1377_v55, %v1372_v45 }
  0xac   :  { %v1337_v13 = vadd.f32 %v1336_v49, %v1288_v62 }
  0xad   :  { %v1384_v60 = vadd.f32 %v1383_v36, %v1378_v59 }
  0xaf   :  { %v1385_v15 = vmul.f32 %v1384_v60, %v1384_v60 }
  0xb1   :  { %v1386_v61 = vadd.f32 %v1385_v15, %v1337_v13 }
  0xb3   :  { %1388 = vst.msk [vmem:[%s2619_s3] sm:$0xff] %vm1387_vm0, %v1386_v61 }

</bundles_post_ra>
